<compile_context>
chip_gen: v7x
topology: tpu7x:2x2x1
jax: 0.10.0
libtpu: 0.0.40
codegen_flags: <defaults>
</compile_context>

<pallas_src>
import numpy as np
import jax
import jax.numpy as jnp
from jax.experimental import pallas as pl
from jax.experimental.pallas import tpu as pltpu

# ----------------------------- configuration --------------------------------
N, P = 2, 8                    # batch, points per batch
Z_DIM = 16                     # glb / local feature dim
HA_DIM = 45                    # hand articulation dim (unused by cat_z_hA, as in torch)
J = 16                         # number of joints
FREQ = 4                       # positional-encoding frequencies
D_IN = 3
HIDDEN = 128                   # DIMS = [128]*8 (small stand-in for 512)
N_HIDDEN = 8
SKIP_IN = (4,)
LATENT_DIM = Z_DIM + J * 3             # 64
INPUT_CH = D_IN * (1 + 2 * FREQ)       # 27  (include_input + sin/cos per freq)
D0 = INPUT_CH + LATENT_DIM             # 91  (dims[0] of ImplicitNetwork)
D0_PAD = 128                           # lane-aligned network-input width
SKIP_X = HIDDEN - D0                   # 37  (layer-3 output width / skip split)
APPRX_DIST = 0.3
SOFTPLUS_BETA = 100.0
SOFTPLUS_THRESHOLD = 20.0              # torch.nn.Softplus default threshold
INV_SQRT2 = np.float32(1.0 / np.sqrt(2.0))

DIMS = [D0] + [HIDDEN] * N_HIDDEN + [1]   # len 10 -> 9 linear layers
NUM_LIN = len(DIMS) - 1
NUM_W_SLABS = NUM_LIN + 1                 # skip layer uses two (128,128) slabs


def _layer_shapes():
    shapes = []
    for l in range(NUM_LIN):
        out_dim = DIMS[l + 1] - DIMS[0] if (l + 1) in SKIP_IN else DIMS[l + 1]
        shapes.append((DIMS[l], out_dim))
    return shapes

LAYER_SHAPES = _layer_shapes()   # [(91,128),(128,128)x2,(128,37),(128,128)x4,(128,1)]


# ------------------------------ math helpers ---------------------------------
def softplus_beta(x, beta=SOFTPLUS_BETA, threshold=SOFTPLUS_THRESHOLD):
    # torch.nn.Softplus(beta): (1/beta)*log(1+exp(beta*x)), linear past threshold
    bx = beta * x
    safe = jnp.minimum(bx, threshold)
    return jnp.where(bx > threshold, x, jnp.log1p(jnp.exp(safe)) / beta)


# ------------------------------- Pallas kernel --------------------------------
def sdf_mlp_kernel(inp_ref, w_ref, b_ref, out_ref):
    """ImplicitNetwork forward on one (TM, 128) tile of points.

    inp_ref : (TM, 128) f32 = [latent(64) | embedded_xyz(27) | zero pad(37)]
    w_ref   : (10, 128, 128) bf16, zero-padded packed weights
              [W0, W1, W2, W3, W4x, W4z, W5, W6, W7, W8]
    b_ref   : (16, 128) f32, zero-padded packed biases (rows 0..8 used)
    out_ref : (TM, 128) f32; column 0 holds the SDF value (rest is padding).
    """
    x0 = inp_ref[...]                    # keep f32 activations (v5e-friendly)
    x = x0
    wi = 0
    for l in range(NUM_LIN):             # static 9-layer unroll (trace time)
        b = b_ref[l:l + 1, :]            # (1, 128) f32, static slice (free)
        if l in SKIP_IN:
            # torch: x = cat([x, input], 1) / sqrt(2); x = lin(x)
            # Split matmul keeps both K dims (8,128)-aligned; the two dots
            # summed map to MRB accumulation on v7x (VPU add on v5e/v6e).
            w_x = w_ref[wi]
            w_z = w_ref[wi + 1]
            wi += 2
            acc = jnp.dot(x.astype(jnp.bfloat16), w_x,
                          preferred_element_type=jnp.float32)
            acc = acc + jnp.dot(x0.astype(jnp.bfloat16), w_z,
                                preferred_element_type=jnp.float32)
            x = acc * INV_SQRT2 + b
        else:
            w = w_ref[wi]
            wi += 1
            x = jnp.dot(x.astype(jnp.bfloat16), w,
                        preferred_element_type=jnp.float32) + b
        if l < NUM_LIN - 1:
            x = softplus_beta(x)         # f32 EUP math (hidden under MXU slack)

    y = jnp.tanh(x)                      # (TM,128); same vreg count as (TM,1)

    # within_cube = all(|embedded_xyz| <= 1). The torch module checks the
    # embedded coords; |sin|,|cos|<=1 so this equals a check on raw xyz.
    # Zero-padded cols 91:128 can never change a max(|.|)<=1 test, so the
    # lane-aligned slice [:, 64:128] is exact.
    xyz_emb = x0[:, LATENT_DIM:]
    within = (jnp.max(jnp.abs(xyz_emb), axis=-1, keepdims=True) <= 1.0).astype(jnp.float32)
    out_ref[...] = within * y + (1.0 - within) * np.float32(APPRX_DIST)


def pack_params(params):
    """Zero-pad every layer to (128,128), cast weights to bf16 and pack all
    weights/biases into two resident buffers (3 kernel inputs total)."""
    ws = []
    bs = np.zeros((16, HIDDEN), np.float32)
    for l, (w, b) in enumerate(params):
        w = np.asarray(w, np.float32)
        b = np.asarray(b, np.float32).reshape(-1)
        fin, fout = w.shape
        if l in SKIP_IN:
            # split: rows [:37] act on x (layer-3 output), rows [37:] on input
            wx = np.zeros((HIDDEN, HIDDEN), np.float32)
            wz = np.zeros((D0_PAD, HIDDEN), np.float32)
            wx[:SKIP_X, :] = w[:SKIP_X, :]
            wz[:D0, :] = w[SKIP_X:, :]
            ws += [wx, wz]
        else:
            W = np.zeros((D0_PAD, HIDDEN), np.float32)
            W[:fin, :fout] = w
            ws.append(W)
        bs[l, :fout] = b
    w_packed = jnp.asarray(np.stack(ws, 0), dtype=jnp.bfloat16)   # (10,128,128)
    b_packed = jnp.asarray(bs, dtype=jnp.float32)                 # (16,128)
    return w_packed, b_packed


def run_sdf_kernel(inp, w_packed, b_packed, *, tm=128):
    """inp: (M, 91) f32. Returns (M, 1) f32.

    tm >= 128 keeps the MXU LHS full (use 256-512 for larger M on v6e/v7x)."""
    M = inp.shape[0]
    M_pad = ((M + tm - 1) // tm) * tm
    inp_pad = jnp.zeros((M_pad, D0_PAD), jnp.float32).at[:M, :D0].set(inp)

    cost = pl.CostEstimate(
        flops=2 * M_pad * NUM_W_SLABS * HIDDEN * HIDDEN,
        transcendentals=M_pad * HIDDEN * (2 * (NUM_LIN - 1) + 1),
        bytes_accessed=int(w_packed.size) * 2 + int(b_packed.size) * 4
                       + M_pad * (D0_PAD + HIDDEN) * 4,
    )

    out = pl.pallas_call(
        sdf_mlp_kernel,
        out_shape=jax.ShapeDtypeStruct((M_pad, HIDDEN), jnp.float32),
        grid_spec=pltpu.PrefetchScalarGridSpec(
            num_scalar_prefetch=0,
            grid=(M_pad // tm,),
            in_specs=[
                pl.BlockSpec((tm, D0_PAD), lambda i: (i, 0)),
                # constant block index -> weights/biases stay resident in VMEM
                pl.BlockSpec((NUM_W_SLABS, HIDDEN, HIDDEN), lambda i: (0, 0, 0)),
                pl.BlockSpec((16, HIDDEN), lambda i: (0, 0)),
            ],
            out_specs=pl.BlockSpec((tm, HIDDEN), lambda i: (i, 0)),
        ),
        compiler_params=pltpu.CompilerParams(
            dimension_semantics=("parallel",),
            vmem_limit_bytes=32 * 1024 * 1024,
        ),
        cost_estimate=cost,
    )(inp_pad, w_packed, b_packed)
    return out[:M, :1]


# ------------------------------- JAX glue -------------------------------------
def embed_xyz(xyz):
    """NeRF positional encoding, include_input=True, log_sampling, band_width=1."""
    freqs = 2.0 ** jnp.arange(FREQ, dtype=jnp.float32)   # [1,2,4,8]
    outs = [xyz]
    for k in range(FREQ):
        outs.append(jnp.sin(xyz * freqs[k]))
        outs.append(jnp.cos(xyz * freqs[k]))
    return jnp.concatenate(outs, axis=-1)                 # (..., 27)


def apply_transform(points, T):
    """points: (..., P, 3), T: (..., 4, 4);  p' = R p + t.
    # TODO(synk): mesh_utils.apply_transform source not provided; assuming the
    # standard homogeneous column-vector convention (T @ [p;1])[:3]."""
    R = T[..., :3, :3]
    t = T[..., :3, 3]
    return jnp.einsum('...ab,...pb->...pa', R, points) + t[..., None, :]


def get_dist_joint(nPoints, jsTn):
    """nPoints (N,P,3), jsTn (N,J,4,4) -> (N, P, J*3)."""
    Nn, Pp, _ = nPoints.shape
    nP_exp = jnp.broadcast_to(nPoints[:, None], (Nn, J, Pp, 3))
    jsPoints = apply_transform(nP_exp, jsTn)              # (N,J,P,3)
    jsPoints = jnp.transpose(jsPoints, (0, 2, 1, 3)).reshape(Nn, Pp, J * 3)
    return jsPoints


def proj_x_ndc(xPoints, cTx, cam_f, cam_c):
    """Pinhole projection to NDC-like coords.
    # TODO(synk): pytorch3d PerspectiveCameras / mesh_utils.transform_points NDC
    # conventions not reproducible without their source; using fx*X/Z+px, fy*Y/Z+py."""
    cP = apply_transform(xPoints, cTx)                    # (N,P,3)
    z = cP[..., 2:3]
    return cam_f[:, None, :] * cP[..., :2] / z + cam_c[:, None, :]


def bilinear_sample(img, grid_xy):
    """img (N,C,H,W), grid_xy (N,P,2) in [-1,1]; align_corners=False, border clamp.
    # TODO(synk): mesh_utils.sample_images_at_mc_locs sign/align convention assumed."""
    Nn, C, H, W = img.shape
    x = (grid_xy[..., 0] + 1.0) * 0.5 * W - 0.5
    y = (grid_xy[..., 1] + 1.0) * 0.5 * H - 0.5
    x0 = jnp.floor(x); y0 = jnp.floor(y)
    wx1 = x - x0; wx0 = 1.0 - wx1
    wy1 = y - y0; wy0 = 1.0 - wy1
    x0i = jnp.clip(x0, 0, W - 1).astype(jnp.int32)
    x1i = jnp.clip(x0 + 1, 0, W - 1).astype(jnp.int32)
    y0i = jnp.clip(y0, 0, H - 1).astype(jnp.int32)
    y1i = jnp.clip(y0 + 1, 0, H - 1).astype(jnp.int32)

    def per_n(im, x0i, x1i, y0i, y1i, wx0, wx1, wy0, wy1):
        v00 = im[:, y0i, x0i]; v01 = im[:, y0i, x1i]
        v10 = im[:, y1i, x0i]; v11 = im[:, y1i, x1i]
        out = v00 * (wy0 * wx0) + v01 * (wy0 * wx1) + v10 * (wy1 * wx0) + v11 * (wy1 * wx1)
        return out.T                                       # (P, C)

    return jax.vmap(per_n)(img, x0i, x1i, y0i, y1i, wx0, wx1, wy0, wy1)


def init_params(key):
    params = []
    for (fan_in, fan_out) in LAYER_SHAPES:
        key, kw, kb = jax.random.split(key, 3)
        w = jax.random.normal(kw, (fan_in, fan_out), jnp.float32) / np.sqrt(fan_in)
        b = jax.random.normal(kb, (1, fan_out), jnp.float32) * 0.01
        params.append((w, b))
    return params


def build_mlp_input(xPoints, glb, local_img, cTx, cam_f, cam_c, jsTx):
    """sample_multi_z + get_dist_joint + cat_z_hA + cat_z_point + embedding."""
    Nn, Pp, _ = xPoints.shape
    ndc = proj_x_ndc(xPoints, cTx, cam_f, cam_c)
    local = bilinear_sample(local_img, ndc)                             # (N,P,Z_DIM)
    dst = get_dist_joint(xPoints, jsTx)                                 # (N,P,48)
    latent = jnp.concatenate([glb[:, None, :] + local, dst], axis=-1)   # (N,P,64)
    points = jnp.concatenate([latent, xPoints], axis=-1).reshape(Nn * Pp, LATENT_DIM + 3)
    xyz = points[:, -D_IN:]
    lat = points[:, :-D_IN]
    return jnp.concatenate([lat, embed_xyz(xyz)], axis=-1)              # (M, 91)


def pixcoord_forward(xPoints, glb, local_img, hA, cTx, cam_f, cam_c, jsTx,
                     w_packed, b_packed):
    """PixCoord.forward (OCCUPANCY=False path). hA is ignored, as in torch."""
    Nn, Pp, _ = xPoints.shape
    inp = build_mlp_input(xPoints, glb, local_img, cTx, cam_f, cam_c, jsTx)
    sdf = run_sdf_kernel(inp, w_packed, b_packed)          # (M, 1)
    sdf = sdf.reshape(Nn, Pp, 1)
    return sdf, {'soft_sdf': sdf}


def mlp_reference(inp, params):
    """Pure-JAX reference mirroring the kernel's numerics (bf16 MXU operands,
    f32 accumulation, f32 activation math)."""
    x0 = inp
    x = x0
    for l in range(NUM_LIN):
        w, b = params[l]
        wb = w.astype(jnp.bfloat16)
        if l in SKIP_IN:
            xc = jnp.concatenate([x, x0], axis=-1)
            x = jnp.dot(xc.astype(jnp.bfloat16), wb,
                        preferred_element_type=jnp.float32) * INV_SQRT2 + b
        else:
            x = jnp.dot(x.astype(jnp.bfloat16), wb,
                        preferred_element_type=jnp.float32) + b
        if l < NUM_LIN - 1:
            x = softplus_beta(x)
    y = jnp.tanh(x)
    within = (jnp.max(jnp.abs(x0[:, LATENT_DIM:]), axis=-1, keepdims=True) <= 1.0).astype(jnp.float32)
    return within * y + (1.0 - within) * APPRX_DIST


# --------------------------------- main ---------------------------------------
if __name__ == "__main__":
    key = jax.random.PRNGKey(0)
    k_pts, k_glb, k_loc, k_hA, k_js, k_par = jax.random.split(key, 6)

    H = W = 16
    xPoints = jax.random.uniform(k_pts, (N, P, 3), jnp.float32, minval=-1.1, maxval=1.1)
    glb = jax.random.normal(k_glb, (N, Z_DIM), jnp.float32)
    local_img = jax.random.normal(k_loc, (N, Z_DIM, H, W), jnp.float32)   # NCHW
    hA = jax.random.normal(k_hA, (N, HA_DIM), jnp.float32)                # unused (as in torch)

    # camera-from-x transform: identity rotation, translate +3 in z so Z>0
    cTx = jnp.tile(jnp.eye(4, dtype=jnp.float32), (N, 1, 1))
    cTx = cTx.at[:, 2, 3].set(3.0)
    cam_f = jnp.ones((N, 2), jnp.float32)
    cam_c = jnp.zeros((N, 2), jnp.float32)

    # per-joint transforms: identity rotation + random translation
    jsTx = jnp.tile(jnp.eye(4, dtype=jnp.float32), (N, J, 1, 1))
    jsTx = jsTx.at[:, :, :3, 3].set(
        jax.random.uniform(k_js, (N, J, 3), jnp.float32, minval=-0.5, maxval=0.5))

    params = init_params(k_par)
    w_packed, b_packed = pack_params(params)

    sdf, outputs = pixcoord_forward(xPoints, glb, local_img, hA, cTx, cam_f, cam_c,
                                    jsTx, w_packed, b_packed)
    sdf = jax.block_until_ready(sdf)

    # sanity check: Pallas MLP vs pure-JAX reference on the same MLP input
    inp = build_mlp_input(xPoints, glb, local_img, cTx, cam_f, cam_c, jsTx)
    ref = mlp_reference(inp, params).reshape(N, P, 1)
    np.testing.assert_allclose(np.asarray(sdf), np.asarray(ref), rtol=2e-3, atol=2e-3)

    assert sdf.shape == (N, P, 1)
    print("KERNEL_OK")
</pallas_src>

<mosaic_0001>
module attributes {stable_mosaic.version = 11 : i64} {
  func.func @sdf_mlp_kernel(%arg0: i32, %arg1: memref<128x128xf32, #tpu.memory_space<vmem>>, %arg2: memref<10x128x128xbf16, #tpu.memory_space<vmem>>, %arg3: memref<16x128xf32, #tpu.memory_space<vmem>>, %arg4: memref<128x128xf32, #tpu.memory_space<vmem>>) attributes {dimension_semantics = [#tpu.dimension_semantics<parallel>], iteration_bounds = array<i64: 1>, scalar_prefetch = 0 : i64, scratch_operands = 0 : i64, tpu.core_type = #tpu.core_type<tc>, window_params = [{transform_indices = @transform_0, window_bounds = array<i64: 128, 128>}, {pipeline_mode = #tpu.pipeline_mode<synchronous>, transform_indices = @transform_1, window_bounds = array<i64: 10, 128, 128>}, {pipeline_mode = #tpu.pipeline_mode<synchronous>, transform_indices = @transform_2, window_bounds = array<i64: 16, 128>}, {transform_indices = @transform_3, window_bounds = array<i64: 128, 128>}]} {
    %c0 = arith.constant 0 : index
    %c0_0 = arith.constant 0 : index
    %0 = vector.load %arg1[%c0, %c0_0] : memref<128x128xf32, #tpu.memory_space<vmem>>, vector<128x128xf32>
    %c0_1 = arith.constant 0 : index
    %c0_2 = arith.constant 0 : index
    %1 = vector.load %arg3[%c0_1, %c0_2] : memref<16x128xf32, #tpu.memory_space<vmem>>, vector<1x128xf32>
    %c0_3 = arith.constant 0 : index
    %c0_4 = arith.constant 0 : index
    %c0_5 = arith.constant 0 : index
    %2 = vector.load %arg2[%c0_3, %c0_4, %c0_5] : memref<10x128x128xbf16, #tpu.memory_space<vmem>>, vector<1x128x128xbf16>
    %3 = vector.shape_cast %2 : vector<1x128x128xbf16> to vector<128x128xbf16>
    %4 = arith.truncf %0 : vector<128x128xf32> to vector<128x128xbf16>
    %cst = arith.constant dense<0.000000e+00> : vector<128x128xf32>
    %5 = tpu.matmul %4, %3, %cst {dimension_numbers = #tpu.dot_dimension_numbers<[1], [0], [0], [1], [0, 0, 1, 1], [], []>} : vector<128x128xbf16>, vector<128x128xbf16>, vector<128x128xf32> -> vector<128x128xf32>
    %6 = vector.broadcast %1 : vector<1x128xf32> to vector<128x128xf32>
    %7 = arith.addf %5, %6 : vector<128x128xf32>
    %cst_6 = arith.constant 1.000000e+02 : f32
    %8 = vector.broadcast %cst_6 : f32 to vector<128x128xf32>
    %9 = arith.mulf %8, %7 : vector<128x128xf32>
    %cst_7 = arith.constant 2.000000e+01 : f32
    %10 = vector.broadcast %cst_7 : f32 to vector<128x128xf32>
    %11 = arith.minimumf %9, %10 : vector<128x128xf32>
    %cst_8 = arith.constant 2.000000e+01 : f32
    %12 = vector.broadcast %cst_8 : f32 to vector<128x128xf32>
    %13 = arith.cmpf ogt, %9, %12 : vector<128x128xf32>
    %14 = math.exp %11 : vector<128x128xf32>
    %15 = math.log1p %14 : vector<128x128xf32>
    %cst_9 = arith.constant 1.000000e+02 : f32
    %16 = vector.broadcast %cst_9 : f32 to vector<128x128xf32>
    %17 = arith.divf %15, %16 : vector<128x128xf32>
    %18 = arith.select %13, %7, %17 : vector<128x128xi1>, vector<128x128xf32>
    %c1 = arith.constant 1 : index
    %c0_10 = arith.constant 0 : index
    %19 = vector.load %arg3[%c1, %c0_10] : memref<16x128xf32, #tpu.memory_space<vmem>>, vector<1x128xf32>
    %c1_11 = arith.constant 1 : index
    %c0_12 = arith.constant 0 : index
    %c0_13 = arith.constant 0 : index
    %20 = vector.load %arg2[%c1_11, %c0_12, %c0_13] : memref<10x128x128xbf16, #tpu.memory_space<vmem>>, vector<1x128x128xbf16>
    %21 = vector.shape_cast %20 : vector<1x128x128xbf16> to vector<128x128xbf16>
    %22 = arith.truncf %18 : vector<128x128xf32> to vector<128x128xbf16>
    %cst_14 = arith.constant dense<0.000000e+00> : vector<128x128xf32>
    %23 = tpu.matmul %22, %21, %cst_14 {dimension_numbers = #tpu.dot_dimension_numbers<[1], [0], [0], [1], [0, 0, 1, 1], [], []>} : vector<128x128xbf16>, vector<128x128xbf16>, vector<128x128xf32> -> vector<128x128xf32>
    %24 = vector.broadcast %19 : vector<1x128xf32> to vector<128x128xf32>
    %25 = arith.addf %23, %24 : vector<128x128xf32>
    %cst_15 = arith.constant 1.000000e+02 : f32
    %26 = vector.broadcast %cst_15 : f32 to vector<128x128xf32>
    %27 = arith.mulf %26, %25 : vector<128x128xf32>
    %cst_16 = arith.constant 2.000000e+01 : f32
    %28 = vector.broadcast %cst_16 : f32 to vector<128x128xf32>
    %29 = arith.minimumf %27, %28 : vector<128x128xf32>
    %cst_17 = arith.constant 2.000000e+01 : f32
    %30 = vector.broadcast %cst_17 : f32 to vector<128x128xf32>
    %31 = arith.cmpf ogt, %27, %30 : vector<128x128xf32>
    %32 = math.exp %29 : vector<128x128xf32>
    %33 = math.log1p %32 : vector<128x128xf32>
    %cst_18 = arith.constant 1.000000e+02 : f32
    %34 = vector.broadcast %cst_18 : f32 to vector<128x128xf32>
    %35 = arith.divf %33, %34 : vector<128x128xf32>
    %36 = arith.select %31, %25, %35 : vector<128x128xi1>, vector<128x128xf32>
    %c2 = arith.constant 2 : index
    %c0_19 = arith.constant 0 : index
    %37 = vector.load %arg3[%c2, %c0_19] : memref<16x128xf32, #tpu.memory_space<vmem>>, vector<1x128xf32>
    %c2_20 = arith.constant 2 : index
    %c0_21 = arith.constant 0 : index
    %c0_22 = arith.constant 0 : index
    %38 = vector.load %arg2[%c2_20, %c0_21, %c0_22] : memref<10x128x128xbf16, #tpu.memory_space<vmem>>, vector<1x128x128xbf16>
    %39 = vector.shape_cast %38 : vector<1x128x128xbf16> to vector<128x128xbf16>
    %40 = arith.truncf %36 : vector<128x128xf32> to vector<128x128xbf16>
    %cst_23 = arith.constant dense<0.000000e+00> : vector<128x128xf32>
    %41 = tpu.matmul %40, %39, %cst_23 {dimension_numbers = #tpu.dot_dimension_numbers<[1], [0], [0], [1], [0, 0, 1, 1], [], []>} : vector<128x128xbf16>, vector<128x128xbf16>, vector<128x128xf32> -> vector<128x128xf32>
    %42 = vector.broadcast %37 : vector<1x128xf32> to vector<128x128xf32>
    %43 = arith.addf %41, %42 : vector<128x128xf32>
    %cst_24 = arith.constant 1.000000e+02 : f32
    %44 = vector.broadcast %cst_24 : f32 to vector<128x128xf32>
    %45 = arith.mulf %44, %43 : vector<128x128xf32>
    %cst_25 = arith.constant 2.000000e+01 : f32
    %46 = vector.broadcast %cst_25 : f32 to vector<128x128xf32>
    %47 = arith.minimumf %45, %46 : vector<128x128xf32>
    %cst_26 = arith.constant 2.000000e+01 : f32
    %48 = vector.broadcast %cst_26 : f32 to vector<128x128xf32>
    %49 = arith.cmpf ogt, %45, %48 : vector<128x128xf32>
    %50 = math.exp %47 : vector<128x128xf32>
    %51 = math.log1p %50 : vector<128x128xf32>
    %cst_27 = arith.constant 1.000000e+02 : f32
    %52 = vector.broadcast %cst_27 : f32 to vector<128x128xf32>
    %53 = arith.divf %51, %52 : vector<128x128xf32>
    %54 = arith.select %49, %43, %53 : vector<128x128xi1>, vector<128x128xf32>
    %c3 = arith.constant 3 : index
    %c0_28 = arith.constant 0 : index
    %55 = vector.load %arg3[%c3, %c0_28] : memref<16x128xf32, #tpu.memory_space<vmem>>, vector<1x128xf32>
    %c3_29 = arith.constant 3 : index
    %c0_30 = arith.constant 0 : index
    %c0_31 = arith.constant 0 : index
    %56 = vector.load %arg2[%c3_29, %c0_30, %c0_31] : memref<10x128x128xbf16, #tpu.memory_space<vmem>>, vector<1x128x128xbf16>
    %57 = vector.shape_cast %56 : vector<1x128x128xbf16> to vector<128x128xbf16>
    %58 = arith.truncf %54 : vector<128x128xf32> to vector<128x128xbf16>
    %cst_32 = arith.constant dense<0.000000e+00> : vector<128x128xf32>
    %59 = tpu.matmul %58, %57, %cst_32 {dimension_numbers = #tpu.dot_dimension_numbers<[1], [0], [0], [1], [0, 0, 1, 1], [], []>} : vector<128x128xbf16>, vector<128x128xbf16>, vector<128x128xf32> -> vector<128x128xf32>
    %60 = vector.broadcast %55 : vector<1x128xf32> to vector<128x128xf32>
    %61 = arith.addf %59, %60 : vector<128x128xf32>
    %cst_33 = arith.constant 1.000000e+02 : f32
    %62 = vector.broadcast %cst_33 : f32 to vector<128x128xf32>
    %63 = arith.mulf %62, %61 : vector<128x128xf32>
    %cst_34 = arith.constant 2.000000e+01 : f32
    %64 = vector.broadcast %cst_34 : f32 to vector<128x128xf32>
    %65 = arith.minimumf %63, %64 : vector<128x128xf32>
    %cst_35 = arith.constant 2.000000e+01 : f32
    %66 = vector.broadcast %cst_35 : f32 to vector<128x128xf32>
    %67 = arith.cmpf ogt, %63, %66 : vector<128x128xf32>
    %68 = math.exp %65 : vector<128x128xf32>
    %69 = math.log1p %68 : vector<128x128xf32>
    %cst_36 = arith.constant 1.000000e+02 : f32
    %70 = vector.broadcast %cst_36 : f32 to vector<128x128xf32>
    %71 = arith.divf %69, %70 : vector<128x128xf32>
    %72 = arith.select %67, %61, %71 : vector<128x128xi1>, vector<128x128xf32>
    %c4 = arith.constant 4 : index
    %c0_37 = arith.constant 0 : index
    %73 = vector.load %arg3[%c4, %c0_37] : memref<16x128xf32, #tpu.memory_space<vmem>>, vector<1x128xf32>
    %c4_38 = arith.constant 4 : index
    %c0_39 = arith.constant 0 : index
    %c0_40 = arith.constant 0 : index
    %74 = vector.load %arg2[%c4_38, %c0_39, %c0_40] : memref<10x128x128xbf16, #tpu.memory_space<vmem>>, vector<1x128x128xbf16>
    %75 = vector.shape_cast %74 : vector<1x128x128xbf16> to vector<128x128xbf16>
    %c5 = arith.constant 5 : index
    %c0_41 = arith.constant 0 : index
    %c0_42 = arith.constant 0 : index
    %76 = vector.load %arg2[%c5, %c0_41, %c0_42] : memref<10x128x128xbf16, #tpu.memory_space<vmem>>, vector<1x128x128xbf16>
    %77 = vector.shape_cast %76 : vector<1x128x128xbf16> to vector<128x128xbf16>
    %78 = arith.truncf %72 : vector<128x128xf32> to vector<128x128xbf16>
    %cst_43 = arith.constant dense<0.000000e+00> : vector<128x128xf32>
    %79 = tpu.matmul %78, %75, %cst_43 {dimension_numbers = #tpu.dot_dimension_numbers<[1], [0], [0], [1], [0, 0, 1, 1], [], []>} : vector<128x128xbf16>, vector<128x128xbf16>, vector<128x128xf32> -> vector<128x128xf32>
    %80 = arith.truncf %0 : vector<128x128xf32> to vector<128x128xbf16>
    %cst_44 = arith.constant dense<0.000000e+00> : vector<128x128xf32>
    %81 = tpu.matmul %80, %77, %cst_44 {dimension_numbers = #tpu.dot_dimension_numbers<[1], [0], [0], [1], [0, 0, 1, 1], [], []>} : vector<128x128xbf16>, vector<128x128xbf16>, vector<128x128xf32> -> vector<128x128xf32>
    %82 = arith.addf %79, %81 : vector<128x128xf32>
    %cst_45 = arith.constant 0.707106769 : f32
    %83 = vector.broadcast %cst_45 : f32 to vector<128x128xf32>
    %84 = arith.mulf %82, %83 : vector<128x128xf32>
    %85 = vector.broadcast %73 : vector<1x128xf32> to vector<128x128xf32>
    %86 = arith.addf %84, %85 : vector<128x128xf32>
    %cst_46 = arith.constant 1.000000e+02 : f32
    %87 = vector.broadcast %cst_46 : f32 to vector<128x128xf32>
    %88 = arith.mulf %87, %86 : vector<128x128xf32>
    %cst_47 = arith.constant 2.000000e+01 : f32
    %89 = vector.broadcast %cst_47 : f32 to vector<128x128xf32>
    %90 = arith.minimumf %88, %89 : vector<128x128xf32>
    %cst_48 = arith.constant 2.000000e+01 : f32
    %91 = vector.broadcast %cst_48 : f32 to vector<128x128xf32>
    %92 = arith.cmpf ogt, %88, %91 : vector<128x128xf32>
    %93 = math.exp %90 : vector<128x128xf32>
    %94 = math.log1p %93 : vector<128x128xf32>
    %cst_49 = arith.constant 1.000000e+02 : f32
    %95 = vector.broadcast %cst_49 : f32 to vector<128x128xf32>
    %96 = arith.divf %94, %95 : vector<128x128xf32>
    %97 = arith.select %92, %86, %96 : vector<128x128xi1>, vector<128x128xf32>
    %c5_50 = arith.constant 5 : index
    %c0_51 = arith.constant 0 : index
    %98 = vector.load %arg3[%c5_50, %c0_51] : memref<16x128xf32, #tpu.memory_space<vmem>>, vector<1x128xf32>
    %c6 = arith.constant 6 : index
    %c0_52 = arith.constant 0 : index
    %c0_53 = arith.constant 0 : index
    %99 = vector.load %arg2[%c6, %c0_52, %c0_53] : memref<10x128x128xbf16, #tpu.memory_space<vmem>>, vector<1x128x128xbf16>
    %100 = vector.shape_cast %99 : vector<1x128x128xbf16> to vector<128x128xbf16>
    %101 = arith.truncf %97 : vector<128x128xf32> to vector<128x128xbf16>
    %cst_54 = arith.constant dense<0.000000e+00> : vector<128x128xf32>
    %102 = tpu.matmul %101, %100, %cst_54 {dimension_numbers = #tpu.dot_dimension_numbers<[1], [0], [0], [1], [0, 0, 1, 1], [], []>} : vector<128x128xbf16>, vector<128x128xbf16>, vector<128x128xf32> -> vector<128x128xf32>
    %103 = vector.broadcast %98 : vector<1x128xf32> to vector<128x128xf32>
    %104 = arith.addf %102, %103 : vector<128x128xf32>
    %cst_55 = arith.constant 1.000000e+02 : f32
    %105 = vector.broadcast %cst_55 : f32 to vector<128x128xf32>
    %106 = arith.mulf %105, %104 : vector<128x128xf32>
    %cst_56 = arith.constant 2.000000e+01 : f32
    %107 = vector.broadcast %cst_56 : f32 to vector<128x128xf32>
    %108 = arith.minimumf %106, %107 : vector<128x128xf32>
    %cst_57 = arith.constant 2.000000e+01 : f32
    %109 = vector.broadcast %cst_57 : f32 to vector<128x128xf32>
    %110 = arith.cmpf ogt, %106, %109 : vector<128x128xf32>
    %111 = math.exp %108 : vector<128x128xf32>
    %112 = math.log1p %111 : vector<128x128xf32>
    %cst_58 = arith.constant 1.000000e+02 : f32
    %113 = vector.broadcast %cst_58 : f32 to vector<128x128xf32>
    %114 = arith.divf %112, %113 : vector<128x128xf32>
    %115 = arith.select %110, %104, %114 : vector<128x128xi1>, vector<128x128xf32>
    %c6_59 = arith.constant 6 : index
    %c0_60 = arith.constant 0 : index
    %116 = vector.load %arg3[%c6_59, %c0_60] : memref<16x128xf32, #tpu.memory_space<vmem>>, vector<1x128xf32>
    %c7 = arith.constant 7 : index
    %c0_61 = arith.constant 0 : index
    %c0_62 = arith.constant 0 : index
    %117 = vector.load %arg2[%c7, %c0_61, %c0_62] : memref<10x128x128xbf16, #tpu.memory_space<vmem>>, vector<1x128x128xbf16>
    %118 = vector.shape_cast %117 : vector<1x128x128xbf16> to vector<128x128xbf16>
    %119 = arith.truncf %115 : vector<128x128xf32> to vector<128x128xbf16>
    %cst_63 = arith.constant dense<0.000000e+00> : vector<128x128xf32>
    %120 = tpu.matmul %119, %118, %cst_63 {dimension_numbers = #tpu.dot_dimension_numbers<[1], [0], [0], [1], [0, 0, 1, 1], [], []>} : vector<128x128xbf16>, vector<128x128xbf16>, vector<128x128xf32> -> vector<128x128xf32>
    %121 = vector.broadcast %116 : vector<1x128xf32> to vector<128x128xf32>
    %122 = arith.addf %120, %121 : vector<128x128xf32>
    %cst_64 = arith.constant 1.000000e+02 : f32
    %123 = vector.broadcast %cst_64 : f32 to vector<128x128xf32>
    %124 = arith.mulf %123, %122 : vector<128x128xf32>
    %cst_65 = arith.constant 2.000000e+01 : f32
    %125 = vector.broadcast %cst_65 : f32 to vector<128x128xf32>
    %126 = arith.minimumf %124, %125 : vector<128x128xf32>
    %cst_66 = arith.constant 2.000000e+01 : f32
    %127 = vector.broadcast %cst_66 : f32 to vector<128x128xf32>
    %128 = arith.cmpf ogt, %124, %127 : vector<128x128xf32>
    %129 = math.exp %126 : vector<128x128xf32>
    %130 = math.log1p %129 : vector<128x128xf32>
    %cst_67 = arith.constant 1.000000e+02 : f32
    %131 = vector.broadcast %cst_67 : f32 to vector<128x128xf32>
    %132 = arith.divf %130, %131 : vector<128x128xf32>
    %133 = arith.select %128, %122, %132 : vector<128x128xi1>, vector<128x128xf32>
    %c7_68 = arith.constant 7 : index
    %c0_69 = arith.constant 0 : index
    %134 = vector.load %arg3[%c7_68, %c0_69] : memref<16x128xf32, #tpu.memory_space<vmem>>, vector<1x128xf32>
    %c8 = arith.constant 8 : index
    %c0_70 = arith.constant 0 : index
    %c0_71 = arith.constant 0 : index
    %135 = vector.load %arg2[%c8, %c0_70, %c0_71] : memref<10x128x128xbf16, #tpu.memory_space<vmem>>, vector<1x128x128xbf16>
    %136 = vector.shape_cast %135 : vector<1x128x128xbf16> to vector<128x128xbf16>
    %137 = arith.truncf %133 : vector<128x128xf32> to vector<128x128xbf16>
    %cst_72 = arith.constant dense<0.000000e+00> : vector<128x128xf32>
    %138 = tpu.matmul %137, %136, %cst_72 {dimension_numbers = #tpu.dot_dimension_numbers<[1], [0], [0], [1], [0, 0, 1, 1], [], []>} : vector<128x128xbf16>, vector<128x128xbf16>, vector<128x128xf32> -> vector<128x128xf32>
    %139 = vector.broadcast %134 : vector<1x128xf32> to vector<128x128xf32>
    %140 = arith.addf %138, %139 : vector<128x128xf32>
    %cst_73 = arith.constant 1.000000e+02 : f32
    %141 = vector.broadcast %cst_73 : f32 to vector<128x128xf32>
    %142 = arith.mulf %141, %140 : vector<128x128xf32>
    %cst_74 = arith.constant 2.000000e+01 : f32
    %143 = vector.broadcast %cst_74 : f32 to vector<128x128xf32>
    %144 = arith.minimumf %142, %143 : vector<128x128xf32>
    %cst_75 = arith.constant 2.000000e+01 : f32
    %145 = vector.broadcast %cst_75 : f32 to vector<128x128xf32>
    %146 = arith.cmpf ogt, %142, %145 : vector<128x128xf32>
    %147 = math.exp %144 : vector<128x128xf32>
    %148 = math.log1p %147 : vector<128x128xf32>
    %cst_76 = arith.constant 1.000000e+02 : f32
    %149 = vector.broadcast %cst_76 : f32 to vector<128x128xf32>
    %150 = arith.divf %148, %149 : vector<128x128xf32>
    %151 = arith.select %146, %140, %150 : vector<128x128xi1>, vector<128x128xf32>
    %c8_77 = arith.constant 8 : index
    %c0_78 = arith.constant 0 : index
    %152 = vector.load %arg3[%c8_77, %c0_78] : memref<16x128xf32, #tpu.memory_space<vmem>>, vector<1x128xf32>
    %c9 = arith.constant 9 : index
    %c0_79 = arith.constant 0 : index
    %c0_80 = arith.constant 0 : index
    %153 = vector.load %arg2[%c9, %c0_79, %c0_80] : memref<10x128x128xbf16, #tpu.memory_space<vmem>>, vector<1x128x128xbf16>
    %154 = vector.shape_cast %153 : vector<1x128x128xbf16> to vector<128x128xbf16>
    %155 = arith.truncf %151 : vector<128x128xf32> to vector<128x128xbf16>
    %cst_81 = arith.constant dense<0.000000e+00> : vector<128x128xf32>
    %156 = tpu.matmul %155, %154, %cst_81 {dimension_numbers = #tpu.dot_dimension_numbers<[1], [0], [0], [1], [0, 0, 1, 1], [], []>} : vector<128x128xbf16>, vector<128x128xbf16>, vector<128x128xf32> -> vector<128x128xf32>
    %157 = vector.broadcast %152 : vector<1x128xf32> to vector<128x128xf32>
    %158 = arith.addf %156, %157 : vector<128x128xf32>
    %159 = math.tanh %158 : vector<128x128xf32>
    %160 = vector.extract_strided_slice %0 {offsets = [0, 64], sizes = [128, 64], strides = [1, 1]} : vector<128x128xf32> to vector<128x64xf32>
    %161 = math.absf %160 : vector<128x64xf32>
    %cst_82 = arith.constant dense<0xFF800000> : vector<128xf32>
    %162 = vector.multi_reduction <maximumf>, %161, %cst_82 [1] : vector<128x64xf32> to vector<128xf32>
    %163 = vector.shape_cast %162 : vector<128xf32> to vector<128x1xf32>
    %cst_83 = arith.constant 1.000000e+00 : f32
    %164 = vector.broadcast %cst_83 : f32 to vector<128x1xf32>
    %165 = arith.cmpf ole, %163, %164 : vector<128x1xf32>
    %166 = arith.extui %165 : vector<128x1xi1> to vector<128x1xi32>
    %167 = arith.sitofp %166 : vector<128x1xi32> to vector<128x1xf32>
    %168 = vector.broadcast %167 : vector<128x1xf32> to vector<128x128xf32>
    %169 = arith.mulf %168, %159 : vector<128x128xf32>
    %cst_84 = arith.constant 1.000000e+00 : f32
    %170 = vector.broadcast %cst_84 : f32 to vector<128x1xf32>
    %171 = arith.subf %170, %167 : vector<128x1xf32>
    %cst_85 = arith.constant 3.000000e-01 : f32
    %172 = vector.broadcast %cst_85 : f32 to vector<128x1xf32>
    %173 = arith.mulf %171, %172 : vector<128x1xf32>
    %174 = vector.broadcast %173 : vector<128x1xf32> to vector<128x128xf32>
    %175 = arith.addf %169, %174 : vector<128x128xf32>
    %c0_86 = arith.constant 0 : index
    %c0_87 = arith.constant 0 : index
    %176 = vector.load %arg4[%c0_86, %c0_87] : memref<128x128xf32, #tpu.memory_space<vmem>>, vector<128x128xf32>
    tpu.vector_store %arg4[%c0_86, %c0_87], %175 {strides = array<i32>} : memref<128x128xf32, #tpu.memory_space<vmem>>, vector<128x128xf32>,
    return
  }
  func.func @transform_0(%arg0: i32) -> (i32, i32) {
    %c0_i32 = arith.constant 0 : i32
    %c0_i32_0 = arith.constant 0 : i32
    return %arg0, %c0_i32 : i32, i32
  }
  func.func @transform_1(%arg0: i32) -> (i32, i32, i32) {
    %c0_i32 = arith.constant 0 : i32
    %c0_i32_0 = arith.constant 0 : i32
    %c0_i32_1 = arith.constant 0 : i32
    %c0_i32_2 = arith.constant 0 : i32
    return %c0_i32, %c0_i32_0, %c0_i32_1 : i32, i32, i32
  }
  func.func @transform_2(%arg0: i32) -> (i32, i32) {
    %c0_i32 = arith.constant 0 : i32
    %c0_i32_0 = arith.constant 0 : i32
    %c0_i32_1 = arith.constant 0 : i32
    return %c0_i32, %c0_i32_0 : i32, i32
  }
  func.func @transform_3(%arg0: i32) -> (i32, i32) {
    %c0_i32 = arith.constant 0 : i32
    %c0_i32_0 = arith.constant 0 : i32
    return %arg0, %c0_i32 : i32, i32
  }
}

</mosaic_0001>

<bundles_post_ra>
// kernel: tpu_custom_call.1
= control target key start
LH: loop header
LB: loop body
LE: loop exit
PB: predicated region body
PF: predicated region fallthrough
CT: control target
= control target key end

     0   :  { %8 = vsyncpa [#allocation3], 0  ;;  %s8207_s0 = inlined_call_operand.hbm [shape: f32[128,128], index: 0, kind: input, shape index: {}]   ;;  %s8208_s1 = inlined_call_operand.hbm [shape: bf16[10,128,128], index: 1, kind: input, shape index: {}]   ;;  %s8209_s2 = inlined_call_operand.hbm [shape: f32[16,128], index: 2, kind: input, shape index: {}]   ;;  %s8210_s3 = inlined_call_operand.hbm [shape: f32[128,128], index: 3, kind: output, shape index: {}]  }
   0x1   :  { %9 = vsyncpa [#allocation6], 0 }
   0x2   :  { %10 = vsyncpa [#allocation4], 0  ;;  %s5461_s12 = smov [#allocation5]   ;;  %s5367_s16 = scalar_lea.hbm %s8208_s1, 10240 }
   0x3   :  { %s28_s13 = sshll.u32 %s5461_s12, 4  ;;  %p5368_p0 = scmp.ne.s32.totalorder %s8208_s1, %s5367_s16  ;;  %s29_s13 = int_to_ptr.vmem [resolvable:$true] %s28_s13 }
   0x4   :  { %p5371_p1 = scmp.lt.u32.totalorder %s5367_s16, %s8208_s1 }
   0x6   :  { %p5373_p2 = pnand %p5371_p1, %p5368_p0 }
   0x8   :  { %5376 = shalt.err (!%p5373_p2)
}
   0x9   :  { %s5377_s21 = scalar_lea.vmem %s29_s13, 10240  ;;  %p5382_p4 = scmp.lt.s32.totalorder %s29_s13, %s29_s13 }
   0xa   :  { %p5378_p3 = scmp.ne.s32.totalorder %s29_s13, %s5377_s21  ;;  %p5383_p5 = scmp.lt.s32.totalorder %s5377_s21, %s5377_s21 }
   0xc   :  { %p5384_p6 = por %p5383_p5, %p5382_p4 }
   0xe   :  { %p5385_p7 = pnand %p5384_p6, %p5378_p3 }
  0x10   :  { %5388 = shalt.err (!%p5385_p7)
}
  0x11   :  { %s5462_s22 = smov 64   ;;  %s5463_s23 = smov 4  }
  0x12   :  { %34 = dma.hbm_to_vmem [thread:$0]  %s8208_s1, 10240, %s29_s13, [#allocation6], %s5462_s22, %s5462_s22, %s5463_s23  }
  0x13   :  { %s5464_s26 = smov [#allocation2]   ;;  %s5389_s30 = scalar_lea.hbm %s8207_s0, 2048 }
  0x14   :  { %s16_s27 = sshll.u32 %s5464_s26, 4  ;;  %p5390_p8 = scmp.ne.s32.totalorder %s8207_s0, %s5389_s30  ;;  %s17_s27 = int_to_ptr.vmem [resolvable:$true] %s16_s27 }
  0x15   :  { %p5393_p9 = scmp.lt.u32.totalorder %s5389_s30, %s8207_s0 }
  0x17   :  { %p5395_p10 = pnand %p5393_p9, %p5390_p8 }
  0x19   :  { %5398 = shalt.err (!%p5395_p10)
}
  0x1a   :  { %s5399_s8 = scalar_lea.vmem %s17_s27, 2048  ;;  %p5404_p12 = scmp.lt.s32.totalorder %s17_s27, %s17_s27 }
  0x1b   :  { %p5400_p11 = scmp.ne.s32.totalorder %s17_s27, %s5399_s8  ;;  %p5405_p13 = scmp.lt.s32.totalorder %s5399_s8, %s5399_s8 }
  0x1d   :  { %p5406_p0 = por %p5405_p13, %p5404_p12 }
  0x1f   :  { %p5407_p1 = pnand %p5406_p0, %p5400_p11 }
  0x21   :  { %5410 = shalt.err (!%p5407_p1)
}
  0x22   :  { %s5465_s1 = smov 128   ;;  %s5466_s9 = smov 8  }
  0x23   :  { %22 = dma.hbm_to_vmem [thread:$0]  %s8207_s0, 2048, %s17_s27, [#allocation3], %s5465_s1, %s5465_s1, %s5466_s9  }
  0x24   :  { %s5467_s12 = smov [#allocation7]   ;;  %s5411_s16 = scalar_lea.hbm %s8209_s2, 256 }
  0x25   :  { %s40_s13 = sshll.u32 %s5467_s12, 4  ;;  %p5412_p2 = scmp.ne.s32.totalorder %s8209_s2, %s5411_s16  ;;  %s41_s13 = int_to_ptr.vmem [resolvable:$true] %s40_s13 }
  0x26   :  { %p5415_p3 = scmp.lt.u32.totalorder %s5411_s16, %s8209_s2 }
  0x28   :  { %p5417_p4 = pnand %p5415_p3, %p5412_p2 }
  0x2a   :  { %5420 = shalt.err (!%p5417_p4)
}
  0x2b   :  { %s5421_s21 = scalar_lea.vmem %s41_s13, 256  ;;  %p5426_p6 = scmp.lt.s32.totalorder %s41_s13, %s41_s13 }
  0x2c   :  { %p5422_p5 = scmp.ne.s32.totalorder %s41_s13, %s5421_s21  ;;  %p5427_p7 = scmp.lt.s32.totalorder %s5421_s21, %s5421_s21 }
  0x2e   :  { %p5428_p8 = por %p5427_p7, %p5426_p6 }
  0x30   :  { %p5429_p9 = pnand %p5428_p8, %p5422_p5 }
  0x32   :  { %5432 = shalt.err (!%p5429_p9)
}
  0x33   :  { %46 = dma.hbm_to_vmem [thread:$0]  %s8209_s2, 256, %s41_s13, [#allocation6], %s5465_s1, %s5465_s1, %s5466_s9  }
  0x34   :  { %5455 = dma.done.wait [#allocation3], 2048  }
  0x35   :  { %5456 = vsyncadd [#allocation3], 4294965248 }
  0x36   :  { %5457 = dma.done.wait [#allocation6], 10496  }
  0x37   :  { %5458 = vsyncadd [#allocation6], 4294956800  ;;  %v4727_v0 = vld [vmem:[#allocation5] sm:$0xff]   ;;  %v4728_v1 = vld [vmem:[#allocation5 + $0x8] sm:$0xff]   ;;  %s5469_s2 = smov [#allocation8]  }
  0x38   :  { %4382 = vmatprep.subr.bf16.mxu0 %v4727_v0  ;;  %v4729_v2 = vld [vmem:[#allocation5 + $0x10] sm:$0xff]   ;;  %v4730_v3 = vld [vmem:[#allocation5 + $0x18] sm:$0xff]   ;;  %v57_v4 = vld [vmem:[#allocation2] sm:$0xff]  ;;  %s4104_s23 = sshll.u32 %s5469_s2, 4  ;;  %s4105_s23 = int_to_ptr.vmem [resolvable:$true] %s4104_s23 }
  0x39   :  { %4383 = vmatpush3.bf16.msra.mxu0 %v4727_v0  ;;  %v58_v5 = vld [vmem:[#allocation2 + $0x8] sm:$0xff]  ;;  %v4731_v7 = vld [vmem:[#allocation5 + $0x20] sm:$0xff]   ;;  %v4733_v9 = vld [vmem:[#allocation5 + $0x30] sm:$0xff]   ;;  %s5433_s24 = scalar_lea.vmem %s4105_s23, 2048  ;;  %p5438_p11 = scmp.lt.s32.totalorder %s4105_s23, %s4105_s23 }
  0x3a   :  { %4384 = vmatprep.subr.bf16.mxu0 %v4728_v1  ;;  %v5532_v6 = vpack.c.bf16 %v58_v5, %v57_v4  ;;  %v4732_v8 = vld [vmem:[#allocation5 + $0x28] sm:$0xff]   ;;  %v4734_v10 = vld [vmem:[#allocation5 + $0x38] sm:$0xff]   ;;  %v59_v11 = vld [vmem:[#allocation2 + $0x10] sm:$0xff]  ;;  %p5434_p10 = scmp.ne.s32.totalorder %s4105_s23, %s5433_s24  ;;  %p5439_p12 = scmp.lt.s32.totalorder %s5433_s24, %s5433_s24 }
  0x3b   :  { %v60_v12 = vld [vmem:[#allocation2 + $0x18] sm:$0xff]  ;;  %v61_v13 = vld [vmem:[#allocation2 + $0x20] sm:$0xff]  ;;  %v62_v14 = vld [vmem:[#allocation2 + $0x28] sm:$0xff] }
  0x3c   :  { %8220 = vst [vmem:[#allocation12_spill] sm:$0xff] %v5532_v6  ;;  %4398 = vmatprep.mubr.bf16.mxu0 %v5532_v6  ;;  %v5535_v15 = vpack.c.bf16 %v60_v12, %v59_v11  ;;  %v5537_v16 = vpack.c.bf16 %v62_v14, %v61_v13  ;;  %v63_v17 = vld [vmem:[#allocation2 + $0x30] sm:$0xff]  ;;  %v64_v18 = vld [vmem:[#allocation2 + $0x38] sm:$0xff]  ;;  %v65_v19 = vld [vmem:[#allocation2 + $0x40] sm:$0xff]  ;;  %p5440_p13 = por %p5439_p12, %p5438_p11 }
  0x3d   :  { %4385 = vmatpush3.bf16.msra.mxu0 %v4728_v1  ;;  %v66_v20 = vld [vmem:[#allocation2 + $0x48] sm:$0xff]  ;;  %v5541_v21 = vpack.c.bf16 %v64_v18, %v63_v17  ;;  %v67_v23 = vld [vmem:[#allocation2 + $0x50] sm:$0xff]  ;;  %v68_v24 = vld [vmem:[#allocation2 + $0x58] sm:$0xff] }
  0x3e   :  { %4386 = vmatprep.subr.bf16.mxu0 %v4729_v2  ;;  %8221 = vst [vmem:[#allocation13_spill] sm:$0xff] %v5535_v15  ;;  %8222 = vst [vmem:[#allocation14_spill] sm:$0xff] %v5537_v16  ;;  %v5543_v22 = vpack.c.bf16 %v66_v20, %v65_v19  ;;  %v69_v25 = vld [vmem:[#allocation2 + $0x60] sm:$0xff]  ;;  %v70_v26 = vld [vmem:[#allocation2 + $0x68] sm:$0xff]  ;;  %v5547_v27 = vpack.c.bf16 %v68_v24, %v67_v23  ;;  %p5441_p0 = pnand %p5440_p13, %p5434_p10 }
  0x3f   :  { %8223 = vst [vmem:[#allocation15_spill] sm:$0xff] %v5541_v21  ;;  %v5549_v28 = vpack.c.bf16 %v70_v26, %v69_v25  ;;  %v71_v29 = vld [vmem:[#allocation2 + $0x70] sm:$0xff]  ;;  %v72_v30 = vld [vmem:[#allocation2 + $0x78] sm:$0xff]  ;;  %v4735_v32 = vld [vmem:[#allocation5 + $0x40] sm:$0xff]  }
  0x40   :  { %8224 = vst [vmem:[#allocation16_spill] sm:$0xff] %v5543_v22  ;;  %8225 = vst [vmem:[#allocation17_spill] sm:$0xff] %v5547_v27  ;;  %v5553_v31 = vpack.c.bf16 %v72_v30, %v71_v29  ;;  %4414 = vmatprep.subr.bf16.mxu1 %v4735_v32  ;;  %v4736_v33 = vld [vmem:[#allocation5 + $0x48] sm:$0xff]   ;;  %v4737_v34 = vld [vmem:[#allocation5 + $0x50] sm:$0xff]  }
  0x41   :  { %4387 = vmatpush3.bf16.msra.mxu0 %v4729_v2  ;;  %8226 = vst [vmem:[#allocation18_spill] sm:$0xff] %v5549_v28  ;;  %4415 = vmatpush3.bf16.msra.mxu1 %v4735_v32  ;;  %v4738_v35 = vld [vmem:[#allocation5 + $0x58] sm:$0xff]   ;;  %v4739_v36 = vld [vmem:[#allocation5 + $0x60] sm:$0xff]   ;;  %v4740_v37 = vld [vmem:[#allocation5 + $0x68] sm:$0xff]  }
  0x42   :  { %4388 = vmatprep.subr.bf16.mxu0 %v4730_v3  ;;  %8227 = vst [vmem:[#allocation19_spill] sm:$0xff] %v5553_v31  ;;  %4416 = vmatprep.subr.bf16.mxu1 %v4736_v33  ;;  %v4741_v38 = vld [vmem:[#allocation5 + $0x70] sm:$0xff]   ;;  %v4742_v39 = vld [vmem:[#allocation5 + $0x78] sm:$0xff]   ;;  %v5556_v40 = vld [vmem:[#allocation7] ss:$0 sm:$0xff] }
  0x45   :  { %4389 = vmatpush3.bf16.msra.mxu0 %v4730_v3  ;;  %4417 = vmatpush3.bf16.msra.mxu1 %v4736_v33 }
  0x46   :  { %4390 = vmatprep.subr.bf16.mxu0 %v4731_v7  ;;  %4418 = vmatprep.subr.bf16.mxu1 %v4737_v34 }
  0x49   :  { %4391 = vmatpush3.bf16.msra.mxu0 %v4731_v7  ;;  %4419 = vmatpush3.bf16.msra.mxu1 %v4737_v34 }
  0x4a   :  { %4392 = vmatprep.subr.bf16.mxu0 %v4732_v8  ;;  %4420 = vmatprep.subr.bf16.mxu1 %v4738_v35 }
  0x4d   :  { %4393 = vmatpush3.bf16.msra.mxu0 %v4732_v8  ;;  %4421 = vmatpush3.bf16.msra.mxu1 %v4738_v35 }
  0x4e   :  { %4394 = vmatprep.subr.bf16.mxu0 %v4733_v9  ;;  %4422 = vmatprep.subr.bf16.mxu1 %v4739_v36 }
  0x51   :  { %4395 = vmatpush3.bf16.msra.mxu0 %v4733_v9  ;;  %4423 = vmatpush3.bf16.msra.mxu1 %v4739_v36 }
  0x52   :  { %4396 = vmatprep.subr.bf16.mxu0 %v4734_v10  ;;  %4424 = vmatprep.subr.bf16.mxu1 %v4740_v37 }
  0x55   :  { %4397 = vmatpush3.bf16.msra.mxu0 %v4734_v10  ;;  %4425 = vmatpush3.bf16.msra.mxu1 %v4740_v37 }
  0x56   :  { %4426 = vmatprep.subr.bf16.mxu1 %v4741_v38 }
  0x58   :  { %4399 = vmatmul.mubr.bf16.vlgmr.msra.gmra.mrb[0].mxu0 %v5535_v15 }
  0x59   :  { %4402 = vmatprep.mubr.bf16.mxu0 %v5537_v16  ;;  %4427 = vmatpush3.bf16.msra.mxu1 %v4741_v38 }
  0x5a   :  { %4428 = vmatprep.subr.bf16.mxu1 %v4742_v39 }
  0x5d   :  { %4429 = vmatpush3.bf16.msra.mxu1 %v4742_v39 }
  0x60   :  { %4403 = vmatmul.mubr.bf16.gmra.mrb[4].mxu0 %v5541_v21 }
  0x61   :  { %4406 = vmatprep.mubr.bf16.mxu0 %v5543_v22 }
  0x68   :  { %4407 = vmatmul.mubr.bf16.gmra.mrb[8].mxu0 %v5547_v27 }
  0x69   :  { %4410 = vmatprep.mubr.bf16.mxu0 %v5549_v28 }
  0x70   :  { %4411 = vmatmul.mubr.bf16.gmra.mrb[12].mxu0 %v5553_v31 }
 0x12b   :  { %v4400_v41 = vpop.f32.mrb[0].mxu0 }
 0x12c   :  { %v184_v42 = vpop.f32.mrb[1].mxu0  ;;  %v5562_v46 = vadd.f32 %v4400_v41, %v5556_v40 }
 0x12d   :  { %v5559_v43 = vadd.f32 %v5556_v40, %v184_v42  ;;  %v4401_v44 = vpop.f32.mrb[2].mxu0 }
 0x12e   :  { %v187_v45 = vpop.f32.mrb[3].mxu0  ;;  %v5572_v50 = vadd.f32 %v4401_v44, %v5556_v40  ;;  %v5578_v52 = vmul.f32 100.0, %v5562_v46 }
 0x12f   :  { %v5565_v47 = vmul.f32 100.0, %v5559_v43  ;;  %v5568_v48 = vadd.f32 %v5556_v40, %v187_v45 }
 0x130   :  { %v5585_v58 = vmul.f32 100.0, %v5572_v50  ;;  %v265_v0 = vmin.f32 %v5578_v52, 20.0  ;;  %vm281_vm6 = vcmp.gt.f32.partialorder %v5578_v52, 20.0 }
 0x131   :  { %v263_v49 = vmin.f32 %v5565_v47, 20.0  ;;  %v5575_v51 = vmul.f32 100.0, %v5568_v48  ;;  %vm279_vm0 = vcmp.gt.f32.partialorder %v5565_v47, 20.0 }
 0x132   :  { %v266_v4 = vmin.f32 %v5585_v58, 20.0  ;;  %v299_v8 = vmul.f32 1.442695, %v265_v0  ;;  %vm282_vm7 = vcmp.gt.f32.partialorder %v5585_v58, 20.0 }
 0x133   :  { %v295_v53 = vmul.f32 1.442695, %v263_v49  ;;  %v264_v54 = vmin.f32 %v5575_v51, 20.0  ;;  %v4404_v55 = vpop.f32.mrb[4].mxu0  ;;  %vm280_vm2 = vcmp.gt.f32.partialorder %v5575_v51, 20.0 }
 0x134   :  { %v5582_v56 = vadd.f32 %v4404_v55, %v5556_v40  ;;  %v200_v57 = vpop.f32.mrb[5].mxu0  ;;  %v301_v14 = vmul.f32 1.442695, %v266_v4 }
 0x135   :  { %4807 = vpow2.f32 %v295_v53  ;;  %v5588_v59 = vadd.f32 %v5556_v40, %v200_v57  ;;  %v4405_v60 = vpop.f32.mrb[6].mxu0  ;;  %v297_v61 = vmul.f32 1.442695, %v264_v54 }
 0x136   :  { %v5591_v62 = vadd.f32 %v4405_v60, %v5556_v40  ;;  %v203_v63 = vpop.f32.mrb[7].mxu0  ;;  %v5595_v1 = vmul.f32 100.0, %v5582_v56 }
 0x137   :  { %v5598_v2 = vadd.f32 %v5556_v40, %v203_v63  ;;  %v5601_v3 = vmul.f32 100.0, %v5588_v59  ;;  %4809 = vpow2.f32 %v297_v61 }
 0x138   :  { %v5608_v7 = vmul.f32 100.0, %v5591_v62  ;;  %v269_v9 = vmin.f32 %v5595_v1, 20.0  ;;  %4811 = vpow2.f32 %v299_v8  ;;  %vm285_vm14 = vcmp.gt.f32.partialorder %v5595_v1, 20.0 }
 0x139   :  { %v5605_v5 = vmul.f32 100.0, %v5598_v2  ;;  %v267_v11 = vmin.f32 %v5601_v3, 20.0  ;;  %4813 = vpow2.f32 %v301_v14  ;;  %vm283_vm10 = vcmp.gt.f32.partialorder %v5601_v3, 20.0 }
 0x13a   :  { %v270_v20 = vmin.f32 %v5608_v7, 20.0  ;;  %v307_v29 = vmul.f32 1.442695, %v269_v9  ;;  %vm286_vm15 = vcmp.gt.f32.partialorder %v5608_v7, 20.0 }
 0x13b   :  { %v4408_v10 = vpop.f32.mrb[8].mxu0  ;;  %v268_v17 = vmin.f32 %v5605_v5, 20.0  ;;  %v303_v33 = vmul.f32 1.442695, %v267_v11  ;;  %vm284_vm11 = vcmp.gt.f32.partialorder %v5605_v5, 20.0 }
 0x13c   :  { %v5613_v12 = vadd.f32 %v4408_v10, %v5556_v40  ;;  %v216_v13 = vpop.f32.mrb[9].mxu0  ;;  %v309_v39 = vmul.f32 1.442695, %v270_v20 }
 0x13d   :  { %v5617_v18 = vadd.f32 %v5556_v40, %v216_v13  ;;  %v4409_v19 = vpop.f32.mrb[10].mxu0  ;;  %v305_v37 = vmul.f32 1.442695, %v268_v17 }
 0x13e   :  { %v5621_v23 = vmul.f32 100.0, %v5613_v12  ;;  %v5624_v24 = vadd.f32 %v4409_v19, %v5556_v40  ;;  %v219_v25 = vpop.f32.mrb[11].mxu0 }
 0x13f   :  { %v5626_v26 = vpop.eup %4807  ;;  %v5629_v30 = vmul.f32 100.0, %v5617_v18  ;;  %v5632_v32 = vadd.f32 %v5556_v40, %v219_v25 }
 0x140   :  { %v273_v34 = vmin.f32 %v5621_v23, 20.0  ;;  %v5636_v35 = vmul.f32 100.0, %v5624_v24  ;;  %v327_v36 = vadd.f32 1.0, %v5626_v26  ;;  %v330_v61 = vmul.f32 -0.5, %v5626_v26 }
 0x141   :  { %v5640_v38 = vmul.f32 100.0, %v5632_v32  ;;  %v271_v41 = vmin.f32 %v5629_v30, 20.0  ;;  %v5644_v45 = vpop.eup %4809 }
 0x142   :  { %4815 = vlog2.f32 %v327_v36  ;;  %v274_v42 = vmin.f32 %v5636_v35, 20.0  ;;  %v315_v49 = vmul.f32 1.442695, %v273_v34  ;;  %v336_v13 = vadd.f32 1.0, %v5644_v45  ;;  %v4812_v20 = vpop.eup %4811 }
 0x143   :  { %4817 = vpow2.f32 %v307_v29  ;;  %v4412_v44 = vpop.f32.mrb[12].mxu0  ;;  %v272_v53 = vmin.f32 %v5640_v38, 20.0  ;;  %v311_v63 = vmul.f32 1.442695, %v271_v41  ;;  %v333_v36 = vand.u32 2147483647, %v5626_v26 }
 0x144   :  { %4819 = vpow2.f32 %v303_v33  ;;  %v5648_v54 = vadd.f32 %v4412_v44, %v5556_v40  ;;  %v232_v55 = vpop.f32.mrb[13].mxu0  ;;  %v317_v9 = vmul.f32 1.442695, %v274_v42  ;;  %v331_v33 = vadd.f32 1.0, %v330_v61 }
 0x145   :  { %4821 = vpow2.f32 %v305_v37  ;;  %v5651_v57 = vadd.f32 %v5556_v40, %v232_v55  ;;  %v4413_v60 = vpop.f32.mrb[14].mxu0  ;;  %v313_v14 = vmul.f32 1.442695, %v272_v53  ;;  %v5677_v37 = vpop.eup %4813  ;;  %v339_v42 = vmul.f32 -0.5, %v5644_v45 }
 0x146   :  { %4823 = vpow2.f32 %v309_v39  ;;  %v5655_v0 = vmul.f32 100.0, %v5648_v54  ;;  %v5658_v4 = vadd.f32 %v4413_v60, %v5556_v40  ;;  %v235_v8 = vpop.f32.mrb[15].mxu0  ;;  %v345_v53 = vadd.f32 1.0, %v4812_v20 }
 0x147   :  { %v5661_v10 = vmul.f32 100.0, %v5651_v57  ;;  %v5664_v11 = vadd.f32 %v5556_v40, %v235_v8  ;;  %4825 = vpow2.f32 %v315_v49  ;;  %v348_v61 = vmul.f32 -0.5, %v4812_v20 }
 0x148   :  { %8228 = vst [vmem:[#allocation20_spill] sm:$0xff] %v5658_v4  ;;  %v277_v17 = vmin.f32 %v5655_v0, 20.0  ;;  %v5669_v19 = vmul.f32 100.0, %v5658_v4  ;;  %4827 = vlog2.f32 %v336_v13  ;;  %v354_v13 = vadd.f32 1.0, %v5677_v37 }
 0x149   :  { %v275_v25 = vmin.f32 %v5661_v10, 20.0  ;;  %v5673_v29 = vmul.f32 100.0, %v5664_v11  ;;  %4829 = vpow2.f32 %v311_v63  ;;  %vm5690_vm1 = vcmp.lt.f32.partialorder %v333_v36, 0.0004427343 }
 0x14a   :  { %v323_v40 = vmul.f32 1.442695, %v277_v17  ;;  %v278_v34 = vmin.f32 %v5669_v19, 20.0  ;;  %4831 = vpow2.f32 %v317_v9  ;;  %v332_v9 = vmul.f32 %v5626_v26, %v331_v33 }
 0x14b   :  { %v319_v39 = vmul.f32 1.442695, %v275_v25  ;;  %v276_v41 = vmin.f32 %v5673_v29, 20.0  ;;  %4833 = vpow2.f32 %v313_v14  ;;  %v340_v25 = vadd.f32 1.0, %v339_v42 }
 0x14c   :  { %v4816_v44 = vpop.eup %4815  ;;  %v325_v49 = vmul.f32 1.442695, %v278_v34  ;;  %4835 = vpow2.f32 %v323_v40  ;;  %v342_v40 = vand.u32 2147483647, %v5644_v45  ;;  %v357_v26 = vmul.f32 -0.5, %v5677_v37 }
 0x14d   :  { %v5681_v55 = vpop.eup %4817  ;;  %v329_v60 = vmul.f32 0.6931472, %v4816_v44  ;;  %4837 = vpow2.f32 %v319_v39  ;;  %v321_v8 = vmul.f32 1.442695, %v276_v41  ;;  %v351_v41 = vand.u32 2147483647, %v4812_v20 }
 0x14e   :  { %v5683_v63 = vpop.eup %4819  ;;  %4839 = vpow2.f32 %v325_v49  ;;  %v349_v33 = vadd.f32 1.0, %v348_v61  ;;  %v360_v44 = vand.u32 2147483647, %v5677_v37  ;;  %vm5708_vm3 = vcmp.lt.f32.partialorder %v342_v40, 0.0004427343 }
 0x14f   :  { %v5688_v17 = vpop.eup %4821  ;;  %v335_v39 = vsel %vm5690_vm1, %v332_v9, %v329_v60  ;;  %4841 = vlog2.f32 %v345_v53  ;;  %v363_v36 = vadd.f32 1.0, %v5683_v63  ;;  %v366_v42 = vmul.f32 -0.5, %v5683_v63 }
 0x150   :  { %v5695_v34 = vpop.eup %4823  ;;  %4843 = vlog2.f32 %v354_v13  ;;  %v372_v14 = vadd.f32 1.0, %v5688_v17  ;;  %v341_v53 = vmul.f32 %v5644_v45, %v340_v25  ;;  %v472_v61 = vmul.f32 0.01, %v335_v39 }
 0x151   :  { %v5702_v49 = vpop.eup %4825  ;;  %4845 = vpow2.f32 %v321_v8  ;;  %vm5714_vm4 = vcmp.lt.f32.partialorder %v351_v41, 0.0004427343  ;;  %v358_v28 = vadd.f32 1.0, %v357_v26  ;;  %v375_v27 = vmul.f32 -0.5, %v5688_v17 }
 0x152   :  { %v4828_v60 = vpop.eup %4827  ;;  %4847 = vlog2.f32 %v363_v36  ;;  %v350_v45 = vmul.f32 %v4812_v20, %v349_v33  ;;  %vm5721_vm5 = vcmp.lt.f32.partialorder %v360_v44, 0.0004427343  ;;  %v369_v40 = vand.u32 2147483647, %v5683_v63 }
 0x153   :  { %v5712_v13 = vpop.eup %4829  ;;  %v338_v31 = vmul.f32 0.6931472, %v4828_v60  ;;  %4849 = vlog2.f32 %v372_v14  ;;  %v381_v39 = vadd.f32 1.0, %v5681_v55  ;;  %v367_v26 = vadd.f32 1.0, %v366_v42 }
 0x154   :  { %v5719_v22 = vpop.eup %4831  ;;  %v378_v14 = vand.u32 2147483647, %v5688_v17  ;;  %v390_v60 = vadd.f32 1.0, %v5695_v34  ;;  %v488_v33 = vsel %vm279_vm0, %v5559_v43, %v472_v61  ;;  %v384_v44 = vmul.f32 -0.5, %v5681_v55 }
 0x155   :  { %v5727_v36 = vpop.eup %4833  ;;  %v344_v41 = vsel %vm5708_vm3, %v341_v53, %v338_v31  ;;  %4851 = vlog2.f32 %v381_v39  ;;  %v359_v31 = vmul.f32 %v5677_v37, %v358_v28  ;;  %v376_v42 = vadd.f32 1.0, %v375_v27 }
 0x156   :  { %v5733_v21 = vpop.eup %4835  ;;  %v473_v20 = vmul.f32 0.01, %v344_v41  ;;  %4853 = vlog2.f32 %v390_v60  ;;  %v393_v53 = vmul.f32 -0.5, %v5695_v34  ;;  %v387_v47 = vand.u32 2147483647, %v5681_v55 }
 0x157   :  { %v5739_v16 = vpop.eup %4837  ;;  %v396_v61 = vand.u32 2147483647, %v5695_v34  ;;  %v399_v39 = vadd.f32 1.0, %v5712_v13  ;;  %v368_v28 = vmul.f32 %v5683_v63, %v367_v26  ;;  %vm5754_vm8 = vcmp.lt.f32.partialorder %v369_v40, 0.0004427343 }
 0x158   :  { %v5745_v9 = vpop.eup %4839  ;;  %v489_v43 = vsel %vm280_vm2, %v5568_v48, %v473_v20  ;;  %vm5758_vm9 = vcmp.lt.f32.partialorder %v378_v14, 0.0004427343  ;;  %v385_v60 = vadd.f32 1.0, %v384_v44  ;;  %v408_v20 = vadd.f32 1.0, %v5727_v36 }
 0x159   :  { %v4842_v41 = vpop.eup %4841  ;;  %v522_v15 = vpack.c.bf16 %v489_v43, %v488_v33  ;;  %4855 = vlog2.f32 %v399_v39  ;;  %v377_v40 = vmul.f32 %v5688_v17, %v376_v42  ;;  %v394_v26 = vadd.f32 1.0, %v393_v53 }
 0x15a   :  { %v4844_v51 = vpop.eup %4843  ;;  %v347_v48 = vmul.f32 0.6931472, %v4842_v41  ;;  %v402_v14 = vmul.f32 -0.5, %v5712_v13  ;;  %vm5771_vm12 = vcmp.lt.f32.partialorder %v387_v47, 0.0004427343  ;;  %4857 = vlog2.f32 %v408_v20 }
 0x15b   :  { %v5765_v33 = vpop.eup %4845  ;;  %4430 = vmatprep.mubr.bf16.mxu1 %v522_v15  ;;  %v356_v63 = vmul.f32 0.6931472, %v4844_v51  ;;  %vm5775_vm13 = vcmp.lt.f32.partialorder %v396_v61, 0.0004427343  ;;  %v405_v39 = vand.u32 2147483647, %v5712_v13  ;;  %v386_v47 = vmul.f32 %v5681_v55, %v385_v60 }
 0x15c   :  { %v4848_v43 = vpop.eup %4847  ;;  %v353_v6 = vsel %vm5714_vm4, %v350_v45, %v347_v48  ;;  %v411_v61 = vmul.f32 -0.5, %v5727_v36  ;;  %v395_v25 = vmul.f32 %v5695_v34, %v394_v26  ;;  %vm287_vm2 = vcmp.gt.f32.partialorder %v5629_v30, 20.0 }
 0x15d   :  { %v4850_v15 = vpop.eup %4849  ;;  %v362_v17 = vsel %vm5721_vm5, %v359_v31, %v356_v63  ;;  %v474_v42 = vmul.f32 0.01, %v353_v6  ;;  %v365_v53 = vmul.f32 0.6931472, %v4848_v43  ;;  %v403_v31 = vadd.f32 1.0, %v402_v14 }
 0x15e   :  { %v475_v8 = vmul.f32 0.01, %v362_v17  ;;  %v374_v45 = vmul.f32 0.6931472, %v4850_v15  ;;  %v417_v6 = vadd.f32 1.0, %v5702_v49  ;;  %v412_v52 = vadd.f32 1.0, %v411_v61 }
 0x15f   :  { %v371_v41 = vsel %vm5754_vm8, %v368_v28, %v365_v53  ;;  %v4852_v51 = vpop.eup %4851  ;;  %v490_v48 = vsel %vm281_vm6, %v5562_v46, %v474_v42  ;;  %vm5798_vm0 = vcmp.lt.f32.partialorder %v405_v39, 0.0004427343  ;;  %v420_v46 = vmul.f32 -0.5, %v5702_v49 }
 0x160   :  { %v491_v20 = vsel %vm282_vm7, %v5572_v50, %v475_v8  ;;  %v380_v55 = vsel %vm5758_vm9, %v377_v40, %v374_v45  ;;  %v476_v60 = vmul.f32 0.01, %v371_v41  ;;  %v4854_v27 = vpop.eup %4853  ;;  %v383_v34 = vmul.f32 0.6931472, %v4852_v51 }
 0x161   :  { %v523_v28 = vpack.c.bf16 %v491_v20, %v490_v48  ;;  %v477_v63 = vmul.f32 0.01, %v380_v55  ;;  %4859 = vlog2.f32 %v417_v6  ;;  %v392_v26 = vmul.f32 0.6931472, %v4854_v27 }
 0x162   :  { %v492_v50 = vsel %vm283_vm10, %v5588_v59, %v476_v60  ;;  %v389_v37 = vsel %vm5771_vm12, %v386_v47, %v383_v34  ;;  %v426_v40 = vadd.f32 1.0, %v5719_v22  ;;  %v414_v53 = vand.u32 2147483647, %v5727_v36 }
 0x163   :  { %4431 = vmatmul.mubr.bf16.vlgmr.msra.gmra.mrb[0].mxu1 %v523_v28  ;;  %v493_v58 = vsel %vm284_vm11, %v5598_v2, %v477_v63  ;;  %v4856_v43 = vpop.eup %4855  ;;  %v398_v17 = vsel %vm5775_vm13, %v395_v25, %v392_v26  ;;  %v478_v42 = vmul.f32 0.01, %v389_v37  ;;  %v404_v59 = vmul.f32 %v5712_v13, %v403_v31 }
 0x164   :  { %v524_v15 = vpack.c.bf16 %v493_v58, %v492_v50  ;;  %v479_v39 = vmul.f32 0.01, %v398_v17  ;;  %v401_v3 = vmul.f32 0.6931472, %v4856_v43  ;;  %4861 = vlog2.f32 %v426_v40  ;;  %v4858_v5 = vpop.eup %4857 }
 0x165   :  { %v413_v2 = vmul.f32 %v5727_v36, %v412_v52  ;;  %v421_v4 = vadd.f32 1.0, %v420_v46  ;;  %v429_v8 = vmul.f32 -0.5, %v5719_v22  ;;  %v435_v45 = vadd.f32 1.0, %v5739_v16 }
 0x166   :  { %4434 = vmatprep.mubr.bf16.mxu1 %v524_v15  ;;  %v494_v44 = vsel %vm285_vm14, %v5582_v56, %v478_v42  ;;  %v495_v47 = vsel %vm286_vm15, %v5591_v62, %v479_v39  ;;  %v407_v13 = vsel %vm5798_vm0, %v404_v59, %v401_v3  ;;  %v410_v61 = vmul.f32 0.6931472, %v4858_v5 }
 0x167   :  { %v525_v41 = vpack.c.bf16 %v495_v47, %v494_v44  ;;  %vm415_vm1 = vcmp.lt.f32.partialorder %v414_v53, 0.0004427343  ;;  %v480_v36 = vmul.f32 0.01, %v407_v13  ;;  %v423_v31 = vand.u32 2147483647, %v5702_v49 }
 0x168   :  { %v416_v25 = vsel %vm415_vm1, %v413_v2, %v410_v61  ;;  %4863 = vlog2.f32 %v435_v45  ;;  %vm288_vm3 = vcmp.gt.f32.partialorder %v5640_v38, 20.0  ;;  %v444_v1 = vadd.f32 1.0, %v5765_v33 }
 0x169   :  { %v481_v56 = vmul.f32 0.01, %v416_v25  ;;  %v422_v62 = vmul.f32 %v5702_v49, %v421_v4  ;;  %v430_v6 = vadd.f32 1.0, %v429_v8  ;;  %v438_v51 = vmul.f32 -0.5, %v5739_v16 }
 0x16a   :  { %v453_v48 = vadd.f32 1.0, %v5733_v21  ;;  %v496_v20 = vsel %vm287_vm2, %v5617_v18, %v480_v36  ;;  %4865 = vlog2.f32 %v444_v1  ;;  %vm424_vm4 = vcmp.lt.f32.partialorder %v423_v31, 0.0004427343 }
 0x16b   :  { %v4860_v7 = vpop.eup %4859  ;;  %4435 = vmatmul.mubr.bf16.gmra.mrb[4].mxu1 %v525_v41  ;;  %v497_v55 = vsel %vm288_vm3, %v5632_v32, %v481_v56  ;;  %v432_v38 = vand.u32 2147483647, %v5719_v22  ;;  %v462_v28 = vadd.f32 1.0, %v5745_v9  ;;  %v431_v63 = vmul.f32 %v5719_v22, %v430_v6  ;;  %v4750_v6 = vld [vmem:[#allocation5 + $0xb8] sm:$0xff]  }
 0x16c   :  { %v419_v60 = vmul.f32 0.6931472, %v4860_v7  ;;  %v526_v30 = vpack.c.bf16 %v497_v55, %v496_v20  ;;  %4867 = vlog2.f32 %v453_v48  ;;  %v447_v34 = vmul.f32 -0.5, %v5765_v33 }
 0x16d   :  { %v439_v18 = vadd.f32 1.0, %v438_v51  ;;  %v456_v32 = vmul.f32 -0.5, %v5733_v21  ;;  %4869 = vlog2.f32 %v462_v28  ;;  %vm433_vm5 = vcmp.lt.f32.partialorder %v432_v38, 0.0004427343  ;;  %v5862_v51 = vld [vmem:[#allocation7 + $0x1] ss:$0 sm:$0xff] }
 0x16e   :  { %v425_v27 = vsel %vm424_vm4, %v422_v62, %v419_v60  ;;  %v4862_v49 = vpop.eup %4861  ;;  %4438 = vmatprep.mubr.bf16.mxu1 %v526_v30  ;;  %v441_v52 = vand.u32 2147483647, %v5739_v16  ;;  %vm289_vm6 = vcmp.gt.f32.partialorder %v5621_v23, 20.0  ;;  %v448_v37 = vadd.f32 1.0, %v447_v34  ;;  %v4746_v62 = vld [vmem:[#allocation5 + $0x98] sm:$0xff]  }
 0x16f   :  { %v428_v26 = vmul.f32 0.6931472, %v4862_v49  ;;  %v482_v14 = vmul.f32 0.01, %v425_v27  ;;  %v450_v40 = vand.u32 2147483647, %v5765_v33  ;;  %v440_v15 = vmul.f32 %v5739_v16, %v439_v18 }
 0x170   :  { %v465_v22 = vmul.f32 -0.5, %v5745_v9  ;;  %vm290_vm7 = vcmp.gt.f32.partialorder %v5636_v35, 20.0  ;;  %v457_v17 = vadd.f32 1.0, %v456_v32  ;;  %vm442_vm8 = vcmp.lt.f32.partialorder %v441_v52, 0.0004427343 }
 0x171   :  { %v434_v46 = vsel %vm433_vm5, %v431_v63, %v428_v26  ;;  %v498_v42 = vsel %vm289_vm6, %v5613_v12, %v482_v14  ;;  %v459_v23 = vand.u32 2147483647, %v5733_v21  ;;  %v449_v4 = vmul.f32 %v5765_v33, %v448_v37 }
 0x172   :  { %v4864_v50 = vpop.eup %4863  ;;  %v483_v58 = vmul.f32 0.01, %v434_v46  ;;  %vm451_vm9 = vcmp.lt.f32.partialorder %v450_v40, 0.0004427343  ;;  %v466_v35 = vadd.f32 1.0, %v465_v22  ;;  %v458_v45 = vmul.f32 %v5733_v21, %v457_v17 }
 0x173   :  { %v437_v43 = vmul.f32 0.6931472, %v4864_v50  ;;  %v468_v12 = vand.u32 2147483647, %v5745_v9  ;;  %vm460_vm10 = vcmp.lt.f32.partialorder %v459_v23, 0.0004427343 }
 0x174   :  { %v499_v53 = vsel %vm290_vm7, %v5624_v24, %v483_v58  ;;  %v4866_v39 = vpop.eup %4865  ;;  %vm291_vm11 = vcmp.gt.f32.partialorder %v5661_v10, 20.0  ;;  %vm292_vm12 = vcmp.gt.f32.partialorder %v5673_v29, 20.0  ;;  %v467_v33 = vmul.f32 %v5745_v9, %v466_v35  ;;  %v8247_v29 = vld [vmem:[#allocation20_spill] sm:$0xff]  ;;  %v4743_v9 = vld [vmem:[#allocation5 + $0x80] sm:$0xff]  }
 0x175   :  { %v527_v3 = vpack.c.bf16 %v499_v53, %v498_v42  ;;  %v443_v59 = vsel %vm442_vm8, %v440_v15, %v437_v43  ;;  %v446_v2 = vmul.f32 0.6931472, %v4866_v39  ;;  %vm469_vm13 = vcmp.lt.f32.partialorder %v468_v12, 0.0004427343  ;;  %4446 = vmatprep.subr.bf16.mxu0 %v4743_v9 }
 0x176   :  { %v4868_v5 = vpop.eup %4867  ;;  %v484_v8 = vmul.f32 0.01, %v443_v59  ;;  %vm293_vm14 = vcmp.gt.f32.partialorder %v5655_v0, 20.0  ;;  %vm294_vm15 = vcmp.gt.f32.partialorder %v5669_v19, 20.0  ;;  %4447 = vmatpush3.bf16.msra.mxu0 %v4743_v9  ;;  %v4747_v0 = vld [vmem:[#allocation5 + $0xa0] sm:$0xff]   ;;  %v4749_v19 = vld [vmem:[#allocation5 + $0xb0] sm:$0xff]  }
 0x177   :  { %4439 = vmatmul.mubr.bf16.gmra.mrb[8].mxu1 %v527_v3  ;;  %v455_v16 = vmul.f32 0.6931472, %v4868_v5  ;;  %v452_v24 = vsel %vm451_vm9, %v449_v4, %v446_v2  ;;  %v4870_v44 = vpop.eup %4869 }
 0x178   :  { %v485_v47 = vmul.f32 0.01, %v452_v24  ;;  %v464_v61 = vmul.f32 0.6931472, %v4870_v44  ;;  %v500_v41 = vsel %vm291_vm11, %v5651_v57, %v484_v8  ;;  %v4744_v57 = vld [vmem:[#allocation5 + $0x88] sm:$0xff]  }
 0x179   :  { %v461_v13 = vsel %vm460_vm10, %v458_v45, %v455_v16  ;;  %4448 = vmatprep.subr.bf16.mxu0 %v4744_v57 }
 0x17a   :  { %v501_v36 = vsel %vm292_vm12, %v5664_v11, %v485_v47  ;;  %v486_v21 = vmul.f32 0.01, %v461_v13  ;;  %v470_v31 = vsel %vm469_vm13, %v467_v33, %v464_v61  ;;  %4449 = vmatpush3.bf16.msra.mxu0 %v4744_v57  ;;  %v4745_v11 = vld [vmem:[#allocation5 + $0x90] sm:$0xff]  }
 0x17b   :  { %v528_v25 = vpack.c.bf16 %v501_v36, %v500_v41  ;;  %v487_v56 = vmul.f32 0.01, %v470_v31  ;;  %4450 = vmatprep.subr.bf16.mxu0 %v4745_v11 }
 0x17c   :  { %v502_v10 = vsel %vm293_vm14, %v5648_v54, %v486_v21  ;;  %v4748_v54 = vld [vmem:[#allocation5 + $0xa8] sm:$0xff]  }
 0x17d   :  { %4442 = vmatprep.mubr.bf16.mxu1 %v528_v25  ;;  %v503_v1 = vsel %vm294_vm15, %v8247_v29, %v487_v56 }
 0x17e   :  { %v529_v7 = vpack.c.bf16 %v503_v1, %v502_v10  ;;  %4451 = vmatpush3.bf16.msra.mxu0 %v4745_v11 }
 0x17f   :  { %4452 = vmatprep.subr.bf16.mxu0 %v4746_v62 }
 0x180   :  { %4443 = vmatmul.mubr.bf16.gmra.mrb[12].mxu1 %v529_v7 }
 0x182   :  { %4453 = vmatpush3.bf16.msra.mxu0 %v4746_v62 }
 0x183   :  { %4454 = vmatprep.subr.bf16.mxu0 %v4747_v0 }
 0x186   :  { %4455 = vmatpush3.bf16.msra.mxu0 %v4747_v0 }
 0x187   :  { %4456 = vmatprep.subr.bf16.mxu0 %v4748_v54 }
 0x18a   :  { %4457 = vmatpush3.bf16.msra.mxu0 %v4748_v54 }
 0x18b   :  { %4458 = vmatprep.subr.bf16.mxu0 %v4749_v19 }
 0x18e   :  { %4459 = vmatpush3.bf16.msra.mxu0 %v4749_v19 }
 0x18f   :  { %4460 = vmatprep.subr.bf16.mxu0 %v4750_v6 }
 0x192   :  { %4461 = vmatpush3.bf16.msra.mxu0 %v4750_v6 }
 0x236   :  { %v4432_v48 = vpop.f32.mrb[0].mxu1 }
 0x237   :  { %v5865_v20 = vadd.f32 %v4432_v48, %v5862_v51  ;;  %v616_v55 = vpop.f32.mrb[1].mxu1 }
 0x238   :  { %v5868_v60 = vadd.f32 %v5862_v51, %v616_v55  ;;  %v4433_v30 = vpop.f32.mrb[2].mxu1 }
 0x239   :  { %v5871_v38 = vmul.f32 100.0, %v5865_v20  ;;  %v5874_v27 = vadd.f32 %v4433_v30, %v5862_v51  ;;  %v619_v28 = vpop.f32.mrb[3].mxu1 }
 0x23a   :  { %v5877_v49 = vmul.f32 100.0, %v5868_v60  ;;  %v5880_v63 = vadd.f32 %v5862_v51, %v619_v28 }
 0x23b   :  { %v697_v34 = vmin.f32 %v5871_v38, 20.0  ;;  %v5884_v26 = vmul.f32 100.0, %v5874_v27  ;;  %vm713_vm0 = vcmp.gt.f32.partialorder %v5871_v38, 20.0 }
 0x23c   :  { %v695_v18 = vmin.f32 %v5877_v49, 20.0  ;;  %v5889_v52 = vmul.f32 100.0, %v5880_v63  ;;  %vm711_vm4 = vcmp.gt.f32.partialorder %v5877_v49, 20.0 }
 0x23d   :  { %v731_v32 = vmul.f32 1.442695, %v697_v34  ;;  %v698_v14 = vmin.f32 %v5884_v26, 20.0  ;;  %vm714_vm2 = vcmp.gt.f32.partialorder %v5884_v26, 20.0 }
 0x23e   :  { %v727_v46 = vmul.f32 1.442695, %v695_v18  ;;  %v4436_v50 = vpop.f32.mrb[4].mxu1  ;;  %v696_v15 = vmin.f32 %v5889_v52, 20.0  ;;  %vm712_vm6 = vcmp.gt.f32.partialorder %v5889_v52, 20.0 }
 0x23f   :  { %4871 = vpow2.f32 %v731_v32  ;;  %v733_v58 = vmul.f32 1.442695, %v698_v14  ;;  %v632_v37 = vpop.f32.mrb[5].mxu1  ;;  %v5892_v40 = vadd.f32 %v4436_v50, %v5862_v51 }
 0x240   :  { %4873 = vpow2.f32 %v727_v46  ;;  %v5895_v22 = vadd.f32 %v5862_v51, %v632_v37  ;;  %v4437_v43 = vpop.f32.mrb[6].mxu1  ;;  %v729_v39 = vmul.f32 1.442695, %v696_v15 }
 0x241   :  { %4875 = vpow2.f32 %v733_v58  ;;  %v635_v17 = vpop.f32.mrb[7].mxu1  ;;  %v5902_v53 = vmul.f32 100.0, %v5892_v40  ;;  %v5905_v23 = vadd.f32 %v4437_v43, %v5862_v51 }
 0x242   :  { %v5899_v42 = vmul.f32 100.0, %v5895_v22  ;;  %v5908_v3 = vadd.f32 %v5862_v51, %v635_v17  ;;  %4877 = vpow2.f32 %v729_v39 }
 0x243   :  { %v701_v5 = vmin.f32 %v5902_v53, 20.0  ;;  %v5913_v2 = vmul.f32 100.0, %v5905_v23  ;;  %vm717_vm13 = vcmp.gt.f32.partialorder %v5902_v53, 20.0 }
 0x244   :  { %v699_v59 = vmin.f32 %v5899_v42, 20.0  ;;  %v5916_v35 = vmul.f32 100.0, %v5908_v3  ;;  %vm715_vm9 = vcmp.gt.f32.partialorder %v5899_v42, 20.0 }
 0x245   :  { %v739_v47 = vmul.f32 1.442695, %v701_v5  ;;  %v702_v13 = vmin.f32 %v5913_v2, 20.0  ;;  %vm718_vm14 = vcmp.gt.f32.partialorder %v5913_v2, 20.0 }
 0x246   :  { %v735_v12 = vmul.f32 1.442695, %v699_v59  ;;  %v700_v33 = vmin.f32 %v5916_v35, 20.0  ;;  %vm716_vm10 = vcmp.gt.f32.partialorder %v5916_v35, 20.0 }
 0x247   :  { %v741_v57 = vmul.f32 1.442695, %v702_v13 }
 0x248   :  { %v737_v54 = vmul.f32 1.442695, %v700_v33 }
 0x249   :  { %v4872_v4 = vpop.eup %4871 }
 0x24a   :  { %v5918_v8 = vpop.eup %4873  ;;  %v777_v16 = vadd.f32 1.0, %v4872_v4  ;;  %v4440_v24 = vpop.f32.mrb[8].mxu1  ;;  %v780_v31 = vmul.f32 -0.5, %v4872_v4  ;;  %v783_v0 = vand.u32 2147483647, %v4872_v4 }
 0x24b   :  { %v4876_v45 = vpop.eup %4875  ;;  %v648_v61 = vpop.f32.mrb[9].mxu1  ;;  %v5923_v41 = vadd.f32 %v4440_v24, %v5862_v51  ;;  %v759_v25 = vadd.f32 1.0, %v5918_v8  ;;  %v762_v29 = vmul.f32 -0.5, %v5918_v8  ;;  %v765_v58 = vand.u32 2147483647, %v5918_v8 }
 0x24c   :  { %4879 = vlog2.f32 %v777_v16  ;;  %v786_v44 = vadd.f32 1.0, %v4876_v45  ;;  %v5926_v36 = vadd.f32 %v5862_v51, %v648_v61  ;;  %v4441_v21 = vpop.f32.mrb[10].mxu1  ;;  %v789_v1 = vmul.f32 -0.5, %v4876_v45  ;;  %v5949_v28 = vpop.eup %4877 }
 0x24d   :  { %v5930_v56 = vadd.f32 %v4441_v21, %v5862_v51  ;;  %v651_v10 = vpop.f32.mrb[11].mxu1  ;;  %v5934_v7 = vmul.f32 100.0, %v5923_v41  ;;  %v781_v6 = vadd.f32 1.0, %v780_v31  ;;  %v792_v48 = vand.u32 2147483647, %v4876_v45 }
 0x24e   :  { %4881 = vlog2.f32 %v786_v44  ;;  %v5937_v9 = vmul.f32 100.0, %v5926_v36  ;;  %v5943_v62 = vadd.f32 %v5862_v51, %v651_v10  ;;  %v763_v30 = vadd.f32 1.0, %v762_v29 }
 0x24f   :  { %4883 = vpow2.f32 %v735_v12  ;;  %v5940_v11 = vmul.f32 100.0, %v5930_v56  ;;  %v790_v34 = vadd.f32 1.0, %v789_v1  ;;  %v705_v18 = vmin.f32 %v5934_v7, 20.0 }
 0x250   :  { %v703_v19 = vmin.f32 %v5937_v9, 20.0  ;;  %4885 = vlog2.f32 %v759_v25  ;;  %v5947_v55 = vmul.f32 100.0, %v5943_v62  ;;  %vm5955_vm1 = vcmp.lt.f32.partialorder %v783_v0, 0.0004427343 }
 0x251   :  { %4887 = vpow2.f32 %v739_v47  ;;  %v706_v14 = vmin.f32 %v5940_v11, 20.0  ;;  %v782_v43 = vmul.f32 %v4872_v4, %v781_v6  ;;  %vm5961_vm3 = vcmp.lt.f32.partialorder %v792_v48, 0.0004427343 }
 0x252   :  { %4889 = vpow2.f32 %v741_v57  ;;  %v743_v32 = vmul.f32 1.442695, %v703_v19  ;;  %v704_v46 = vmin.f32 %v5947_v55, 20.0  ;;  %v5966_v39 = vmul.f32 %v5918_v8, %v763_v30 }
 0x253   :  { %4891 = vpow2.f32 %v737_v54  ;;  %v4444_v17 = vpop.f32.mrb[12].mxu1  ;;  %v768_v59 = vadd.f32 1.0, %v5949_v28  ;;  %v791_v16 = vmul.f32 %v4876_v45, %v790_v34  ;;  %v747_v12 = vmul.f32 1.442695, %v705_v18 }
 0x254   :  { %v5970_v24 = vadd.f32 %v4444_v17, %v5862_v51  ;;  %v664_v44 = vpop.f32.mrb[13].mxu1  ;;  %4893 = vpow2.f32 %v743_v32  ;;  %v749_v4 = vmul.f32 1.442695, %v706_v14  ;;  %v745_v13 = vmul.f32 1.442695, %v704_v46 }
 0x255   :  { %v5973_v61 = vadd.f32 %v5862_v51, %v664_v44  ;;  %v4445_v33 = vpop.f32.mrb[14].mxu1  ;;  %4895 = vlog2.f32 %v768_v59  ;;  %v771_v48 = vmul.f32 -0.5, %v5949_v28  ;;  %v774_v46 = vand.u32 2147483647, %v5949_v28 }
 0x256   :  { %v4880_v37 = vpop.eup %4879  ;;  %v5980_v45 = vmul.f32 100.0, %v5970_v24  ;;  %v5983_v31 = vadd.f32 %v4445_v33, %v5862_v51  ;;  %v667_v10 = vpop.f32.mrb[15].mxu1  ;;  %4897 = vpow2.f32 %v745_v13  ;;  %vm6024_vm5 = vcmp.lt.f32.partialorder %v765_v58, 0.0004427343 }
 0x257   :  { %v779_v5 = vmul.f32 0.6931472, %v4880_v37  ;;  %v5986_v1 = vmul.f32 100.0, %v5973_v61  ;;  %v5989_v57 = vadd.f32 %v5862_v51, %v667_v10  ;;  %4899 = vpow2.f32 %v747_v12 }
 0x258   :  { %v4882_v47 = vpop.eup %4881  ;;  %v709_v19 = vmin.f32 %v5980_v45, 20.0  ;;  %v5995_v6 = vmul.f32 100.0, %v5983_v31  ;;  %4901 = vpow2.f32 %v749_v4  ;;  %vm6035_vm7 = vcmp.lt.f32.partialorder %v774_v46, 0.0004427343 }
 0x259   :  { %v5975_v21 = vpop.eup %4883  ;;  %v785_v8 = vsel %vm5955_vm1, %v782_v43, %v779_v5  ;;  %v788_v25 = vmul.f32 0.6931472, %v4882_v47  ;;  %v707_v34 = vmin.f32 %v5986_v1, 20.0  ;;  %v6003_v14 = vmul.f32 100.0, %v5989_v57 }
 0x25a   :  { %v905_v29 = vmul.f32 0.01, %v785_v8  ;;  %v4886_v0 = vpop.eup %4885  ;;  %v798_v18 = vmul.f32 -0.5, %v5975_v21  ;;  %v755_v32 = vmul.f32 1.442695, %v709_v19  ;;  %v795_v50 = vadd.f32 1.0, %v5975_v21 }
 0x25b   :  { %v794_v54 = vsel %vm5961_vm3, %v791_v16, %v788_v25  ;;  %v6000_v51 = vpop.eup %4887  ;;  %v710_v17 = vmin.f32 %v5995_v6, 20.0  ;;  %v761_v59 = vmul.f32 0.6931472, %v4886_v0  ;;  %v751_v44 = vmul.f32 1.442695, %v707_v34 }
 0x25c   :  { %v906_v30 = vmul.f32 0.01, %v794_v54  ;;  %v6007_v37 = vpop.eup %4889  ;;  %v6012_v43 = vsel %vm713_vm0, %v5865_v20, %v905_v29  ;;  %v772_v47 = vadd.f32 1.0, %v771_v48  ;;  %v708_v20 = vmin.f32 %v6003_v14, 20.0 }
 0x25d   :  { %v4892_v5 = vpop.eup %4891  ;;  %4903 = vpow2.f32 %v755_v32  ;;  %v767_v26 = vsel %vm6024_vm5, %v5966_v39, %v761_v59  ;;  %v801_v12 = vand.u32 2147483647, %v5975_v21  ;;  %v757_v33 = vmul.f32 1.442695, %v710_v17 }
 0x25e   :  { %v6017_v15 = vsel %vm714_vm2, %v5874_v27, %v906_v30  ;;  %v799_v27 = vadd.f32 1.0, %v798_v18  ;;  %v6033_v13 = vpop.eup %4893  ;;  %4905 = vlog2.f32 %v795_v50  ;;  %v804_v58 = vadd.f32 1.0, %v4892_v5 }
 0x25f   :  { %v954_v16 = vpack.c.bf16 %v6017_v15, %v6012_v43  ;;  %4907 = vpow2.f32 %v751_v44  ;;  %v773_v8 = vmul.f32 %v5949_v28, %v772_v47  ;;  %v807_v25 = vmul.f32 -0.5, %v4892_v5  ;;  %v4896_v29 = vpop.eup %4895 }
 0x260   :  { %v813_v10 = vadd.f32 1.0, %v6000_v51  ;;  %v753_v0 = vmul.f32 1.442695, %v708_v20  ;;  %v903_v39 = vmul.f32 0.01, %v767_v26  ;;  %v800_v54 = vmul.f32 %v5975_v21, %v799_v27  ;;  %v6044_v34 = vpop.eup %4897 }
 0x261   :  { %4909 = vlog2.f32 %v804_v58  ;;  %v770_v19 = vmul.f32 0.6931472, %v4896_v29  ;;  %v816_v48 = vmul.f32 -0.5, %v6000_v51  ;;  %v822_v30 = vadd.f32 1.0, %v6007_v37  ;;  %v6056_v47 = vpop.eup %4899 }
 0x262   :  { %4911 = vlog2.f32 %v813_v10  ;;  %vm6046_vm8 = vcmp.lt.f32.partialorder %v801_v12, 0.0004427343  ;;  %v810_v18 = vand.u32 2147483647, %v4892_v5  ;;  %v825_v32 = vmul.f32 -0.5, %v6007_v37  ;;  %v6062_v26 = vpop.eup %4901 }
 0x263   :  { %4913 = vpow2.f32 %v757_v33  ;;  %v776_v21 = vsel %vm6035_vm7, %v773_v8, %v770_v19  ;;  %v808_v46 = vadd.f32 1.0, %v807_v25  ;;  %v831_v50 = vadd.f32 1.0, %v6033_v13 }
 0x264   :  { %4915 = vlog2.f32 %v822_v30  ;;  %v904_v17 = vmul.f32 0.01, %v776_v21  ;;  %v819_v59 = vand.u32 2147483647, %v6000_v51  ;;  %v834_v44 = vmul.f32 -0.5, %v6033_v13 }
 0x265   :  { %4917 = vpow2.f32 %v753_v0  ;;  %v919_v20 = vsel %vm711_vm4, %v5868_v60, %v903_v39  ;;  %v817_v38 = vadd.f32 1.0, %v816_v48  ;;  %v840_v27 = vadd.f32 1.0, %v6044_v34 }
 0x266   :  { %4919 = vlog2.f32 %v831_v50  ;;  %v920_v12 = vsel %vm712_vm6, %v5880_v63, %v904_v17  ;;  %v826_v33 = vadd.f32 1.0, %v825_v32  ;;  %v828_v4 = vand.u32 2147483647, %v6007_v37 }
 0x267   :  { %v843_v58 = vmul.f32 -0.5, %v6044_v34  ;;  %v6069_v8 = vpop.eup %4903  ;;  %v953_v60 = vpack.c.bf16 %v920_v12, %v919_v20  ;;  %v809_v49 = vmul.f32 %v4892_v5, %v808_v46  ;;  %vm6073_vm11 = vcmp.lt.f32.partialorder %v810_v18, 0.0004427343 }
 0x268   :  { %4921 = vlog2.f32 %v840_v27  ;;  %v4906_v52 = vpop.eup %4905  ;;  %vm6077_vm12 = vcmp.lt.f32.partialorder %v819_v59, 0.0004427343  ;;  %v835_v10 = vadd.f32 1.0, %v834_v44  ;;  %v837_v29 = vand.u32 2147483647, %v6033_v13 }
 0x269   :  { %v849_v0 = vadd.f32 1.0, %v6056_v47  ;;  %v6083_v39 = vpop.eup %4907  ;;  %4462 = vmatprep.mubr.bf16.mxu0 %v953_v60  ;;  %v797_v19 = vmul.f32 0.6931472, %v4906_v52  ;;  %v818_v5 = vmul.f32 %v6000_v51, %v817_v38  ;;  %v846_v48 = vand.u32 2147483647, %v6044_v34 }
 0x26a   :  { %v858_v30 = vadd.f32 1.0, %v6062_v26  ;;  %4463 = vmatmul.mubr.bf16.vlgmr.msra.gmra.mrb[16].mxu0 %v954_v16  ;;  %v827_v32 = vmul.f32 %v6007_v37, %v826_v33  ;;  %vm6094_vm15 = vcmp.lt.f32.partialorder %v828_v4, 0.0004427343  ;;  %v844_v51 = vadd.f32 1.0, %v843_v58 }
 0x26b   :  { %v4910_v18 = vpop.eup %4909  ;;  %4923 = vlog2.f32 %v849_v0  ;;  %v803_v50 = vsel %vm6046_vm8, %v800_v54, %v797_v19  ;;  %v852_v59 = vmul.f32 -0.5, %v6056_v47  ;;  %v836_v37 = vmul.f32 %v6033_v13, %v835_v10 }
 0x26c   :  { %v4912_v46 = vpop.eup %4911  ;;  %v806_v17 = vmul.f32 0.6931472, %v4910_v18  ;;  %4925 = vlog2.f32 %v858_v30  ;;  %v907_v43 = vmul.f32 0.01, %v803_v50  ;;  %vm6104_vm0 = vcmp.lt.f32.partialorder %v837_v29, 0.0004427343 }
 0x26d   :  { %v6101_v44 = vpop.eup %4913  ;;  %v815_v15 = vmul.f32 0.6931472, %v4912_v46  ;;  %vm6110_vm1 = vcmp.lt.f32.partialorder %v846_v48, 0.0004427343  ;;  %v861_v28 = vmul.f32 -0.5, %v6062_v26  ;;  %v867_v27 = vadd.f32 1.0, %v6083_v39 }
 0x26e   :  { %v4916_v20 = vpop.eup %4915  ;;  %v812_v38 = vsel %vm6073_vm11, %v809_v49, %v806_v17  ;;  %vm719_vm2 = vcmp.gt.f32.partialorder %v5937_v9, 20.0  ;;  %vm720_vm3 = vcmp.gt.f32.partialorder %v5947_v55, 20.0  ;;  %v845_v58 = vmul.f32 %v6044_v34, %v844_v51 }
 0x26f   :  { %v6116_v12 = vpop.eup %4917  ;;  %v908_v13 = vmul.f32 0.01, %v812_v38  ;;  %v821_v33 = vsel %vm6077_vm12, %v818_v5, %v815_v15  ;;  %v824_v4 = vmul.f32 0.6931472, %v4916_v20  ;;  %v853_v25 = vadd.f32 1.0, %v852_v59 }
 0x270   :  { %v4920_v60 = vpop.eup %4919  ;;  %v909_v49 = vmul.f32 0.01, %v821_v33  ;;  %v855_v52 = vand.u32 2147483647, %v6056_v47  ;;  %4927 = vlog2.f32 %v867_v27  ;;  %v923_v10 = vsel %vm715_vm9, %v5895_v22, %v907_v43 }
 0x271   :  { %v924_v29 = vsel %vm716_vm10, %v5908_v3, %v908_v13  ;;  %v830_v63 = vsel %vm6094_vm15, %v827_v32, %v824_v4  ;;  %v833_v0 = vmul.f32 0.6931472, %v4920_v60  ;;  %v862_v48 = vadd.f32 1.0, %v861_v28 }
 0x272   :  { %v4922_v19 = vpop.eup %4921  ;;  %v955_v34 = vpack.c.bf16 %v924_v29, %v923_v10  ;;  %v910_v5 = vmul.f32 0.01, %v830_v63  ;;  %v864_v30 = vand.u32 2147483647, %v6062_v26  ;;  %v870_v22 = vmul.f32 -0.5, %v6083_v39 }
 0x273   :  { %v839_v18 = vsel %vm6104_vm0, %v836_v37, %v833_v0  ;;  %v842_v51 = vmul.f32 0.6931472, %v4922_v19  ;;  %v876_v42 = vadd.f32 1.0, %v6116_v12  ;;  %v925_v3 = vsel %vm717_vm13, %v5892_v40, %v909_v49 }
 0x274   :  { %4466 = vmatprep.mubr.bf16.mxu0 %v955_v34  ;;  %v926_v35 = vsel %vm718_vm14, %v5905_v23, %v910_v5  ;;  %v911_v32 = vmul.f32 0.01, %v839_v18  ;;  %vm6143_vm4 = vcmp.lt.f32.partialorder %v855_v52, 0.0004427343  ;;  %v885_v59 = vadd.f32 1.0, %v6069_v8  ;;  %v4763_v23 = vld [vmem:[#allocation5 + $0x160] sm:$0xff]  }
 0x275   :  { %v4924_v46 = vpop.eup %4923  ;;  %v956_v50 = vpack.c.bf16 %v926_v35, %v925_v3  ;;  %v848_v17 = vsel %vm6110_vm1, %v845_v58, %v842_v51  ;;  %4929 = vlog2.f32 %v876_v42  ;;  %v854_v15 = vmul.f32 %v6056_v47, %v853_v25 }
 0x276   :  { %v4926_v43 = vpop.eup %4925  ;;  %v912_v53 = vmul.f32 0.01, %v848_v17  ;;  %v851_v40 = vmul.f32 0.6931472, %v4924_v46  ;;  %vm6151_vm5 = vcmp.lt.f32.partialorder %v864_v30, 0.0004427343  ;;  %v863_v37 = vmul.f32 %v6062_v26, %v862_v48 }
 0x277   :  { %4467 = vmatmul.mubr.bf16.gmra.mrb[20].mxu0 %v956_v50  ;;  %v860_v2 = vmul.f32 0.6931472, %v4926_v43  ;;  %v871_v16 = vadd.f32 1.0, %v870_v22  ;;  %4931 = vlog2.f32 %v885_v59  ;;  %v927_v20 = vsel %vm719_vm2, %v5926_v36, %v911_v32  ;;  %v8272_v46 = vld [vmem:[#allocation12_spill] sm:$0xff]  ;;  %v4751_v50 = vld [vmem:[#allocation5 + $0xc0] sm:$0xff]   ;;  %v4758_v59 = vld [vmem:[#allocation5 + $0xf8] sm:$0xff]  }
 0x278   :  { %v928_v38 = vsel %vm720_vm3, %v5943_v62, %v912_v53  ;;  %v857_v47 = vsel %vm6143_vm4, %v854_v15, %v851_v40  ;;  %v879_v54 = vmul.f32 -0.5, %v6116_v12  ;;  %v873_v13 = vand.u32 2147483647, %v6083_v39  ;;  %4478 = vmatprep.subr.bf16.mxu1 %v4751_v50  ;;  %v4753_v17 = vld [vmem:[#allocation5 + $0xd0] sm:$0xff]   ;;  %v4759_v43 = vld [vmem:[#allocation5 + $0x140] sm:$0xff]   ;;  %v4760_v53 = vld [vmem:[#allocation5 + $0x148] sm:$0xff]  }
 0x279   :  { %v957_v28 = vpack.c.bf16 %v928_v38, %v927_v20  ;;  %v866_v27 = vsel %vm6151_vm5, %v863_v37, %v860_v2  ;;  %v913_v26 = vmul.f32 0.01, %v857_v47  ;;  %vm721_vm6 = vcmp.gt.f32.partialorder %v5934_v7, 20.0  ;;  %4479 = vmatpush3.bf16.msra.mxu1 %v4751_v50  ;;  %4510 = vmatprep.subr.bf16.mxu0 %v4759_v43  ;;  %v4761_v40 = vld [vmem:[#allocation5 + $0x150] sm:$0xff]   ;;  %v4762_v15 = vld [vmem:[#allocation5 + $0x158] sm:$0xff]  }
 0x27a   :  { %v4928_v33 = vpop.eup %4927  ;;  %v914_v36 = vmul.f32 0.01, %v866_v27  ;;  %v894_v9 = vadd.f32 1.0, %v6101_v44  ;;  %vm722_vm7 = vcmp.gt.f32.partialorder %v5940_v11, 20.0  ;;  %v872_v55 = vmul.f32 %v6083_v39, %v871_v16  ;;  %4511 = vmatpush3.bf16.msra.mxu0 %v4759_v43  ;;  %v6191_v2 = vld [vmem:[#allocation7 + $0x2] ss:$0 sm:$0xff] }
 0x27b   :  { %4470 = vmatprep.mubr.bf16.mxu0 %v957_v28  ;;  %v869_v62 = vmul.f32 0.6931472, %v4928_v33  ;;  %v888_v4 = vmul.f32 -0.5, %v6069_v8  ;;  %v929_v58 = vsel %vm721_vm6, %v5923_v41, %v913_v26  ;;  %v880_v49 = vadd.f32 1.0, %v879_v54  ;;  %4512 = vmatprep.subr.bf16.mxu0 %v4760_v53 }
 0x27c   :  { %v930_v60 = vsel %vm722_vm7, %v5930_v56, %v914_v36  ;;  %4933 = vlog2.f32 %v894_v9  ;;  %vm874_vm8 = vcmp.lt.f32.partialorder %v873_v13, 0.0004427343  ;;  %v882_v7 = vand.u32 2147483647, %v6116_v12 }
 0x27d   :  { %v958_v25 = vpack.c.bf16 %v930_v60, %v929_v58  ;;  %v875_v52 = vsel %vm874_vm8, %v872_v55, %v869_v62  ;;  %v889_v11 = vadd.f32 1.0, %v888_v4  ;;  %v897_v29 = vmul.f32 -0.5, %v6101_v44 }
 0x27e   :  { %v881_v39 = vmul.f32 %v6116_v12, %v880_v49  ;;  %v891_v0 = vand.u32 2147483647, %v6069_v8  ;;  %vm883_vm9 = vcmp.lt.f32.partialorder %v882_v7, 0.0004427343  ;;  %v915_v56 = vmul.f32 0.01, %v875_v52  ;;  %4513 = vmatpush3.bf16.msra.mxu0 %v4760_v53 }
 0x27f   :  { %v4930_v10 = vpop.eup %4929  ;;  %4471 = vmatmul.mubr.bf16.gmra.mrb[24].mxu0 %v958_v25  ;;  %v890_v48 = vmul.f32 %v6069_v8, %v889_v11  ;;  %v898_v30 = vadd.f32 1.0, %v897_v29  ;;  %vm723_vm10 = vcmp.gt.f32.partialorder %v5986_v1, 20.0  ;;  %vm724_vm11 = vcmp.gt.f32.partialorder %v6003_v14, 20.0  ;;  %4514 = vmatprep.subr.bf16.mxu0 %v4761_v40 }
 0x280   :  { %v878_v63 = vmul.f32 0.6931472, %v4930_v10  ;;  %vm892_vm12 = vcmp.lt.f32.partialorder %v891_v0, 0.0004427343  ;;  %v900_v18 = vand.u32 2147483647, %v6101_v44  ;;  %v931_v12 = vsel %vm723_vm10, %v5973_v61, %v915_v56 }
 0x281   :  { %v4932_v41 = vpop.eup %4931  ;;  %v899_v32 = vmul.f32 %v6101_v44, %v898_v30  ;;  %vm725_vm14 = vcmp.gt.f32.partialorder %v5980_v45, 20.0  ;;  %vm726_vm15 = vcmp.gt.f32.partialorder %v5995_v6, 20.0  ;;  %v4752_v44 = vld [vmem:[#allocation5 + $0xc8] sm:$0xff]   ;;  %v4754_v45 = vld [vmem:[#allocation5 + $0xd8] sm:$0xff]   ;;  %v4755_v6 = vld [vmem:[#allocation5 + $0xe0] sm:$0xff]  }
 0x282   :  { %v884_v19 = vsel %vm883_vm9, %v881_v39, %v878_v63  ;;  %v887_v34 = vmul.f32 0.6931472, %v4932_v41  ;;  %vm901_vm13 = vcmp.lt.f32.partialorder %v900_v18, 0.0004427343  ;;  %4480 = vmatprep.subr.bf16.mxu1 %v4752_v44  ;;  %4515 = vmatpush3.bf16.msra.mxu0 %v4761_v40 }
 0x283   :  { %v916_v5 = vmul.f32 0.01, %v884_v19  ;;  %4481 = vmatpush3.bf16.msra.mxu1 %v4752_v44  ;;  %4516 = vmatprep.subr.bf16.mxu0 %v4762_v15 }
 0x284   :  { %v893_v22 = vsel %vm892_vm12, %v890_v48, %v887_v34  ;;  %4482 = vmatprep.subr.bf16.mxu1 %v4753_v17 }
 0x285   :  { %v932_v51 = vsel %vm724_vm11, %v5989_v57, %v916_v5  ;;  %v917_v8 = vmul.f32 0.01, %v893_v22 }
 0x286   :  { %v4934_v42 = vpop.eup %4933  ;;  %v959_v3 = vpack.c.bf16 %v932_v51, %v931_v12  ;;  %4517 = vmatpush3.bf16.msra.mxu0 %v4762_v15 }
 0x287   :  { %v896_v35 = vmul.f32 0.6931472, %v4934_v42  ;;  %v933_v14 = vsel %vm725_vm14, %v5970_v24, %v917_v8  ;;  %4483 = vmatpush3.bf16.msra.mxu1 %v4753_v17  ;;  %v4756_v24 = vld [vmem:[#allocation5 + $0xe8] sm:$0xff]   ;;  %4518 = vmatprep.subr.bf16.mxu0 %v4763_v23 }
 0x288   :  { %4474 = vmatprep.mubr.bf16.mxu0 %v959_v3  ;;  %4484 = vmatprep.subr.bf16.mxu1 %v4754_v45 }
 0x289   :  { %v902_v21 = vsel %vm901_vm13, %v899_v32, %v896_v35 }
 0x28a   :  { %v918_v1 = vmul.f32 0.01, %v902_v21  ;;  %4519 = vmatpush3.bf16.msra.mxu0 %v4763_v23 }
 0x28b   :  { %4485 = vmatpush3.bf16.msra.mxu1 %v4754_v45 }
 0x28c   :  { %v934_v61 = vsel %vm726_vm15, %v5983_v31, %v918_v1  ;;  %4486 = vmatprep.subr.bf16.mxu1 %v4755_v6  ;;  %v4757_v31 = vld [vmem:[#allocation5 + $0xf0] sm:$0xff]  }
 0x28d   :  { %v960_v57 = vpack.c.bf16 %v934_v61, %v933_v14 }
 0x28f   :  { %4475 = vmatmul.mubr.bf16.gmra.mrb[28].mxu0 %v960_v57  ;;  %4487 = vmatpush3.bf16.msra.mxu1 %v4755_v6 }
 0x290   :  { %4526 = vmatprep.mubr.bf16.mxu0 %v8272_v46  ;;  %4488 = vmatprep.subr.bf16.mxu1 %v4756_v24 }
 0x293   :  { %4489 = vmatpush3.bf16.msra.mxu1 %v4756_v24 }
 0x294   :  { %4490 = vmatprep.subr.bf16.mxu1 %v4757_v31 }
 0x297   :  { %4491 = vmatpush3.bf16.msra.mxu1 %v4757_v31 }
 0x298   :  { %4492 = vmatprep.subr.bf16.mxu1 %v4758_v59 }
 0x29b   :  { %4493 = vmatpush3.bf16.msra.mxu1 %v4758_v59 }
 0x33d   :  { %v4464_v37 = vpop.f32.mrb[16].mxu0 }
 0x33e   :  { %v6194_v16 = vadd.f32 %v4464_v37, %v6191_v2  ;;  %v1047_v20 = vpop.f32.mrb[17].mxu0 }
 0x33f   :  { %v6197_v38 = vadd.f32 %v6191_v2, %v1047_v20  ;;  %v4465_v47 = vpop.f32.mrb[18].mxu0 }
 0x340   :  { %v6200_v54 = vmul.f32 100.0, %v6194_v16  ;;  %v6203_v28 = vadd.f32 %v4465_v47, %v6191_v2  ;;  %v1050_v27 = vpop.f32.mrb[19].mxu0 }
 0x341   :  { %v6206_v26 = vmul.f32 100.0, %v6197_v38  ;;  %v6209_v13 = vadd.f32 %v6191_v2, %v1050_v27 }
 0x342   :  { %v1128_v33 = vmin.f32 %v6200_v54, 20.0  ;;  %v6213_v36 = vmul.f32 100.0, %v6203_v28  ;;  %vm1144_vm0 = vcmp.gt.f32.partialorder %v6200_v54, 20.0 }
 0x343   :  { %v1126_v9 = vmin.f32 %v6206_v26, 20.0  ;;  %v6218_v4 = vmul.f32 100.0, %v6209_v13  ;;  %vm1142_vm5 = vcmp.gt.f32.partialorder %v6206_v26, 20.0 }
 0x344   :  { %v1162_v62 = vmul.f32 1.442695, %v1128_v33  ;;  %v1129_v55 = vmin.f32 %v6213_v36, 20.0  ;;  %vm1145_vm3 = vcmp.gt.f32.partialorder %v6213_v36, 20.0 }
 0x345   :  { %v1158_v60 = vmul.f32 1.442695, %v1126_v9  ;;  %v1127_v49 = vmin.f32 %v6218_v4, 20.0  ;;  %vm1143_vm6 = vcmp.gt.f32.partialorder %v6218_v4, 20.0 }
 0x346   :  { %4935 = vpow2.f32 %v1162_v62  ;;  %v1164_v58 = vmul.f32 1.442695, %v1129_v55 }
 0x347   :  { %v1160_v11 = vmul.f32 1.442695, %v1127_v49 }
 0x348   :  { %4937 = vpow2.f32 %v1164_v58 }
 0x349   :  { %4939 = vpow2.f32 %v1158_v60 }
 0x34a   :  { %v4468_v25 = vpop.f32.mrb[20].mxu0  ;;  %4941 = vpow2.f32 %v1160_v11 }
 0x34b   :  { %v1063_v7 = vpop.f32.mrb[21].mxu0  ;;  %v6225_v29 = vadd.f32 %v4468_v25, %v6191_v2 }
 0x34c   :  { %v6222_v52 = vadd.f32 %v6191_v2, %v1063_v7  ;;  %v4469_v10 = vpop.f32.mrb[22].mxu0 }
 0x34d   :  { %v6228_v63 = vadd.f32 %v4469_v10, %v6191_v2  ;;  %v1066_v39 = vpop.f32.mrb[23].mxu0  ;;  %v6241_v5 = vmul.f32 100.0, %v6225_v29 }
 0x34e   :  { %v6231_v0 = vmul.f32 100.0, %v6222_v52  ;;  %v6234_v41 = vadd.f32 %v6191_v2, %v1066_v39 }
 0x34f   :  { %v6244_v48 = vmul.f32 100.0, %v6228_v63  ;;  %v1132_v35 = vmin.f32 %v6241_v5, 20.0  ;;  %vm1148_vm13 = vcmp.gt.f32.partialorder %v6241_v5, 20.0 }
 0x350   :  { %v1130_v56 = vmin.f32 %v6231_v0, 20.0  ;;  %v6238_v19 = vmul.f32 100.0, %v6234_v41  ;;  %v4936_v34 = vpop.eup %4935  ;;  %vm1146_vm9 = vcmp.gt.f32.partialorder %v6231_v0, 20.0 }
 0x351   :  { %v1208_v30 = vadd.f32 1.0, %v4936_v34  ;;  %v1133_v32 = vmin.f32 %v6244_v48, 20.0  ;;  %v1211_v14 = vmul.f32 -0.5, %v4936_v34  ;;  %v1214_v24 = vand.u32 2147483647, %v4936_v34 }
 0x352   :  { %v1166_v18 = vmul.f32 1.442695, %v1130_v56  ;;  %v4938_v12 = vpop.eup %4937  ;;  %v1131_v51 = vmin.f32 %v6238_v19, 20.0  ;;  %v4472_v22 = vpop.f32.mrb[24].mxu0  ;;  %v1170_v31 = vmul.f32 1.442695, %v1132_v35 }
 0x353   :  { %4943 = vlog2.f32 %v1208_v30  ;;  %v1217_v42 = vadd.f32 1.0, %v4938_v12  ;;  %v1079_v3 = vpop.f32.mrb[25].mxu0  ;;  %v6249_v1 = vpop.eup %4939  ;;  %v6252_v61 = vadd.f32 %v4472_v22, %v6191_v2  ;;  %v1220_v50 = vmul.f32 -0.5, %v4938_v12 }
 0x354   :  { %4945 = vpow2.f32 %v1166_v18  ;;  %v1168_v8 = vmul.f32 1.442695, %v1131_v51  ;;  %v4473_v21 = vpop.f32.mrb[26].mxu0  ;;  %v6255_v57 = vadd.f32 %v6191_v2, %v1079_v3  ;;  %v1190_v43 = vadd.f32 1.0, %v6249_v1  ;;  %v6275_v37 = vpop.eup %4941 }
 0x355   :  { %4947 = vlog2.f32 %v1217_v42  ;;  %v1082_v46 = vpop.f32.mrb[27].mxu0  ;;  %v6258_v44 = vadd.f32 %v4473_v21, %v6191_v2  ;;  %v6261_v17 = vmul.f32 100.0, %v6252_v61  ;;  %v1212_v53 = vadd.f32 1.0, %v1211_v14 }
 0x356   :  { %4949 = vpow2.f32 %v1168_v8  ;;  %v6264_v45 = vmul.f32 100.0, %v6255_v57  ;;  %v6267_v6 = vadd.f32 %v6191_v2, %v1082_v46  ;;  %v1172_v40 = vmul.f32 1.442695, %v1133_v32 }
 0x357   :  { %v6270_v59 = vmul.f32 100.0, %v6258_v44  ;;  %v1136_v15 = vmin.f32 %v6261_v17, 20.0  ;;  %v1223_v20 = vand.u32 2147483647, %v4938_v12  ;;  %4951 = vlog2.f32 %v1190_v43 }
 0x358   :  { %v1134_v23 = vmin.f32 %v6264_v45, 20.0  ;;  %v6278_v47 = vmul.f32 100.0, %v6267_v6  ;;  %v1193_v27 = vmul.f32 -0.5, %v6249_v1  ;;  %v1221_v33 = vadd.f32 1.0, %v1220_v50 }
 0x359   :  { %v1178_v9 = vmul.f32 1.442695, %v1136_v15  ;;  %v1137_v55 = vmin.f32 %v6270_v59, 20.0  ;;  %v1213_v49 = vmul.f32 %v4936_v34, %v1212_v53  ;;  %vm6284_vm1 = vcmp.lt.f32.partialorder %v1214_v24, 0.0004427343 }
 0x35a   :  { %v1174_v62 = vmul.f32 1.442695, %v1134_v23  ;;  %v1135_v58 = vmin.f32 %v6278_v47, 20.0  ;;  %4953 = vpow2.f32 %v1170_v31  ;;  %v1199_v7 = vadd.f32 1.0, %v6275_v37 }
 0x35b   :  { %vm6291_vm2 = vcmp.lt.f32.partialorder %v1223_v20, 0.0004427343  ;;  %4955 = vpow2.f32 %v1172_v40  ;;  %v1194_v56 = vadd.f32 1.0, %v1193_v27  ;;  %v1222_v18 = vmul.f32 %v4938_v12, %v1221_v33 }
 0x35c   :  { %4957 = vpow2.f32 %v1178_v9  ;;  %v1176_v34 = vmul.f32 1.442695, %v1135_v58  ;;  %v1180_v3 = vmul.f32 1.442695, %v1137_v55  ;;  %v1196_v21 = vand.u32 2147483647, %v6249_v1 }
 0x35d   :  { %v4944_v60 = vpop.eup %4943  ;;  %4959 = vpow2.f32 %v1174_v62  ;;  %v1195_v50 = vmul.f32 %v6249_v1, %v1194_v56  ;;  %v1202_v53 = vmul.f32 -0.5, %v6275_v37  ;;  %vm1147_vm10 = vcmp.gt.f32.partialorder %v6238_v19, 20.0 }
 0x35e   :  { %v6289_v10 = vpop.eup %4945  ;;  %v1210_v11 = vmul.f32 0.6931472, %v4944_v60  ;;  %4961 = vlog2.f32 %v1199_v7  ;;  %vm6348_vm4 = vcmp.lt.f32.partialorder %v1196_v21, 0.0004427343  ;;  %vm1149_vm14 = vcmp.gt.f32.partialorder %v6244_v48, 20.0 }
 0x35f   :  { %v4948_v30 = vpop.eup %4947  ;;  %v1226_v51 = vadd.f32 1.0, %v6289_v10  ;;  %v1229_v60 = vmul.f32 -0.5, %v6289_v10  ;;  %v1203_v25 = vadd.f32 1.0, %v1202_v53 }
 0x360   :  { %v1216_v22 = vsel %vm6284_vm1, %v1213_v49, %v1210_v11  ;;  %v1219_v42 = vmul.f32 0.6931472, %v4948_v30  ;;  %v6298_v35 = vpop.eup %4949  ;;  %v1205_v30 = vand.u32 2147483647, %v6275_v37  ;;  %vm1150_vm1 = vcmp.gt.f32.partialorder %v6264_v45, 20.0 }
 0x361   :  { %v1336_v32 = vmul.f32 0.01, %v1216_v22  ;;  %4963 = vlog2.f32 %v1226_v51  ;;  %v4952_v40 = vpop.eup %4951  ;;  %v1235_v27 = vadd.f32 1.0, %v6298_v35  ;;  %v1232_v22 = vand.u32 2147483647, %v6289_v10 }
 0x362   :  { %v4476_v8 = vpop.f32.mrb[28].mxu0  ;;  %v1225_v12 = vsel %vm6291_vm2, %v1222_v18, %v1219_v42  ;;  %4965 = vpow2.f32 %v1176_v34  ;;  %v1192_v54 = vmul.f32 0.6931472, %v4952_v40  ;;  %v1238_v40 = vmul.f32 -0.5, %v6298_v35 }
 0x363   :  { %v6305_v14 = vadd.f32 %v4476_v8, %v6191_v2  ;;  %v1095_v46 = vpop.f32.mrb[29].mxu0  ;;  %v1337_v24 = vmul.f32 0.01, %v1225_v12  ;;  %v6315_v15 = vsel %vm1144_vm0, %v6194_v16, %v1336_v32  ;;  %4967 = vlog2.f32 %v1235_v27 }
 0x364   :  { %v6309_v31 = vadd.f32 %v6191_v2, %v1095_v46  ;;  %v4477_v43 = vpop.f32.mrb[30].mxu0  ;;  %v6342_v36 = vpop.eup %4953  ;;  %v1198_v56 = vsel %vm6348_vm4, %v1195_v50, %v1192_v54  ;;  %4969 = vpow2.f32 %v1180_v3  ;;  %v1230_v32 = vadd.f32 1.0, %v1229_v60 }
 0x365   :  { %v6318_v23 = vmul.f32 100.0, %v6305_v14  ;;  %v6321_v1 = vadd.f32 %v4477_v43, %v6191_v2  ;;  %v1098_v20 = vpop.f32.mrb[31].mxu0  ;;  %v6327_v33 = vsel %vm1145_vm3, %v6203_v28, %v1337_v24  ;;  %v6352_v7 = vpop.eup %4955  ;;  %v1204_v12 = vmul.f32 %v6275_v37, %v1203_v25 }
 0x366   :  { %v6330_v9 = vmul.f32 100.0, %v6309_v31  ;;  %v6333_v16 = vadd.f32 %v6191_v2, %v1098_v20  ;;  %v1385_v62 = vpack.c.bf16 %v6327_v33, %v6315_v15  ;;  %v6358_v18 = vpop.eup %4957  ;;  %v1334_v46 = vmul.f32 0.01, %v1198_v56 }
 0x367   :  { %v1140_v55 = vmin.f32 %v6318_v23, 20.0  ;;  %v6339_v58 = vmul.f32 100.0, %v6321_v1  ;;  %v6362_v42 = vpop.eup %4959  ;;  %v1244_v50 = vadd.f32 1.0, %v6342_v36  ;;  %vm1206_vm7 = vcmp.lt.f32.partialorder %v1205_v30, 0.0004427343 }
 0x368   :  { %v1138_v28 = vmin.f32 %v6330_v9, 20.0  ;;  %v6346_v49 = vmul.f32 100.0, %v6333_v16  ;;  %v4962_v8 = vpop.eup %4961  ;;  %vm6371_vm8 = vcmp.lt.f32.partialorder %v1232_v22, 0.0004427343  ;;  %v1231_v37 = vmul.f32 %v6289_v10, %v1230_v32 }
 0x369   :  { %v1186_v11 = vmul.f32 1.442695, %v1140_v55  ;;  %v1141_v39 = vmin.f32 %v6339_v58, 20.0  ;;  %v1201_v53 = vmul.f32 0.6931472, %v4962_v8  ;;  %v1247_v55 = vmul.f32 -0.5, %v6342_v36 }
 0x36a   :  { %v1182_v34 = vmul.f32 1.442695, %v1138_v28  ;;  %v1139_v51 = vmin.f32 %v6346_v49, 20.0  ;;  %v1241_v28 = vand.u32 2147483647, %v6298_v35  ;;  %v1253_v2 = vadd.f32 1.0, %v6352_v7 }
 0x36b   :  { %v4964_v24 = vpop.eup %4963  ;;  %4971 = vpow2.f32 %v1186_v11  ;;  %v1188_v43 = vmul.f32 1.442695, %v1141_v39  ;;  %v1207_v54 = vsel %vm1206_vm7, %v1204_v12, %v1201_v53  ;;  %v1350_v25 = vsel %vm1142_vm5, %v6197_v38, %v1334_v46 }
 0x36c   :  { %v1184_v21 = vmul.f32 1.442695, %v1139_v51  ;;  %v6369_v20 = vpop.eup %4965  ;;  %4973 = vpow2.f32 %v1182_v34  ;;  %v1228_v27 = vmul.f32 0.6931472, %v4964_v24  ;;  %v1335_v60 = vmul.f32 0.01, %v1207_v54 }
 0x36d   :  { %4975 = vlog2.f32 %v1244_v50  ;;  %v1239_v11 = vadd.f32 1.0, %v1238_v40  ;;  %v1250_v39 = vand.u32 2147483647, %v6342_v36  ;;  %v1262_v30 = vadd.f32 1.0, %v6362_v42  ;;  %v4968_v38 = vpop.eup %4967 }
 0x36e   :  { %4977 = vpow2.f32 %v1184_v21  ;;  %v1351_v10 = vsel %vm1143_vm6, %v6209_v13, %v1335_v60  ;;  %v1234_v56 = vsel %vm6371_vm8, %v1231_v37, %v1228_v27  ;;  %v1248_v51 = vadd.f32 1.0, %v1247_v55  ;;  %v6398_v4 = vpop.eup %4969 }
 0x36f   :  { %4979 = vpow2.f32 %v1188_v43  ;;  %v1384_v34 = vpack.c.bf16 %v1351_v10, %v1350_v25  ;;  %v1256_v22 = vmul.f32 -0.5, %v6352_v7  ;;  %v1265_v26 = vmul.f32 -0.5, %v6362_v42 }
 0x370   :  { %4981 = vlog2.f32 %v1253_v2  ;;  %vm6393_vm11 = vcmp.lt.f32.partialorder %v1241_v28, 0.0004427343  ;;  %v1271_v13 = vadd.f32 1.0, %v6369_v20  ;;  %v1237_v8 = vmul.f32 0.6931472, %v4968_v38 }
 0x371   :  { %4983 = vlog2.f32 %v1262_v30  ;;  %4494 = vmatprep.mubr.bf16.mxu1 %v1384_v34  ;;  %v1240_v21 = vmul.f32 %v6298_v35, %v1239_v11  ;;  %v1338_v12 = vmul.f32 0.01, %v1234_v56  ;;  %v1259_v46 = vand.u32 2147483647, %v6352_v7 }
 0x372   :  { %4495 = vmatmul.mubr.bf16.vlgmr.msra.gmra.mrb[16].mxu1 %v1385_v62  ;;  %vm6405_vm12 = vcmp.lt.f32.partialorder %v1250_v39, 0.0004427343  ;;  %4985 = vlog2.f32 %v1271_v13  ;;  %v1274_v24 = vmul.f32 -0.5, %v6369_v20  ;;  %v1280_v43 = vadd.f32 1.0, %v6358_v18 }
 0x373   :  { %v1243_v35 = vsel %vm6393_vm11, %v1240_v21, %v1237_v8  ;;  %v1249_v40 = vmul.f32 %v6342_v36, %v1248_v51  ;;  %v1257_v27 = vadd.f32 1.0, %v1256_v22  ;;  %v1266_v3 = vadd.f32 1.0, %v1265_v26 }
 0x374   :  { %v1339_v33 = vmul.f32 0.01, %v1243_v35  ;;  %v1268_v62 = vand.u32 2147483647, %v6362_v42  ;;  %4987 = vlog2.f32 %v1280_v43  ;;  %v1289_v54 = vadd.f32 1.0, %v6398_v4 }
 0x375   :  { %v6411_v53 = vpop.eup %4971  ;;  %v1354_v55 = vsel %vm1146_vm9, %v6222_v52, %v1338_v12  ;;  %vm6425_vm15 = vcmp.lt.f32.partialorder %v1259_v46, 0.0004427343  ;;  %v1277_v60 = vand.u32 2147483647, %v6369_v20  ;;  %v1283_v28 = vmul.f32 -0.5, %v6358_v18 }
 0x376   :  { %v6416_v15 = vpop.eup %4973  ;;  %v1355_v25 = vsel %vm1147_vm10, %v6234_v41, %v1339_v33  ;;  %v1275_v39 = vadd.f32 1.0, %v1274_v24  ;;  %4989 = vlog2.f32 %v1289_v54  ;;  %v1258_v0 = vmul.f32 %v6352_v7, %v1257_v27 }
 0x377   :  { %v4976_v37 = vpop.eup %4975  ;;  %v1386_v52 = vpack.c.bf16 %v1355_v25, %v1354_v55  ;;  %v1267_v56 = vmul.f32 %v6362_v42, %v1266_v3  ;;  %v1286_v30 = vand.u32 2147483647, %v6358_v18  ;;  %vm6443_vm0 = vcmp.lt.f32.partialorder %v1268_v62, 0.0004427343 }
 0x378   :  { %v6431_v2 = vpop.eup %4977  ;;  %v1246_v11 = vmul.f32 0.6931472, %v4976_v37  ;;  %v1292_v41 = vmul.f32 -0.5, %v6398_v4  ;;  %v1298_v19 = vadd.f32 1.0, %v6416_v15  ;;  %vm1151_vm2 = vcmp.gt.f32.partialorder %v6278_v47, 20.0 }
 0x379   :  { %v6436_v10 = vpop.eup %4979  ;;  %4498 = vmatprep.mubr.bf16.mxu1 %v1386_v52  ;;  %vm6451_vm3 = vcmp.lt.f32.partialorder %v1277_v60, 0.0004427343  ;;  %v1284_v26 = vadd.f32 1.0, %v1283_v28  ;;  %v1307_v38 = vadd.f32 1.0, %v6431_v2  ;;  %v1276_v8 = vmul.f32 %v6369_v20, %v1275_v39 }
 0x37a   :  { %v4982_v34 = vpop.eup %4981  ;;  %v1252_v51 = vsel %vm6405_vm12, %v1249_v40, %v1246_v11  ;;  %v1295_v21 = vand.u32 2147483647, %v6398_v4  ;;  %4991 = vlog2.f32 %v1298_v19  ;;  %vm6460_vm4 = vcmp.lt.f32.partialorder %v1286_v30, 0.0004427343 }
 0x37b   :  { %v1255_v7 = vmul.f32 0.6931472, %v4982_v34  ;;  %v4984_v32 = vpop.eup %4983  ;;  %v1340_v13 = vmul.f32 0.01, %v1252_v51  ;;  %4993 = vlog2.f32 %v1307_v38  ;;  %v1293_v35 = vadd.f32 1.0, %v1292_v41 }
 0x37c   :  { %v1264_v46 = vmul.f32 0.6931472, %v4984_v32  ;;  %v4986_v24 = vpop.eup %4985  ;;  %v1301_v40 = vmul.f32 -0.5, %v6416_v15  ;;  %v1310_v27 = vmul.f32 -0.5, %v6431_v2  ;;  %v1285_v33 = vmul.f32 %v6358_v18, %v1284_v26 }
 0x37d   :  { %v1261_v12 = vsel %vm6425_vm15, %v1258_v0, %v1255_v7  ;;  %v1273_v3 = vmul.f32 0.6931472, %v4986_v24  ;;  %v1316_v62 = vadd.f32 1.0, %v6411_v53  ;;  %v1356_v37 = vsel %vm1148_vm13, %v6225_v29, %v1340_v13 }
 0x37e   :  { %v1341_v43 = vmul.f32 0.01, %v1261_v12  ;;  %v1270_v20 = vsel %vm6443_vm0, %v1267_v56, %v1264_v46  ;;  %v4988_v54 = vpop.eup %4987  ;;  %v1304_v60 = vand.u32 2147483647, %v6416_v15  ;;  %v1294_v52 = vmul.f32 %v6398_v4, %v1293_v35 }
 0x37f   :  { %v1342_v36 = vmul.f32 0.01, %v1270_v20  ;;  %v1279_v25 = vsel %vm6451_vm3, %v1276_v8, %v1273_v3  ;;  %v1282_v11 = vmul.f32 0.6931472, %v4988_v54  ;;  %4995 = vlog2.f32 %v1316_v62  ;;  %v4764_v54 = vld [vmem:[#allocation5 + $0x168] sm:$0xff]  }
 0x380   :  { %v1357_v55 = vsel %vm1149_vm14, %v6228_v63, %v1341_v43  ;;  %v4990_v18 = vpop.eup %4989  ;;  %v1343_v39 = vmul.f32 0.01, %v1279_v25  ;;  %v1302_v0 = vadd.f32 1.0, %v1301_v40  ;;  %v1311_v5 = vadd.f32 1.0, %v1310_v27  ;;  %4520 = vmatprep.subr.bf16.mxu0 %v4764_v54  ;;  %v4771_v25 = vld [vmem:[#allocation5 + $0x120] sm:$0xff]  }
 0x381   :  { %v1387_v28 = vpack.c.bf16 %v1357_v55, %v1356_v37  ;;  %v1288_v29 = vsel %vm6460_vm4, %v1285_v33, %v1282_v11  ;;  %v1291_v63 = vmul.f32 0.6931472, %v4990_v18  ;;  %v1319_v48 = vmul.f32 -0.5, %v6411_v53  ;;  %4521 = vmatpush3.bf16.msra.mxu0 %v4764_v54  ;;  %v4765_v37 = vld [vmem:[#allocation5 + $0x170] sm:$0xff]   ;;  %v4767_v55 = vld [vmem:[#allocation5 + $0x100] sm:$0xff]   ;;  %v8299_v11 = vld [vmem:[#allocation17_spill] sm:$0xff] }
 0x382   :  { %v1325_v56 = vadd.f32 1.0, %v6436_v10  ;;  %v1358_v30 = vsel %vm1150_vm1, %v6255_v57, %v1342_v36  ;;  %v1359_v34 = vsel %vm1151_vm2, %v6267_v6, %v1343_v39  ;;  %vm1296_vm5 = vcmp.lt.f32.partialorder %v1295_v21, 0.0004427343  ;;  %4522 = vmatprep.subr.bf16.mxu0 %v4765_v37  ;;  %v8297_v36 = vld [vmem:[#allocation15_spill] sm:$0xff]  ;;  %v8300_v18 = vld [vmem:[#allocation18_spill] sm:$0xff] }
 0x383   :  { %4499 = vmatmul.mubr.bf16.gmra.mrb[20].mxu1 %v1387_v28  ;;  %v1344_v4 = vmul.f32 0.01, %v1288_v29  ;;  %v1388_v51 = vpack.c.bf16 %v1359_v34, %v1358_v30  ;;  %v1297_v22 = vsel %vm1296_vm5, %v1294_v52, %v1291_v63  ;;  %v1313_v41 = vand.u32 2147483647, %v6431_v2  ;;  %v4770_v28 = vld [vmem:[#allocation5 + $0x118] sm:$0xff]   ;;  %v4772_v39 = vld [vmem:[#allocation5 + $0x128] sm:$0xff]  }
 0x384   :  { %4997 = vlog2.f32 %v1325_v56  ;;  %v4992_v19 = vpop.eup %4991  ;;  %vm1152_vm6 = vcmp.gt.f32.partialorder %v6261_v17, 20.0  ;;  %vm1153_vm7 = vcmp.gt.f32.partialorder %v6270_v59, 20.0  ;;  %v1345_v7 = vmul.f32 0.01, %v1297_v22  ;;  %v4773_v52 = vld [vmem:[#allocation5 + $0x130] sm:$0xff]  }
 0x385   :  { %vm6493_vm8 = vcmp.lt.f32.partialorder %v1304_v60, 0.0004427343  ;;  %v4994_v57 = vpop.eup %4993  ;;  %4502 = vmatprep.mubr.bf16.mxu1 %v1388_v51  ;;  %v1300_v6 = vmul.f32 0.6931472, %v4992_v19  ;;  %v1303_v47 = vmul.f32 %v6416_v15, %v1302_v0  ;;  %v1312_v42 = vmul.f32 %v6431_v2, %v1311_v5  ;;  %4523 = vmatpush3.bf16.msra.mxu0 %v4765_v37  ;;  %v8298_v60 = vld [vmem:[#allocation16_spill] sm:$0xff]  ;;  %v4774_v0 = vld [vmem:[#allocation5 + $0x138] sm:$0xff]  }
 0x386   :  { %v1320_v26 = vadd.f32 1.0, %v1319_v48  ;;  %v1360_v38 = vsel %vm1152_vm6, %v6252_v61, %v1344_v4  ;;  %v1361_v32 = vsel %vm1153_vm7, %v6258_v44, %v1345_v7  ;;  %v1309_v17 = vmul.f32 0.6931472, %v4994_v57  ;;  %v8301_v5 = vld [vmem:[#allocation19_spill] sm:$0xff]  ;;  %v6523_v29 = vld [vmem:[#allocation7 + $0x3] ss:$0 sm:$0xff] }
 0x387   :  { %v1328_v59 = vmul.f32 -0.5, %v6436_v10  ;;  %v1389_v13 = vpack.c.bf16 %v1361_v32, %v1360_v38  ;;  %v1306_v8 = vsel %vm6493_vm8, %v1303_v47, %v1300_v6  ;;  %vm1314_vm9 = vcmp.lt.f32.partialorder %v1313_v41, 0.0004427343 }
 0x388   :  { %v1322_v21 = vand.u32 2147483647, %v6411_v53  ;;  %v1315_v12 = vsel %vm1314_vm9, %v1312_v42, %v1309_v17  ;;  %v1346_v46 = vmul.f32 0.01, %v1306_v8  ;;  %vm1154_vm10 = vcmp.gt.f32.partialorder %v6330_v9, 20.0 }
 0x389   :  { %v4996_v15 = vpop.eup %4995  ;;  %v1347_v2 = vmul.f32 0.01, %v1315_v12  ;;  %vm1155_vm11 = vcmp.gt.f32.partialorder %v6346_v49, 20.0  ;;  %v1321_v44 = vmul.f32 %v6411_v53, %v1320_v26  ;;  %v1329_v50 = vadd.f32 1.0, %v1328_v59 }
 0x38a   :  { %v1318_v61 = vmul.f32 0.6931472, %v4996_v15  ;;  %v1362_v24 = vsel %vm1154_vm10, %v6309_v31, %v1346_v46  ;;  %vm1323_vm12 = vcmp.lt.f32.partialorder %v1322_v21, 0.0004427343  ;;  %v1331_v35 = vand.u32 2147483647, %v6436_v10 }
 0x38b   :  { %4503 = vmatmul.mubr.bf16.gmra.mrb[24].mxu1 %v1389_v13  ;;  %v1363_v43 = vsel %vm1155_vm11, %v6333_v16, %v1347_v2  ;;  %v1330_v3 = vmul.f32 %v6436_v10, %v1329_v50  ;;  %vm1156_vm14 = vcmp.gt.f32.partialorder %v6318_v23, 20.0  ;;  %vm1157_vm15 = vcmp.gt.f32.partialorder %v6339_v58, 20.0  ;;  %v4766_v10 = vld [vmem:[#allocation5 + $0x178] sm:$0xff]   ;;  %v8296_v58 = vld [vmem:[#allocation14_spill] sm:$0xff] }
 0x38c   :  { %v1390_v40 = vpack.c.bf16 %v1363_v43, %v1362_v24  ;;  %v1324_v27 = vsel %vm1323_vm12, %v1321_v44, %v1318_v61  ;;  %vm1332_vm13 = vcmp.lt.f32.partialorder %v1331_v35, 0.0004427343  ;;  %4524 = vmatprep.subr.bf16.mxu0 %v4766_v10  ;;  %v8295_v23 = vld [vmem:[#allocation13_spill] sm:$0xff] }
 0x38d   :  { %v1348_v49 = vmul.f32 0.01, %v1324_v27  ;;  %4525 = vmatpush3.bf16.msra.mxu0 %v4766_v10 }
 0x38e   :  { %v4998_v20 = vpop.eup %4997  ;;  %4506 = vmatprep.mubr.bf16.mxu1 %v1390_v40  ;;  %4542 = vmatprep.subr.bf16.mxu0 %v4767_v55 }
 0x38f   :  { %v1327_v9 = vmul.f32 0.6931472, %v4998_v20  ;;  %v1364_v31 = vsel %vm1156_vm14, %v6305_v14, %v1348_v49  ;;  %v4768_v14 = vld [vmem:[#allocation5 + $0x108] sm:$0xff]  }
 0x390   :  { %4527 = vmatmul.mubr.bf16.vlgmr.msra.gmra.mrb[32].mxu0 %v8295_v23 }
 0x391   :  { %v1333_v33 = vsel %vm1332_vm13, %v1330_v3, %v1327_v9  ;;  %4543 = vmatpush3.bf16.msra.mxu0 %v4767_v55  ;;  %4530 = vmatprep.mubr.bf16.mxu0 %v8296_v58 }
 0x392   :  { %v1349_v62 = vmul.f32 0.01, %v1333_v33  ;;  %4544 = vmatprep.subr.bf16.mxu0 %v4768_v14 }
 0x394   :  { %v1365_v16 = vsel %vm1157_vm15, %v6321_v1, %v1349_v62  ;;  %v4769_v1 = vld [vmem:[#allocation5 + $0x110] sm:$0xff]  }
 0x395   :  { %v1391_v53 = vpack.c.bf16 %v1365_v16, %v1364_v31  ;;  %4545 = vmatpush3.bf16.msra.mxu0 %v4768_v14 }
 0x396   :  { %4546 = vmatprep.subr.bf16.mxu0 %v4769_v1 }
 0x397   :  { %4507 = vmatmul.mubr.bf16.gmra.mrb[28].mxu1 %v1391_v53 }
 0x398   :  { %4531 = vmatmul.mubr.bf16.gmra.mrb[36].mxu0 %v8297_v36 }
 0x399   :  { %4547 = vmatpush3.bf16.msra.mxu0 %v4769_v1  ;;  %4534 = vmatprep.mubr.bf16.mxu0 %v8298_v60 }
 0x39a   :  { %4548 = vmatprep.subr.bf16.mxu0 %v4770_v28 }
 0x39d   :  { %4549 = vmatpush3.bf16.msra.mxu0 %v4770_v28 }
 0x39e   :  { %4550 = vmatprep.subr.bf16.mxu0 %v4771_v25 }
 0x3a0   :  { %4535 = vmatmul.mubr.bf16.gmra.mrb[40].mxu0 %v8299_v11 }
 0x3a1   :  { %4551 = vmatpush3.bf16.msra.mxu0 %v4771_v25  ;;  %4538 = vmatprep.mubr.bf16.mxu0 %v8300_v18 }
 0x3a2   :  { %4552 = vmatprep.subr.bf16.mxu0 %v4772_v39 }
 0x3a5   :  { %4553 = vmatpush3.bf16.msra.mxu0 %v4772_v39 }
 0x3a6   :  { %4554 = vmatprep.subr.bf16.mxu0 %v4773_v52 }
 0x3a8   :  { %4539 = vmatmul.mubr.bf16.gmra.mrb[44].mxu0 %v8301_v5 }
 0x3a9   :  { %4555 = vmatpush3.bf16.msra.mxu0 %v4773_v52 }
 0x3aa   :  { %4556 = vmatprep.subr.bf16.mxu0 %v4774_v0 }
 0x3ad   :  { %4557 = vmatpush3.bf16.msra.mxu0 %v4774_v0 }
 0x445   :  { %v4496_v63 = vpop.f32.mrb[16].mxu1 }
 0x446   :  { %v6526_v48 = vadd.f32 %v4496_v63, %v6523_v29  ;;  %v1478_v56 = vpop.f32.mrb[17].mxu1 }
 0x447   :  { %v6529_v30 = vadd.f32 %v6523_v29, %v1478_v56  ;;  %v4497_v34 = vpop.f32.mrb[18].mxu1 }
 0x448   :  { %v6532_v4 = vmul.f32 100.0, %v6526_v48  ;;  %v6535_v51 = vadd.f32 %v4497_v34, %v6523_v29  ;;  %v1481_v22 = vpop.f32.mrb[19].mxu1 }
 0x449   :  { %v6538_v41 = vmul.f32 100.0, %v6529_v30  ;;  %v6545_v45 = vadd.f32 %v6523_v29, %v1481_v22 }
 0x44a   :  { %v1559_v19 = vmin.f32 %v6532_v4, 20.0  ;;  %v6542_v7 = vmul.f32 100.0, %v6535_v51  ;;  %vm1575_vm0 = vcmp.gt.f32.partialorder %v6532_v4, 20.0 }
 0x44b   :  { %v1557_v57 = vmin.f32 %v6538_v41, 20.0  ;;  %v6550_v26 = vmul.f32 100.0, %v6545_v45  ;;  %vm1573_vm5 = vcmp.gt.f32.partialorder %v6538_v41, 20.0 }
 0x44c   :  { %v1593_v6 = vmul.f32 1.442695, %v1559_v19  ;;  %v1560_v47 = vmin.f32 %v6542_v7, 20.0  ;;  %vm1576_vm3 = vcmp.gt.f32.partialorder %v6542_v7, 20.0 }
 0x44d   :  { %v1589_v38 = vmul.f32 1.442695, %v1557_v57  ;;  %v1558_v32 = vmin.f32 %v6550_v26, 20.0  ;;  %vm1574_vm6 = vcmp.gt.f32.partialorder %v6550_v26, 20.0 }
 0x44e   :  { %4999 = vpow2.f32 %v1593_v6  ;;  %v1595_v42 = vmul.f32 1.442695, %v1560_v47 }
 0x44f   :  { %v1591_v8 = vmul.f32 1.442695, %v1558_v32 }
 0x450   :  { %5001 = vpow2.f32 %v1595_v42 }
 0x451   :  { %5003 = vpow2.f32 %v1589_v38 }
 0x452   :  { %5005 = vpow2.f32 %v1591_v8 }
 0x456   :  { %v4500_v17 = vpop.f32.mrb[20].mxu1 }
 0x457   :  { %v6554_v59 = vadd.f32 %v4500_v17, %v6523_v29  ;;  %v1494_v13 = vpop.f32.mrb[21].mxu1 }
 0x458   :  { %v6557_v21 = vadd.f32 %v6523_v29, %v1494_v13  ;;  %v4501_v12 = vpop.f32.mrb[22].mxu1  ;;  %v5000_v15 = vpop.eup %4999 }
 0x459   :  { %v1497_v46 = vpop.f32.mrb[23].mxu1  ;;  %v6560_v2 = vmul.f32 100.0, %v6554_v59  ;;  %v6563_v61 = vadd.f32 %v4501_v12, %v6523_v29  ;;  %v1639_v44 = vadd.f32 1.0, %v5000_v15  ;;  %v1642_v43 = vmul.f32 -0.5, %v5000_v15 }
 0x45a   :  { %v6566_v50 = vmul.f32 100.0, %v6557_v21  ;;  %v5002_v24 = vpop.eup %5001  ;;  %v6569_v40 = vadd.f32 %v6523_v29, %v1497_v46  ;;  %v1645_v62 = vand.u32 2147483647, %v5000_v15 }
 0x45b   :  { %5007 = vlog2.f32 %v1639_v44  ;;  %v1648_v35 = vadd.f32 1.0, %v5002_v24  ;;  %v1563_v27 = vmin.f32 %v6560_v2, 20.0  ;;  %v6573_v20 = vmul.f32 100.0, %v6563_v61  ;;  %v6575_v9 = vpop.eup %5003 }
 0x45c   :  { %v1561_v3 = vmin.f32 %v6566_v50, 20.0  ;;  %v1643_v33 = vadd.f32 1.0, %v1642_v43  ;;  %v1651_v16 = vmul.f32 -0.5, %v5002_v24  ;;  %v6579_v53 = vmul.f32 100.0, %v6569_v40  ;;  %v6607_v56 = vpop.eup %5005 }
 0x45d   :  { %5009 = vlog2.f32 %v1648_v35  ;;  %v1601_v55 = vmul.f32 1.442695, %v1563_v27  ;;  %v1564_v23 = vmin.f32 %v6573_v20, 20.0  ;;  %v1621_v1 = vadd.f32 1.0, %v6575_v9 }
 0x45e   :  { %v4504_v49 = vpop.f32.mrb[24].mxu1  ;;  %v1597_v36 = vmul.f32 1.442695, %v1561_v3  ;;  %v1562_v60 = vmin.f32 %v6579_v53, 20.0  ;;  %v1624_v39 = vmul.f32 -0.5, %v6575_v9  ;;  %v1652_v52 = vadd.f32 1.0, %v1651_v16 }
 0x45f   :  { %v1510_v31 = vpop.f32.mrb[25].mxu1  ;;  %v6582_v54 = vadd.f32 %v4504_v49, %v6523_v29  ;;  %5011 = vlog2.f32 %v1621_v1  ;;  %v1654_v0 = vand.u32 2147483647, %v5002_v24  ;;  %vm6610_vm1 = vcmp.lt.f32.partialorder %v1645_v62, 0.0004427343 }
 0x460   :  { %v6585_v37 = vadd.f32 %v6523_v29, %v1510_v31  ;;  %v4505_v10 = vpop.f32.mrb[26].mxu1  ;;  %v1599_v5 = vmul.f32 1.442695, %v1562_v60  ;;  %v1644_v6 = vmul.f32 %v5000_v15, %v1643_v33  ;;  %5013 = vpow2.f32 %v1597_v36 }
 0x461   :  { %v6589_v58 = vadd.f32 %v4505_v10, %v6523_v29  ;;  %v1513_v14 = vpop.f32.mrb[27].mxu1  ;;  %v6594_v28 = vmul.f32 100.0, %v6582_v54  ;;  %v1603_v47 = vmul.f32 1.442695, %v1564_v23  ;;  %5015 = vpow2.f32 %v1601_v55 }
 0x462   :  { %v6597_v25 = vmul.f32 100.0, %v6585_v37  ;;  %v6603_v18 = vadd.f32 %v6523_v29, %v1513_v14  ;;  %v1625_v17 = vadd.f32 1.0, %v1624_v39  ;;  %v1653_v8 = vmul.f32 %v5002_v24, %v1652_v52 }
 0x463   :  { %v6600_v11 = vmul.f32 100.0, %v6589_v58  ;;  %v1567_v22 = vmin.f32 %v6594_v28, 20.0  ;;  %vm6619_vm2 = vcmp.lt.f32.partialorder %v1654_v0, 0.0004427343  ;;  %5017 = vpow2.f32 %v1599_v5 }
 0x464   :  { %v1565_v63 = vmin.f32 %v6597_v25, 20.0  ;;  %v6616_v19 = vmul.f32 100.0, %v6603_v18  ;;  %v1630_v46 = vadd.f32 1.0, %v6607_v56  ;;  %5019 = vpow2.f32 %v1603_v47 }
 0x465   :  { %v5008_v57 = vpop.eup %5007  ;;  %v1568_v42 = vmin.f32 %v6600_v11, 20.0  ;;  %v1609_v43 = vmul.f32 1.442695, %v1567_v22  ;;  %v1626_v31 = vmul.f32 %v6575_v9, %v1625_v17  ;;  %v1627_v23 = vand.u32 2147483647, %v6575_v9 }
 0x466   :  { %v1641_v38 = vmul.f32 0.6931472, %v5008_v57  ;;  %v1605_v32 = vmul.f32 1.442695, %v1565_v63  ;;  %v1566_v35 = vmin.f32 %v6616_v19, 20.0  ;;  %v1633_v22 = vmul.f32 -0.5, %v6607_v56 }
 0x467   :  { %v5010_v13 = vpop.eup %5009  ;;  %v1611_v3 = vmul.f32 1.442695, %v1568_v42  ;;  %vm6671_vm4 = vcmp.lt.f32.partialorder %v1627_v23, 0.0004427343  ;;  %vm1577_vm9 = vcmp.gt.f32.partialorder %v6566_v50, 20.0  ;;  %vm1578_vm11 = vcmp.gt.f32.partialorder %v6579_v53, 20.0 }
 0x468   :  { %v1647_v15 = vsel %vm6610_vm1, %v1644_v6, %v1641_v38  ;;  %v1650_v44 = vmul.f32 0.6931472, %v5010_v13  ;;  %5021 = vpow2.f32 %v1605_v32  ;;  %v1607_v36 = vmul.f32 1.442695, %v1566_v35 }
 0x469   :  { %v1767_v27 = vmul.f32 0.01, %v1647_v15  ;;  %5023 = vlog2.f32 %v1630_v46  ;;  %v5012_v14 = vpop.eup %5011  ;;  %v1634_v46 = vadd.f32 1.0, %v1633_v22  ;;  %vm1579_vm14 = vcmp.gt.f32.partialorder %v6560_v2, 20.0 }
 0x46a   :  { %v4508_v24 = vpop.f32.mrb[28].mxu1  ;;  %v1656_v49 = vsel %vm6619_vm2, %v1653_v8, %v1650_v44  ;;  %v5014_v7 = vpop.eup %5013  ;;  %5025 = vpow2.f32 %v1607_v36  ;;  %v1636_v8 = vand.u32 2147483647, %v6607_v56  ;;  %vm1580_vm15 = vcmp.gt.f32.partialorder %v6573_v20, 20.0 }
 0x46b   :  { %v6631_v33 = vadd.f32 %v4508_v24, %v6523_v29  ;;  %v1526_v62 = vpop.f32.mrb[29].mxu1  ;;  %v1768_v16 = vmul.f32 0.01, %v1656_v49  ;;  %v6641_v1 = vsel %vm1575_vm0, %v6526_v48, %v1767_v27  ;;  %v1623_v48 = vmul.f32 0.6931472, %v5012_v14  ;;  %v6675_v6 = vpop.eup %5015 }
 0x46c   :  { %v6635_v10 = vadd.f32 %v6523_v29, %v1526_v62  ;;  %v4509_v55 = vpop.f32.mrb[30].mxu1  ;;  %5027 = vpow2.f32 %v1609_v43  ;;  %v1657_v15 = vadd.f32 1.0, %v5014_v7  ;;  %v1660_v27 = vmul.f32 -0.5, %v5014_v7 }
 0x46d   :  { %v6644_v60 = vmul.f32 100.0, %v6631_v33  ;;  %v6647_v39 = vadd.f32 %v4509_v55, %v6523_v29  ;;  %v1529_v52 = vpop.f32.mrb[31].mxu1  ;;  %v6652_v0 = vsel %vm1576_vm3, %v6535_v51, %v1768_v16  ;;  %v1629_v38 = vsel %vm6671_vm4, %v1626_v31, %v1623_v48  ;;  %v6680_v32 = vpop.eup %5017 }
 0x46e   :  { %v6655_v9 = vmul.f32 100.0, %v6635_v10  ;;  %v6658_v4 = vadd.f32 %v6523_v29, %v1529_v52  ;;  %v1833_v5 = vpack.c.bf16 %v6652_v0, %v6641_v1  ;;  %5029 = vpow2.f32 %v1611_v3  ;;  %v6684_v44 = vpop.eup %5019 }
 0x46f   :  { %v1571_v63 = vmin.f32 %v6644_v60, 20.0  ;;  %v6664_v34 = vmul.f32 100.0, %v6647_v39  ;;  %v1765_v35 = vmul.f32 0.01, %v1629_v38  ;;  %v1666_v43 = vadd.f32 1.0, %v6680_v32 }
 0x470   :  { %v1569_v51 = vmin.f32 %v6655_v9, 20.0  ;;  %v6669_v57 = vmul.f32 100.0, %v6658_v4  ;;  %vm1637_vm7 = vcmp.lt.f32.partialorder %v1636_v8, 0.0004427343  ;;  %v1675_v62 = vadd.f32 1.0, %v6675_v6 }
 0x471   :  { %v1617_v47 = vmul.f32 1.442695, %v1571_v63  ;;  %v1572_v42 = vmin.f32 %v6664_v34, 20.0  ;;  %v1635_v16 = vmul.f32 %v6607_v56, %v1634_v46  ;;  %v1669_v55 = vmul.f32 -0.5, %v6680_v32 }
 0x472   :  { %v1613_v17 = vmul.f32 1.442695, %v1569_v51  ;;  %v1570_v13 = vmin.f32 %v6669_v57, 20.0  ;;  %v6686_v24 = vpop.eup %5021  ;;  %v1781_v23 = vsel %vm1573_vm5, %v6529_v30, %v1765_v35  ;;  %v1661_v41 = vadd.f32 1.0, %v1660_v27 }
 0x473   :  { %v1619_v12 = vmul.f32 1.442695, %v1572_v42  ;;  %5031 = vpow2.f32 %v1617_v47  ;;  %v5024_v49 = vpop.eup %5023  ;;  %v1663_v14 = vand.u32 2147483647, %v5014_v7  ;;  %v1678_v52 = vmul.f32 -0.5, %v6675_v6 }
 0x474   :  { %5033 = vpow2.f32 %v1613_v17  ;;  %v1615_v3 = vmul.f32 1.442695, %v1570_v13  ;;  %v1632_v31 = vmul.f32 0.6931472, %v5024_v49  ;;  %v1684_v48 = vadd.f32 1.0, %v6684_v44  ;;  %v6699_v51 = vpop.eup %5025 }
 0x475   :  { %5035 = vpow2.f32 %v1619_v12  ;;  %v1672_v22 = vand.u32 2147483647, %v6680_v32  ;;  %v1687_v56 = vmul.f32 -0.5, %v6684_v44  ;;  %v1670_v29 = vadd.f32 1.0, %v1669_v55 }
 0x476   :  { %5037 = vlog2.f32 %v1657_v15  ;;  %v1638_v36 = vsel %vm1637_vm7, %v1635_v16, %v1632_v31  ;;  %v1693_v30 = vadd.f32 1.0, %v6686_v24  ;;  %v1696_v47 = vmul.f32 -0.5, %v6686_v24  ;;  %v6703_v42 = vpop.eup %5027 }
 0x477   :  { %5039 = vlog2.f32 %v1666_v43  ;;  %v1766_v63 = vmul.f32 0.01, %v1638_v36  ;;  %v1662_v17 = vmul.f32 %v5014_v7, %v1661_v41  ;;  %vm6708_vm8 = vcmp.lt.f32.partialorder %v1663_v14, 0.0004427343 }
 0x478   :  { %5041 = vlog2.f32 %v1675_v62  ;;  %v1681_v8 = vand.u32 2147483647, %v6675_v6  ;;  %v6713_v12 = vpop.eup %5029  ;;  %v1679_v15 = vadd.f32 1.0, %v1678_v52  ;;  %v1690_v35 = vand.u32 2147483647, %v6684_v44 }
 0x479   :  { %5043 = vpow2.f32 %v1615_v3  ;;  %v1782_v38 = vsel %vm1574_vm6, %v6545_v45, %v1766_v63  ;;  %vm6719_vm10 = vcmp.lt.f32.partialorder %v1672_v22, 0.0004427343  ;;  %v1688_v26 = vadd.f32 1.0, %v1687_v56 }
 0x47a   :  { %5045 = vlog2.f32 %v1684_v48  ;;  %v1832_v46 = vpack.c.bf16 %v1782_v38, %v1781_v23  ;;  %v1699_v7 = vand.u32 2147483647, %v6686_v24  ;;  %v1702_v43 = vadd.f32 1.0, %v6699_v51 }
 0x47b   :  { %5047 = vlog2.f32 %v1693_v30  ;;  %v1671_v3 = vmul.f32 %v6680_v32, %v1670_v29  ;;  %v1697_v62 = vadd.f32 1.0, %v1696_v47  ;;  %v1705_v31 = vmul.f32 -0.5, %v6699_v51 }
 0x47c   :  { %4558 = vmatprep.mubr.bf16.mxu0 %v1832_v46  ;;  %v1711_v16 = vadd.f32 1.0, %v6703_v42  ;;  %5049 = vlog2.f32 %v1702_v43  ;;  %v1708_v23 = vand.u32 2147483647, %v6699_v51  ;;  %v1714_v41 = vmul.f32 -0.5, %v6703_v42 }
 0x47d   :  { %v6716_v27 = vpop.eup %5031  ;;  %4559 = vmatmul.mubr.bf16.vlgmr.msra.gmra.mrb[32].mxu0 %v1833_v5  ;;  %v1720_v14 = vadd.f32 1.0, %v6713_v12  ;;  %v1680_v32 = vmul.f32 %v6675_v6, %v1679_v15  ;;  %vm6740_vm12 = vcmp.lt.f32.partialorder %v1681_v8, 0.0004427343  ;;  %vm6744_vm13 = vcmp.lt.f32.partialorder %v1690_v35, 0.0004427343 }
 0x47e   :  { %v6725_v49 = vpop.eup %5033  ;;  %5051 = vlog2.f32 %v1711_v16  ;;  %v1689_v5 = vmul.f32 %v6684_v44, %v1688_v26  ;;  %vm6751_vm0 = vcmp.lt.f32.partialorder %v1699_v7, 0.0004427343  ;;  %v1698_v56 = vmul.f32 %v6686_v24, %v1697_v62 }
 0x47f   :  { %v6731_v55 = vpop.eup %5035  ;;  %5053 = vlog2.f32 %v1720_v14  ;;  %v1706_v29 = vadd.f32 1.0, %v1705_v31  ;;  %v1717_v30 = vand.u32 2147483647, %v6703_v42  ;;  %vm6761_vm1 = vcmp.lt.f32.partialorder %v1708_v23, 0.0004427343 }
 0x480   :  { %v5038_v36 = vpop.eup %5037  ;;  %v1715_v46 = vadd.f32 1.0, %v1714_v41  ;;  %v1729_v15 = vadd.f32 1.0, %v6725_v49  ;;  %v1723_v7 = vmul.f32 -0.5, %v6713_v12  ;;  %v1732_v43 = vmul.f32 -0.5, %v6725_v49 }
 0x481   :  { %v5040_v1 = vpop.eup %5039  ;;  %v1659_v0 = vmul.f32 0.6931472, %v5038_v36  ;;  %vm1581_vm2 = vcmp.gt.f32.partialorder %v6597_v25, 20.0  ;;  %vm1582_vm3 = vcmp.gt.f32.partialorder %v6616_v19, 20.0  ;;  %v1707_v16 = vmul.f32 %v6699_v51, %v1706_v29 }
 0x482   :  { %v5042_v6 = vpop.eup %5041  ;;  %v1668_v22 = vmul.f32 0.6931472, %v5040_v1  ;;  %5055 = vlog2.f32 %v1729_v15  ;;  %vm6778_vm4 = vcmp.lt.f32.partialorder %v1717_v30, 0.0004427343  ;;  %vm1583_vm5 = vcmp.gt.f32.partialorder %v6594_v28, 20.0 }
 0x483   :  { %v6757_v47 = vpop.eup %5043  ;;  %v1665_v38 = vsel %vm6708_vm8, %v1662_v17, %v1659_v0  ;;  %v1677_v8 = vmul.f32 0.6931472, %v5042_v6  ;;  %vm1584_vm6 = vcmp.gt.f32.partialorder %v6600_v11, 20.0  ;;  %v1716_v51 = vmul.f32 %v6703_v42, %v1715_v46 }
 0x484   :  { %v5046_v35 = vpop.eup %5045  ;;  %v1674_v24 = vsel %vm6719_vm10, %v1671_v3, %v1668_v22  ;;  %v1769_v26 = vmul.f32 0.01, %v1665_v38  ;;  %v1724_v52 = vadd.f32 1.0, %v1723_v7  ;;  %v1733_v48 = vadd.f32 1.0, %v1732_v43 }
 0x485   :  { %v1770_v62 = vmul.f32 0.01, %v1674_v24  ;;  %v1683_v17 = vsel %vm6740_vm12, %v1680_v32, %v1677_v8  ;;  %v1686_v13 = vmul.f32 0.6931472, %v5046_v35  ;;  %v5048_v31 = vpop.eup %5047  ;;  %v1738_v32 = vadd.f32 1.0, %v6757_v47 }
 0x486   :  { %v1785_v45 = vsel %vm1577_vm9, %v6557_v21, %v1769_v26  ;;  %v1771_v3 = vmul.f32 0.01, %v1683_v17  ;;  %v1695_v36 = vmul.f32 0.6931472, %v5048_v31  ;;  %v5050_v1 = vpop.eup %5049  ;;  %v1735_v22 = vand.u32 2147483647, %v6725_v49 }
 0x487   :  { %v1786_v41 = vsel %vm1578_vm11, %v6569_v40, %v1770_v62  ;;  %v1692_v14 = vsel %vm6744_vm13, %v1689_v5, %v1686_v13  ;;  %v1726_v40 = vand.u32 2147483647, %v6713_v12  ;;  %5057 = vlog2.f32 %v1738_v32 }
 0x488   :  { %v1834_v21 = vpack.c.bf16 %v1786_v41, %v1785_v45  ;;  %v1772_v50 = vmul.f32 0.01, %v1692_v14  ;;  %v1701_v53 = vsel %vm6751_vm0, %v1698_v56, %v1695_v36  ;;  %v5052_v0 = vpop.eup %5051  ;;  %v1787_v5 = vsel %vm1579_vm14, %v6554_v59, %v1771_v3 }
 0x489   :  { %v1704_v42 = vmul.f32 0.6931472, %v5050_v1  ;;  %v5054_v29 = vpop.eup %5053  ;;  %v1773_v56 = vmul.f32 0.01, %v1701_v53  ;;  %v1713_v30 = vmul.f32 0.6931472, %v5052_v0  ;;  %v1725_v2 = vmul.f32 %v6713_v12, %v1724_v52 }
 0x48a   :  { %4562 = vmatprep.mubr.bf16.mxu0 %v1834_v21  ;;  %v1788_v6 = vsel %vm1580_vm15, %v6563_v61, %v1772_v50  ;;  %v1747_v38 = vadd.f32 1.0, %v6716_v27  ;;  %v1722_v46 = vmul.f32 0.6931472, %v5054_v29  ;;  %v1741_v59 = vmul.f32 -0.5, %v6757_v47  ;;  %v6844_v29 = vld [vmem:[#allocation7 + $0x4] ss:$0 sm:$0xff] }
 0x48b   :  { %v1835_v63 = vpack.c.bf16 %v1788_v6, %v1787_v5  ;;  %v1710_v8 = vsel %vm6761_vm1, %v1707_v16, %v1704_v42  ;;  %v1719_v61 = vsel %vm6778_vm4, %v1716_v51, %v1713_v30  ;;  %vm1727_vm7 = vcmp.lt.f32.partialorder %v1726_v40, 0.0004427343  ;;  %v4775_v6 = vld [vmem:[#allocation5 + $0x180] sm:$0xff]   ;;  %v4776_v42 = vld [vmem:[#allocation5 + $0x188] sm:$0xff]  }
 0x48c   :  { %v1774_v20 = vmul.f32 0.01, %v1710_v8  ;;  %5059 = vlog2.f32 %v1747_v38  ;;  %v1728_v15 = vsel %vm1727_vm7, %v1725_v2, %v1722_v46  ;;  %v1775_v35 = vmul.f32 0.01, %v1719_v61  ;;  %v5056_v44 = vpop.eup %5055  ;;  %4574 = vmatprep.subr.bf16.mxu1 %v4775_v6 }
 0x48d   :  { %4563 = vmatmul.mubr.bf16.gmra.mrb[36].mxu0 %v1835_v63  ;;  %v1734_v24 = vmul.f32 %v6725_v49, %v1733_v48  ;;  %vm6809_vm8 = vcmp.lt.f32.partialorder %v1735_v22, 0.0004427343  ;;  %v1789_v12 = vsel %vm1581_vm2, %v6585_v37, %v1773_v56  ;;  %v1776_v43 = vmul.f32 0.01, %v1728_v15  ;;  %4575 = vmatpush3.bf16.msra.mxu1 %v4775_v6  ;;  %v4778_v22 = vld [vmem:[#allocation5 + $0x198] sm:$0xff]  }
 0x48e   :  { %v1790_v7 = vsel %vm1582_vm3, %v6603_v18, %v1774_v20  ;;  %v1756_v62 = vadd.f32 1.0, %v6731_v55  ;;  %v1731_v13 = vmul.f32 0.6931472, %v5056_v44  ;;  %v1742_v31 = vadd.f32 1.0, %v1741_v59  ;;  %4576 = vmatprep.subr.bf16.mxu1 %v4776_v42 }
 0x48f   :  { %v1836_v17 = vpack.c.bf16 %v1790_v7, %v1789_v12  ;;  %v1750_v49 = vmul.f32 -0.5, %v6716_v27  ;;  %v1791_v45 = vsel %vm1583_vm5, %v6582_v54, %v1775_v35  ;;  %v1792_v37 = vsel %vm1584_vm6, %v6589_v58, %v1776_v43 }
 0x490   :  { %v1744_v25 = vand.u32 2147483647, %v6757_v47  ;;  %5061 = vlog2.f32 %v1756_v62  ;;  %v1837_v18 = vpack.c.bf16 %v1792_v37, %v1791_v45  ;;  %v1737_v19 = vsel %vm6809_vm8, %v1734_v24, %v1731_v13 }
 0x491   :  { %4566 = vmatprep.mubr.bf16.mxu0 %v1836_v17  ;;  %v5058_v3 = vpop.eup %5057  ;;  %v1743_v23 = vmul.f32 %v6757_v47, %v1742_v31  ;;  %v1751_v41 = vadd.f32 1.0, %v1750_v49  ;;  %v1759_v28 = vmul.f32 -0.5, %v6731_v55  ;;  %v1777_v54 = vmul.f32 0.01, %v1737_v19  ;;  %4577 = vmatpush3.bf16.msra.mxu1 %v4776_v42 }
 0x492   :  { %v1740_v16 = vmul.f32 0.6931472, %v5058_v3  ;;  %vm1745_vm9 = vcmp.lt.f32.partialorder %v1744_v25, 0.0004427343  ;;  %v1753_v58 = vand.u32 2147483647, %v6716_v27 }
 0x493   :  { %vm1585_vm10 = vcmp.gt.f32.partialorder %v6655_v9, 20.0  ;;  %vm1586_vm11 = vcmp.gt.f32.partialorder %v6669_v57, 20.0  ;;  %v1752_v21 = vmul.f32 %v6716_v27, %v1751_v41  ;;  %v1760_v50 = vadd.f32 1.0, %v1759_v28 }
 0x494   :  { %v1746_v11 = vsel %vm1745_vm9, %v1743_v23, %v1740_v16  ;;  %v1793_v47 = vsel %vm1585_vm10, %v6635_v10, %v1777_v54  ;;  %vm1754_vm12 = vcmp.lt.f32.partialorder %v1753_v58, 0.0004427343  ;;  %v1762_v52 = vand.u32 2147483647, %v6731_v55 }
 0x495   :  { %4567 = vmatmul.mubr.bf16.gmra.mrb[40].mxu0 %v1837_v18  ;;  %v1778_v36 = vmul.f32 0.01, %v1746_v11  ;;  %v1761_v9 = vmul.f32 %v6731_v55, %v1760_v50  ;;  %vm1587_vm14 = vcmp.gt.f32.partialorder %v6644_v60, 20.0  ;;  %vm1588_vm15 = vcmp.gt.f32.partialorder %v6664_v34, 20.0  ;;  %v4777_v55 = vld [vmem:[#allocation5 + $0x190] sm:$0xff]   ;;  %v4779_v60 = vld [vmem:[#allocation5 + $0x1a0] sm:$0xff]  }
 0x496   :  { %v5060_v14 = vpop.eup %5059  ;;  %vm1763_vm13 = vcmp.lt.f32.partialorder %v1762_v52, 0.0004427343  ;;  %4578 = vmatprep.subr.bf16.mxu1 %v4777_v55  ;;  %v4782_v34 = vld [vmem:[#allocation5 + $0x1b8] sm:$0xff]  }
 0x497   :  { %v1749_v32 = vmul.f32 0.6931472, %v5060_v14  ;;  %v1794_v51 = vsel %vm1586_vm11, %v6658_v4, %v1778_v36  ;;  %4579 = vmatpush3.bf16.msra.mxu1 %v4777_v55 }
 0x498   :  { %v1838_v1 = vpack.c.bf16 %v1794_v51, %v1793_v47  ;;  %4580 = vmatprep.subr.bf16.mxu1 %v4778_v22 }
 0x499   :  { %v1755_v53 = vsel %vm1754_vm12, %v1752_v21, %v1749_v32 }
 0x49a   :  { %v5062_v40 = vpop.eup %5061  ;;  %4570 = vmatprep.mubr.bf16.mxu0 %v1838_v1  ;;  %v1779_v57 = vmul.f32 0.01, %v1755_v53 }
 0x49b   :  { %v1758_v48 = vmul.f32 0.6931472, %v5062_v40  ;;  %4581 = vmatpush3.bf16.msra.mxu1 %v4778_v22 }
 0x49c   :  { %v1795_v10 = vsel %vm1587_vm14, %v6631_v33, %v1779_v57  ;;  %4582 = vmatprep.subr.bf16.mxu1 %v4779_v60  ;;  %v4780_v33 = vld [vmem:[#allocation5 + $0x1a8] sm:$0xff]  }
 0x49d   :  { %v1764_v0 = vsel %vm1763_vm13, %v1761_v9, %v1758_v48 }
 0x49e   :  { %v1780_v5 = vmul.f32 0.01, %v1764_v0 }
 0x49f   :  { %4583 = vmatpush3.bf16.msra.mxu1 %v4779_v60 }
 0x4a0   :  { %v1796_v4 = vsel %vm1588_vm15, %v6647_v39, %v1780_v5  ;;  %4584 = vmatprep.subr.bf16.mxu1 %v4780_v33  ;;  %v4781_v39 = vld [vmem:[#allocation5 + $0x1b0] sm:$0xff]  }
 0x4a1   :  { %v1839_v27 = vpack.c.bf16 %v1796_v4, %v1795_v10 }
 0x4a3   :  { %4571 = vmatmul.mubr.bf16.gmra.mrb[44].mxu0 %v1839_v27  ;;  %4585 = vmatpush3.bf16.msra.mxu1 %v4780_v33 }
 0x4a4   :  { %4586 = vmatprep.subr.bf16.mxu1 %v4781_v39 }
 0x4a7   :  { %4587 = vmatpush3.bf16.msra.mxu1 %v4781_v39 }
 0x4a8   :  { %4588 = vmatprep.subr.bf16.mxu1 %v4782_v34 }
 0x4ab   :  { %4589 = vmatpush3.bf16.msra.mxu1 %v4782_v34 }
 0x550   :  { %v4560_v63 = vpop.f32.mrb[32].mxu0 }
 0x551   :  { %v2132_v56 = vmul.f32 0.70710677, %v4560_v63  ;;  %v2067_v30 = vpop.f32.mrb[33].mxu0 }
 0x552   :  { %v2130_v38 = vmul.f32 0.70710677, %v2067_v30  ;;  %v4561_v8 = vpop.f32.mrb[34].mxu0 }
 0x553   :  { %v6847_v46 = vadd.f32 %v6844_v29, %v2132_v56  ;;  %v2133_v2 = vmul.f32 0.70710677, %v4561_v8  ;;  %v2070_v59 = vpop.f32.mrb[35].mxu0 }
 0x554   :  { %v6850_v20 = vadd.f32 %v6844_v29, %v2130_v38  ;;  %v2131_v61 = vmul.f32 0.70710677, %v2070_v59 }
 0x555   :  { %v6853_v15 = vmul.f32 100.0, %v6847_v46  ;;  %v6856_v35 = vadd.f32 %v6844_v29, %v2133_v2 }
 0x556   :  { %v6859_v24 = vmul.f32 100.0, %v6850_v20  ;;  %v6866_v12 = vadd.f32 %v6844_v29, %v2131_v61 }
 0x557   :  { %v2184_v26 = vmin.f32 %v6853_v15, 20.0  ;;  %v6863_v44 = vmul.f32 100.0, %v6856_v35  ;;  %vm2200_vm0 = vcmp.gt.f32.partialorder %v6853_v15, 20.0 }
 0x558   :  { %v2182_v43 = vmin.f32 %v6859_v24, 20.0  ;;  %v6871_v13 = vmul.f32 100.0, %v6866_v12  ;;  %vm2198_vm5 = vcmp.gt.f32.partialorder %v6859_v24, 20.0 }
 0x559   :  { %v2218_v7 = vmul.f32 1.442695, %v2184_v26  ;;  %v2185_v62 = vmin.f32 %v6863_v44, 20.0  ;;  %vm2201_vm1 = vcmp.gt.f32.partialorder %v6863_v44, 20.0 }
 0x55a   :  { %v2214_v31 = vmul.f32 1.442695, %v2182_v43  ;;  %v2183_v45 = vmin.f32 %v6871_v13, 20.0  ;;  %vm2199_vm6 = vcmp.gt.f32.partialorder %v6871_v13, 20.0 }
 0x55b   :  { %5063 = vpow2.f32 %v2218_v7  ;;  %v2220_v17 = vmul.f32 1.442695, %v2185_v62 }
 0x55c   :  { %v2216_v28 = vmul.f32 1.442695, %v2183_v45 }
 0x55d   :  { %5065 = vpow2.f32 %v2220_v17 }
 0x55e   :  { %5067 = vpow2.f32 %v2214_v31 }
 0x55f   :  { %5069 = vpow2.f32 %v2216_v28 }
 0x560   :  { %v4564_v49 = vpop.f32.mrb[36].mxu0 }
 0x561   :  { %v2083_v37 = vpop.f32.mrb[37].mxu0  ;;  %v2136_v25 = vmul.f32 0.70710677, %v4564_v49 }
 0x562   :  { %v2134_v18 = vmul.f32 0.70710677, %v2083_v37  ;;  %v4565_v19 = vpop.f32.mrb[38].mxu0 }
 0x563   :  { %v2086_v3 = vpop.f32.mrb[39].mxu0  ;;  %v2137_v23 = vmul.f32 0.70710677, %v4565_v19  ;;  %v6878_v54 = vadd.f32 %v6844_v29, %v2136_v25 }
 0x564   :  { %v6875_v16 = vadd.f32 %v6844_v29, %v2134_v18  ;;  %v2135_v41 = vmul.f32 0.70710677, %v2086_v3 }
 0x565   :  { %v5064_v11 = vpop.eup %5063  ;;  %v6884_v36 = vadd.f32 %v6844_v29, %v2137_v23  ;;  %v6891_v1 = vmul.f32 100.0, %v6878_v54 }
 0x566   :  { %v6881_v58 = vmul.f32 100.0, %v6875_v16  ;;  %v2264_v14 = vadd.f32 1.0, %v5064_v11  ;;  %v6887_v32 = vadd.f32 %v6844_v29, %v2135_v41  ;;  %v2267_v48 = vmul.f32 -0.5, %v5064_v11 }
 0x567   :  { %v5066_v50 = vpop.eup %5065  ;;  %v6894_v9 = vmul.f32 100.0, %v6884_v36  ;;  %v2188_v27 = vmin.f32 %v6891_v1, 20.0  ;;  %v2270_v55 = vand.u32 2147483647, %v5064_v11  ;;  %vm2204_vm12 = vcmp.gt.f32.partialorder %v6891_v1, 20.0 }
 0x568   :  { %v4568_v21 = vpop.f32.mrb[40].mxu0  ;;  %v2186_v47 = vmin.f32 %v6881_v58, 20.0  ;;  %5071 = vlog2.f32 %v2264_v14  ;;  %v2273_v52 = vadd.f32 1.0, %v5066_v50  ;;  %v6897_v57 = vmul.f32 100.0, %v6887_v32  ;;  %v6899_v0 = vpop.eup %5067 }
 0x569   :  { %v2099_v51 = vpop.f32.mrb[41].mxu0  ;;  %v2140_v10 = vmul.f32 0.70710677, %v4568_v21  ;;  %v2276_v4 = vmul.f32 -0.5, %v5066_v50  ;;  %v2268_v39 = vadd.f32 1.0, %v2267_v48  ;;  %v2189_v34 = vmin.f32 %v6894_v9, 20.0  ;;  %v6921_v7 = vpop.eup %5069 }
 0x56a   :  { %v4569_v53 = vpop.f32.mrb[42].mxu0  ;;  %5073 = vlog2.f32 %v2273_v52  ;;  %v2222_v5 = vmul.f32 1.442695, %v2186_v47  ;;  %v2187_v6 = vmin.f32 %v6897_v57, 20.0  ;;  %v2138_v42 = vmul.f32 0.70710677, %v2099_v51 }
 0x56b   :  { %v2102_v40 = vpop.f32.mrb[43].mxu0  ;;  %v6904_v22 = vadd.f32 %v6844_v29, %v2140_v10  ;;  %v2141_v60 = vmul.f32 0.70710677, %v4569_v53  ;;  %v2246_v56 = vadd.f32 1.0, %v6899_v0  ;;  %v2279_v30 = vand.u32 2147483647, %v5066_v50 }
 0x56c   :  { %v2139_v33 = vmul.f32 0.70710677, %v2102_v40  ;;  %v6908_v63 = vadd.f32 %v6844_v29, %v2138_v42  ;;  %5075 = vpow2.f32 %v2222_v5  ;;  %v2277_v2 = vadd.f32 1.0, %v2276_v4 }
 0x56d   :  { %v6912_v38 = vmul.f32 100.0, %v6904_v22  ;;  %v2224_v59 = vmul.f32 1.442695, %v2187_v6  ;;  %v2249_v26 = vmul.f32 -0.5, %v6899_v0  ;;  %v2226_v43 = vmul.f32 1.442695, %v2188_v27 }
 0x56e   :  { %v6915_v8 = vadd.f32 %v6844_v29, %v2139_v33  ;;  %v6918_v61 = vmul.f32 100.0, %v6908_v63  ;;  %v6926_v62 = vadd.f32 %v6844_v29, %v2141_v60  ;;  %v2269_v49 = vmul.f32 %v5064_v11, %v2268_v39 }
 0x56f   :  { %vm6931_vm2 = vcmp.lt.f32.partialorder %v2270_v55, 0.0004427343  ;;  %v2228_v37 = vmul.f32 1.442695, %v2189_v34  ;;  %5077 = vlog2.f32 %v2246_v56  ;;  %vm6935_vm3 = vcmp.lt.f32.partialorder %v2279_v30, 0.0004427343 }
 0x570   :  { %v6929_v17 = vmul.f32 100.0, %v6915_v8  ;;  %v2192_v19 = vmin.f32 %v6912_v38, 20.0  ;;  %v2190_v3 = vmin.f32 %v6918_v61, 20.0  ;;  %v2278_v41 = vmul.f32 %v5066_v50, %v2277_v2 }
 0x571   :  { %5079 = vpow2.f32 %v2224_v59  ;;  %v2250_v11 = vadd.f32 1.0, %v2249_v26  ;;  %v6945_v47 = vmul.f32 100.0, %v6926_v62  ;;  %v2255_v52 = vadd.f32 1.0, %v6921_v7 }
 0x572   :  { %v5072_v31 = vpop.eup %5071  ;;  %v2191_v28 = vmin.f32 %v6929_v17, 20.0  ;;  %5081 = vpow2.f32 %v2226_v43  ;;  %v2252_v48 = vand.u32 2147483647, %v6899_v0  ;;  %v2234_v5 = vmul.f32 1.442695, %v2192_v19 }
 0x573   :  { %v2266_v25 = vmul.f32 0.6931472, %v5072_v31  ;;  %5083 = vpow2.f32 %v2228_v37  ;;  %v2230_v10 = vmul.f32 1.442695, %v2190_v3  ;;  %v2251_v60 = vmul.f32 %v6899_v0, %v2250_v11 }
 0x574   :  { %v5074_v23 = vpop.eup %5073  ;;  %v2232_v6 = vmul.f32 1.442695, %v2191_v28  ;;  %v2193_v39 = vmin.f32 %v6945_v47, 20.0  ;;  %5085 = vlog2.f32 %v2255_v52  ;;  %vm6996_vm4 = vcmp.lt.f32.partialorder %v2252_v48, 0.0004427343 }
 0x575   :  { %v2272_v14 = vsel %vm6931_vm2, %v2269_v49, %v2266_v25  ;;  %v2275_v21 = vmul.f32 0.6931472, %v5074_v23  ;;  %5087 = vpow2.f32 %v2230_v10  ;;  %vm2202_vm9 = vcmp.gt.f32.partialorder %v6881_v58, 20.0 }
 0x576   :  { %v4572_v51 = vpop.f32.mrb[44].mxu0  ;;  %v2392_v53 = vmul.f32 0.01, %v2272_v14  ;;  %v6955_v33 = vpop.eup %5075  ;;  %5089 = vpow2.f32 %v2232_v6  ;;  %v2236_v3 = vmul.f32 1.442695, %v2193_v39  ;;  %vm2203_vm10 = vcmp.gt.f32.partialorder %v6897_v57, 20.0 }
 0x577   :  { %v2144_v40 = vmul.f32 0.70710677, %v4572_v51  ;;  %v2281_v50 = vsel %vm6935_vm3, %v2278_v41, %v2275_v21  ;;  %v2115_v4 = vpop.f32.mrb[45].mxu0  ;;  %v2282_v45 = vadd.f32 1.0, %v6955_v33  ;;  %v2285_v14 = vmul.f32 -0.5, %v6955_v33 }
 0x578   :  { %v2393_v27 = vmul.f32 0.01, %v2281_v50  ;;  %v4573_v55 = vpop.f32.mrb[46].mxu0  ;;  %v2142_v34 = vmul.f32 0.70710677, %v2115_v4  ;;  %v6961_v2 = vsel %vm2200_vm0, %v6847_v46, %v2392_v53  ;;  %v2258_v46 = vmul.f32 -0.5, %v6921_v7 }
 0x579   :  { %v6952_v42 = vadd.f32 %v6844_v29, %v2144_v40  ;;  %v2145_v56 = vmul.f32 0.70710677, %v4573_v55  ;;  %v2118_v30 = vpop.f32.mrb[47].mxu0  ;;  %v5078_v15 = vpop.eup %5077  ;;  %5091 = vlog2.f32 %v2282_v45  ;;  %v2261_v53 = vand.u32 2147483647, %v6921_v7 }
 0x57a   :  { %v6966_v59 = vsel %vm2201_vm1, %v6856_v35, %v2393_v27  ;;  %v2143_v26 = vmul.f32 0.70710677, %v2118_v30  ;;  %v6974_v31 = vadd.f32 %v6844_v29, %v2142_v34  ;;  %v2248_v18 = vmul.f32 0.6931472, %v5078_v15 }
 0x57b   :  { %v6969_v0 = vmul.f32 100.0, %v6952_v42  ;;  %v2441_v43 = vpack.c.bf16 %v6966_v59, %v6961_v2  ;;  %v6977_v49 = vadd.f32 %v6844_v29, %v2145_v56  ;;  %v6991_v19 = vpop.eup %5079  ;;  %v2259_v11 = vadd.f32 1.0, %v2258_v46 }
 0x57c   :  { %v6982_v44 = vadd.f32 %v6844_v29, %v2143_v26  ;;  %v6986_v37 = vmul.f32 100.0, %v6974_v31  ;;  %v7002_v21 = vpop.eup %5081  ;;  %5093 = vpow2.f32 %v2234_v5  ;;  %v2254_v52 = vsel %vm6996_vm4, %v2251_v60, %v2248_v18 }
 0x57d   :  { %v2196_v35 = vmin.f32 %v6969_v0, 20.0  ;;  %v6989_v25 = vmul.f32 100.0, %v6977_v49  ;;  %v7008_v40 = vpop.eup %5083  ;;  %v2288_v10 = vand.u32 2147483647, %v6955_v33  ;;  %5095 = vpow2.f32 %v2236_v3 }
 0x57e   :  { %v6994_v23 = vmul.f32 100.0, %v6982_v44  ;;  %v2194_v28 = vmin.f32 %v6986_v37, 20.0  ;;  %v2291_v4 = vadd.f32 1.0, %v6991_v19  ;;  %v5086_v27 = vpop.eup %5085  ;;  %v2260_v6 = vmul.f32 %v6921_v7, %v2259_v11 }
 0x57f   :  { %v2242_v29 = vmul.f32 1.442695, %v2196_v35  ;;  %v2197_v50 = vmin.f32 %v6989_v25, 20.0  ;;  %v2390_v55 = vmul.f32 0.01, %v2254_v52  ;;  %v2286_v60 = vadd.f32 1.0, %v2285_v14  ;;  %v7022_v46 = vpop.eup %5087 }
 0x580   :  { %v2195_v51 = vmin.f32 %v6994_v23, 20.0  ;;  %v2238_v48 = vmul.f32 1.442695, %v2194_v28  ;;  %v2257_v39 = vmul.f32 0.6931472, %v5086_v27  ;;  %v2294_v34 = vmul.f32 -0.5, %v6991_v19  ;;  %v7026_v45 = vpop.eup %5089 }
 0x581   :  { %5097 = vpow2.f32 %v2242_v29  ;;  %v2300_v56 = vadd.f32 1.0, %v7002_v21  ;;  %v2244_v30 = vmul.f32 1.442695, %v2197_v50  ;;  %vm2262_vm7 = vcmp.lt.f32.partialorder %v2261_v53, 0.0004427343 }
 0x582   :  { %v2240_v5 = vmul.f32 1.442695, %v2195_v51  ;;  %5099 = vpow2.f32 %v2238_v48  ;;  %vm7018_vm8 = vcmp.lt.f32.partialorder %v2288_v10, 0.0004427343  ;;  %v2263_v15 = vsel %vm2262_vm7, %v2260_v6, %v2257_v39 }
 0x583   :  { %v2303_v7 = vmul.f32 -0.5, %v7002_v21  ;;  %v2309_v35 = vadd.f32 1.0, %v7008_v40  ;;  %v2391_v18 = vmul.f32 0.01, %v2263_v15  ;;  %v2406_v3 = vsel %vm2198_vm5, %v6850_v20, %v2390_v55  ;;  %v5092_v29 = vpop.eup %5091 }
 0x584   :  { %5101 = vpow2.f32 %v2240_v5  ;;  %v2297_v41 = vand.u32 2147483647, %v6991_v19  ;;  %v2287_v28 = vmul.f32 %v6955_v33, %v2286_v60  ;;  %v2295_v11 = vadd.f32 1.0, %v2294_v34 }
 0x585   :  { %5103 = vlog2.f32 %v2291_v4  ;;  %v2312_v14 = vmul.f32 -0.5, %v7008_v40  ;;  %v2407_v51 = vsel %vm2199_vm6, %v6866_v12, %v2391_v18  ;;  %v2284_v52 = vmul.f32 0.6931472, %v5092_v29 }
 0x586   :  { %5105 = vlog2.f32 %v2300_v56  ;;  %v2306_v53 = vand.u32 2147483647, %v7002_v21  ;;  %v2318_v24 = vadd.f32 1.0, %v7022_v46  ;;  %v7040_v20 = vpop.eup %5093  ;;  %v2440_v48 = vpack.c.bf16 %v2407_v51, %v2406_v3 }
 0x587   :  { %5107 = vlog2.f32 %v2309_v35  ;;  %v2304_v50 = vadd.f32 1.0, %v2303_v7  ;;  %v2315_v10 = vand.u32 2147483647, %v7008_v40  ;;  %v2321_v33 = vmul.f32 -0.5, %v7022_v46  ;;  %v7047_v13 = vpop.eup %5095 }
 0x588   :  { %v2290_v5 = vsel %vm7018_vm8, %v2287_v28, %v2284_v52  ;;  %v2313_v4 = vadd.f32 1.0, %v2312_v14  ;;  %5109 = vlog2.f32 %v2318_v24  ;;  %v2327_v12 = vadd.f32 1.0, %v7026_v45  ;;  %4590 = vmatprep.mubr.bf16.mxu1 %v2440_v48 }
 0x589   :  { %5111 = vpow2.f32 %v2244_v30  ;;  %v2394_v27 = vmul.f32 0.01, %v2290_v5  ;;  %v2324_v6 = vand.u32 2147483647, %v7022_v46  ;;  %v2330_v55 = vmul.f32 -0.5, %v7026_v45  ;;  %4591 = vmatmul.mubr.bf16.vlgmr.msra.gmra.mrb[32].mxu1 %v2441_v43 }
 0x58a   :  { %vm7057_vm11 = vcmp.lt.f32.partialorder %v2297_v41, 0.0004427343  ;;  %5113 = vlog2.f32 %v2327_v12  ;;  %v2333_v34 = vand.u32 2147483647, %v7026_v45  ;;  %v2336_v56 = vadd.f32 1.0, %v7040_v20 }
 0x58b   :  { %v7051_v60 = vpop.eup %5097  ;;  %v2296_v26 = vmul.f32 %v6991_v19, %v2295_v11  ;;  %v2305_v15 = vmul.f32 %v7002_v21, %v2304_v50  ;;  %vm7068_vm13 = vcmp.lt.f32.partialorder %v2306_v53, 0.0004427343  ;;  %v2322_v59 = vadd.f32 1.0, %v2321_v33 }
 0x58c   :  { %v7063_v30 = vpop.eup %5099  ;;  %vm2205_vm14 = vcmp.gt.f32.partialorder %v6894_v9, 20.0  ;;  %v2314_v7 = vmul.f32 %v7008_v40, %v2313_v4  ;;  %vm7076_vm15 = vcmp.lt.f32.partialorder %v2315_v10, 0.0004427343  ;;  %5115 = vlog2.f32 %v2336_v56 }
 0x58d   :  { %v2345_v19 = vadd.f32 1.0, %v7047_v13  ;;  %v2410_v21 = vsel %vm2202_vm9, %v6875_v16, %v2394_v27  ;;  %vm7084_vm0 = vcmp.lt.f32.partialorder %v2324_v6, 0.0004427343  ;;  %v2331_v41 = vadd.f32 1.0, %v2330_v55 }
 0x58e   :  { %v7072_v43 = vpop.eup %5101  ;;  %v2339_v29 = vmul.f32 -0.5, %v7040_v20  ;;  %vm7089_vm1 = vcmp.lt.f32.partialorder %v2333_v34, 0.0004427343  ;;  %v2354_v14 = vadd.f32 1.0, %v7063_v30  ;;  %v2323_v16 = vmul.f32 %v7022_v46, %v2322_v59 }
 0x58f   :  { %v5104_v18 = vpop.eup %5103  ;;  %5117 = vlog2.f32 %v2345_v19  ;;  %v2342_v58 = vand.u32 2147483647, %v7040_v20  ;;  %v2348_v53 = vmul.f32 -0.5, %v7047_v13  ;;  %v2357_v50 = vmul.f32 -0.5, %v7063_v30 }
 0x590   :  { %v5106_v40 = vpop.eup %5105  ;;  %v2293_v28 = vmul.f32 0.6931472, %v5104_v18  ;;  %5119 = vlog2.f32 %v2354_v14  ;;  %vm2206_vm2 = vcmp.gt.f32.partialorder %v6918_v61, 20.0  ;;  %vm2207_vm3 = vcmp.gt.f32.partialorder %v6929_v17, 20.0 }
 0x591   :  { %v5108_v51 = vpop.eup %5107  ;;  %v2302_v52 = vmul.f32 0.6931472, %v5106_v40  ;;  %v2332_v46 = vmul.f32 %v7026_v45, %v2331_v41  ;;  %v2340_v5 = vadd.f32 1.0, %v2339_v29  ;;  %v2351_v6 = vand.u32 2147483647, %v7047_v13  ;;  %v4786_v29 = vld [vmem:[#allocation5 + $0x1d8] sm:$0xff]  }
 0x592   :  { %v2299_v24 = vsel %vm7057_vm11, %v2296_v26, %v2293_v28  ;;  %v2311_v48 = vmul.f32 0.6931472, %v5108_v51  ;;  %v5110_v4 = vpop.eup %5109  ;;  %v2363_v55 = vadd.f32 1.0, %v7072_v43  ;;  %vm7123_vm4 = vcmp.lt.f32.partialorder %v2342_v58, 0.0004427343 }
 0x593   :  { %v2395_v10 = vmul.f32 0.01, %v2299_v24  ;;  %v2308_v33 = vsel %vm7068_vm13, %v2305_v15, %v2302_v52  ;;  %v7109_v39 = vpop.eup %5111  ;;  %v2320_v26 = vmul.f32 0.6931472, %v5110_v4  ;;  %v2349_v15 = vadd.f32 1.0, %v2348_v53 }
 0x594   :  { %v2317_v12 = vsel %vm7076_vm15, %v2314_v7, %v2311_v48  ;;  %v2396_v27 = vmul.f32 0.01, %v2308_v33  ;;  %v5114_v45 = vpop.eup %5113  ;;  %v2358_v7 = vadd.f32 1.0, %v2357_v50  ;;  %5121 = vlog2.f32 %v2363_v55 }
 0x595   :  { %v2411_v34 = vsel %vm2203_vm10, %v6887_v32, %v2395_v10  ;;  %v2397_v56 = vmul.f32 0.01, %v2317_v12  ;;  %v2326_v19 = vsel %vm7084_vm0, %v2323_v16, %v2320_v26  ;;  %v2329_v57 = vmul.f32 0.6931472, %v5114_v45 }
 0x596   :  { %v2442_v2 = vpack.c.bf16 %v2411_v34, %v2410_v21  ;;  %v2412_v59 = vsel %vm2204_vm12, %v6878_v54, %v2396_v27  ;;  %v2366_v32 = vmul.f32 -0.5, %v7072_v43  ;;  %v5116_v18 = vpop.eup %5115  ;;  %v2398_v21 = vmul.f32 0.01, %v2326_v19 }
 0x597   :  { %v2413_v35 = vsel %vm2205_vm14, %v6884_v36, %v2397_v56  ;;  %v2372_v54 = vadd.f32 1.0, %v7051_v60  ;;  %v2335_v1 = vsel %vm7089_vm1, %v2332_v46, %v2329_v57  ;;  %v2338_v36 = vmul.f32 0.6931472, %v5116_v18 }
 0x598   :  { %4594 = vmatprep.mubr.bf16.mxu1 %v2442_v2  ;;  %v2443_v41 = vpack.c.bf16 %v2413_v35, %v2412_v59  ;;  %v2341_v9 = vmul.f32 %v7040_v20, %v2340_v5  ;;  %vm7131_vm5 = vcmp.lt.f32.partialorder %v2351_v6, 0.0004427343  ;;  %v2399_v28 = vmul.f32 0.01, %v2335_v1 }
 0x599   :  { %v5118_v40 = vpop.eup %5117  ;;  %v2350_v14 = vmul.f32 %v7047_v13, %v2349_v15  ;;  %v2360_v51 = vand.u32 2147483647, %v7063_v30  ;;  %5123 = vlog2.f32 %v2372_v54  ;;  %v2359_v16 = vmul.f32 %v7063_v30, %v2358_v7  ;;  %v7175_v54 = vld [vmem:[#allocation7 + $0x5] ss:$0 sm:$0xff] }
 0x59a   :  { %4595 = vmatmul.mubr.bf16.gmra.mrb[36].mxu1 %v2443_v41  ;;  %v2344_v52 = vsel %vm7123_vm4, %v2341_v9, %v2338_v36  ;;  %v2347_v11 = vmul.f32 0.6931472, %v5118_v40  ;;  %v2367_v58 = vadd.f32 1.0, %v2366_v32  ;;  %v5120_v20 = vpop.eup %5119  ;;  %v2414_v53 = vsel %vm2206_vm2, %v6908_v63, %v2398_v21  ;;  %v4783_v41 = vld [vmem:[#allocation5 + $0x1c0] sm:$0xff]   ;;  %v4784_v21 = vld [vmem:[#allocation5 + $0x1c8] sm:$0xff]  }
 0x59b   :  { %v2415_v24 = vsel %vm2207_vm3, %v6915_v8, %v2399_v28  ;;  %v2400_v13 = vmul.f32 0.01, %v2344_v52  ;;  %v2381_v48 = vadd.f32 1.0, %v7109_v39  ;;  %v2356_v33 = vmul.f32 0.6931472, %v5120_v20  ;;  %4606 = vmatprep.subr.bf16.mxu1 %v4783_v41 }
 0x59c   :  { %v2444_v50 = vpack.c.bf16 %v2415_v24, %v2414_v53  ;;  %v2353_v10 = vsel %vm7131_vm5, %v2350_v14, %v2347_v11  ;;  %v2375_v30 = vmul.f32 -0.5, %v7051_v60  ;;  %vm7150_vm6 = vcmp.lt.f32.partialorder %v2360_v51, 0.0004427343  ;;  %4607 = vmatpush3.bf16.msra.mxu1 %v4783_v41 }
 0x59d   :  { %v2401_v46 = vmul.f32 0.01, %v2353_v10  ;;  %v2369_v63 = vand.u32 2147483647, %v7072_v43  ;;  %5125 = vlog2.f32 %v2381_v48  ;;  %vm2208_vm7 = vcmp.gt.f32.partialorder %v6912_v38, 20.0  ;;  %4608 = vmatprep.subr.bf16.mxu1 %v4784_v21 }
 0x59e   :  { %vm2209_vm8 = vcmp.gt.f32.partialorder %v6945_v47, 20.0  ;;  %4598 = vmatprep.mubr.bf16.mxu1 %v2444_v50  ;;  %v2362_v8 = vsel %vm7150_vm6, %v2359_v16, %v2356_v33  ;;  %v5122_v61 = vpop.eup %5121  ;;  %v2416_v17 = vsel %vm2208_vm7, %v6904_v22, %v2400_v13  ;;  %v2368_v12 = vmul.f32 %v7072_v43, %v2367_v58 }
 0x59f   :  { %v2417_v4 = vsel %vm2209_vm8, %v6926_v62, %v2401_v46  ;;  %v2365_v6 = vmul.f32 0.6931472, %v5122_v61  ;;  %v2376_v55 = vadd.f32 1.0, %v2375_v30  ;;  %v2384_v34 = vmul.f32 -0.5, %v7109_v39 }
 0x5a0   :  { %v2445_v27 = vpack.c.bf16 %v2417_v4, %v2416_v17  ;;  %vm2370_vm9 = vcmp.lt.f32.partialorder %v2369_v63, 0.0004427343  ;;  %v2402_v38 = vmul.f32 0.01, %v2362_v8  ;;  %v2378_v47 = vand.u32 2147483647, %v7051_v60  ;;  %4609 = vmatpush3.bf16.msra.mxu1 %v4784_v21 }
 0x5a1   :  { %v2371_v56 = vsel %vm2370_vm9, %v2368_v12, %v2365_v6  ;;  %vm2210_vm10 = vcmp.gt.f32.partialorder %v6986_v37, 20.0  ;;  %vm2211_vm11 = vcmp.gt.f32.partialorder %v6994_v23, 20.0  ;;  %v2377_v62 = vmul.f32 %v7051_v60, %v2376_v55 }
 0x5a2   :  { %4599 = vmatmul.mubr.bf16.gmra.mrb[40].mxu1 %v2445_v27  ;;  %v2403_v15 = vmul.f32 0.01, %v2371_v56  ;;  %v2385_v43 = vadd.f32 1.0, %v2384_v34  ;;  %v2418_v45 = vsel %vm2210_vm10, %v6974_v31, %v2402_v38  ;;  %vm2379_vm12 = vcmp.lt.f32.partialorder %v2378_v47, 0.0004427343 }
 0x5a3   :  { %v5124_v26 = vpop.eup %5123  ;;  %v2387_v59 = vand.u32 2147483647, %v7109_v39  ;;  %vm2212_vm14 = vcmp.gt.f32.partialorder %v6969_v0, 20.0  ;;  %vm2213_vm15 = vcmp.gt.f32.partialorder %v6989_v25, 20.0  ;;  %v4787_v0 = vld [vmem:[#allocation5 + $0x1e0] sm:$0xff]   ;;  %v4789_v25 = vld [vmem:[#allocation5 + $0x1f0] sm:$0xff]  }
 0x5a4   :  { %v2374_v22 = vmul.f32 0.6931472, %v5124_v26  ;;  %v2419_v2 = vsel %vm2211_vm11, %v6982_v44, %v2403_v15  ;;  %v2386_v37 = vmul.f32 %v7109_v39, %v2385_v43  ;;  %v4785_v39 = vld [vmem:[#allocation5 + $0x1d0] sm:$0xff]  }
 0x5a5   :  { %v2446_v7 = vpack.c.bf16 %v2419_v2, %v2418_v45  ;;  %vm2388_vm13 = vcmp.lt.f32.partialorder %v2387_v59, 0.0004427343  ;;  %4610 = vmatprep.subr.bf16.mxu1 %v4785_v39 }
 0x5a6   :  { %v2380_v35 = vsel %vm2379_vm12, %v2377_v62, %v2374_v22  ;;  %4611 = vmatpush3.bf16.msra.mxu1 %v4785_v39 }
 0x5a7   :  { %v5126_v19 = vpop.eup %5125  ;;  %4602 = vmatprep.mubr.bf16.mxu1 %v2446_v7  ;;  %v2404_v23 = vmul.f32 0.01, %v2380_v35  ;;  %4612 = vmatprep.subr.bf16.mxu1 %v4786_v29 }
 0x5a8   :  { %v2383_v57 = vmul.f32 0.6931472, %v5126_v19 }
 0x5a9   :  { %v2420_v31 = vsel %vm2212_vm14, %v6952_v42, %v2404_v23  ;;  %v4788_v42 = vld [vmem:[#allocation5 + $0x1e8] sm:$0xff]  }
 0x5aa   :  { %v2389_v32 = vsel %vm2388_vm13, %v2386_v37, %v2383_v57  ;;  %4613 = vmatpush3.bf16.msra.mxu1 %v4786_v29 }
 0x5ab   :  { %v2405_v18 = vmul.f32 0.01, %v2389_v32  ;;  %4614 = vmatprep.subr.bf16.mxu1 %v4787_v0 }
 0x5ad   :  { %v2421_v44 = vsel %vm2213_vm15, %v6977_v49, %v2405_v18  ;;  %v4790_v49 = vld [vmem:[#allocation5 + $0x1f8] sm:$0xff]  }
 0x5ae   :  { %v2447_v60 = vpack.c.bf16 %v2421_v44, %v2420_v31  ;;  %4615 = vmatpush3.bf16.msra.mxu1 %v4787_v0 }
 0x5af   :  { %4616 = vmatprep.subr.bf16.mxu1 %v4788_v42 }
 0x5b0   :  { %4603 = vmatmul.mubr.bf16.gmra.mrb[44].mxu1 %v2447_v60 }
 0x5b2   :  { %4617 = vmatpush3.bf16.msra.mxu1 %v4788_v42 }
 0x5b3   :  { %4618 = vmatprep.subr.bf16.mxu1 %v4789_v25 }
 0x5b6   :  { %4619 = vmatpush3.bf16.msra.mxu1 %v4789_v25 }
 0x5b7   :  { %4620 = vmatprep.subr.bf16.mxu1 %v4790_v49 }
 0x5ba   :  { %4621 = vmatpush3.bf16.msra.mxu1 %v4790_v49 }
 0x65c   :  { %v4592_v1 = vpop.f32.mrb[32].mxu1 }
 0x65d   :  { %v7178_v36 = vadd.f32 %v4592_v1, %v7175_v54  ;;  %v2534_v9 = vpop.f32.mrb[33].mxu1 }
 0x65e   :  { %v7181_v3 = vadd.f32 %v7175_v54, %v2534_v9  ;;  %v4593_v40 = vpop.f32.mrb[34].mxu1 }
 0x65f   :  { %v7184_v28 = vmul.f32 100.0, %v7178_v36  ;;  %v7187_v14 = vadd.f32 %v4593_v40, %v7175_v54  ;;  %v2537_v51 = vpop.f32.mrb[35].mxu1 }
 0x660   :  { %v7190_v52 = vmul.f32 100.0, %v7181_v3  ;;  %v7197_v58 = vadd.f32 %v7175_v54, %v2537_v51 }
 0x661   :  { %v2615_v11 = vmin.f32 %v7184_v28, 20.0  ;;  %v7194_v16 = vmul.f32 100.0, %v7187_v14  ;;  %vm2631_vm0 = vcmp.gt.f32.partialorder %v7184_v28, 20.0 }
 0x662   :  { %v2613_v53 = vmin.f32 %v7190_v52, 20.0  ;;  %v7202_v48 = vmul.f32 100.0, %v7197_v58  ;;  %vm2629_vm4 = vcmp.gt.f32.partialorder %v7190_v52, 20.0 }
 0x663   :  { %v2649_v20 = vmul.f32 1.442695, %v2615_v11  ;;  %v2616_v24 = vmin.f32 %v7194_v16, 20.0  ;;  %vm2632_vm2 = vcmp.gt.f32.partialorder %v7194_v16, 20.0 }
 0x664   :  { %v2645_v50 = vmul.f32 1.442695, %v2613_v53  ;;  %v2614_v10 = vmin.f32 %v7202_v48, 20.0  ;;  %vm2630_vm6 = vcmp.gt.f32.partialorder %v7202_v48, 20.0 }
 0x665   :  { %5127 = vpow2.f32 %v2649_v20  ;;  %v2651_v13 = vmul.f32 1.442695, %v2616_v24 }
 0x666   :  { %v2647_v63 = vmul.f32 1.442695, %v2614_v10 }
 0x667   :  { %5129 = vpow2.f32 %v2651_v13 }
 0x668   :  { %5131 = vpow2.f32 %v2645_v50 }
 0x669   :  { %5133 = vpow2.f32 %v2647_v63 }
 0x66d   :  { %v4596_v33 = vpop.f32.mrb[36].mxu1 }
 0x66e   :  { %v2550_v30 = vpop.f32.mrb[37].mxu1  ;;  %v7209_v61 = vadd.f32 %v4596_v33, %v7175_v54 }
 0x66f   :  { %v7206_v46 = vadd.f32 %v7175_v54, %v2550_v30  ;;  %v4597_v5 = vpop.f32.mrb[38].mxu1  ;;  %v5128_v4 = vpop.eup %5127 }
 0x670   :  { %v2553_v8 = vpop.f32.mrb[39].mxu1  ;;  %v7215_v12 = vadd.f32 %v4597_v5, %v7175_v54  ;;  %v2695_v27 = vadd.f32 1.0, %v5128_v4  ;;  %v7222_v47 = vmul.f32 100.0, %v7209_v61  ;;  %v2698_v45 = vmul.f32 -0.5, %v5128_v4 }
 0x671   :  { %v7212_v17 = vmul.f32 100.0, %v7206_v46  ;;  %v7219_v55 = vadd.f32 %v7175_v54, %v2553_v8  ;;  %v5130_v34 = vpop.eup %5129  ;;  %v2701_v7 = vand.u32 2147483647, %v5128_v4 }
 0x672   :  { %5135 = vlog2.f32 %v2695_v27  ;;  %v2704_v38 = vadd.f32 1.0, %v5130_v34  ;;  %v7225_v26 = vmul.f32 100.0, %v7215_v12  ;;  %v7230_v43 = vpop.eup %5131  ;;  %v2619_v35 = vmin.f32 %v7222_v47, 20.0 }
 0x673   :  { %v2617_v6 = vmin.f32 %v7212_v17, 20.0  ;;  %v7228_v22 = vmul.f32 100.0, %v7219_v55  ;;  %v2707_v23 = vmul.f32 -0.5, %v5130_v34  ;;  %v2677_v41 = vadd.f32 1.0, %v7230_v43  ;;  %v7260_v1 = vpop.eup %5133 }
 0x674   :  { %5137 = vlog2.f32 %v2704_v38  ;;  %v2620_v32 = vmin.f32 %v7225_v26, 20.0  ;;  %v2699_v21 = vadd.f32 1.0, %v2698_v45  ;;  %v2680_v0 = vmul.f32 -0.5, %v7230_v43 }
 0x675   :  { %v2653_v56 = vmul.f32 1.442695, %v2617_v6  ;;  %v4600_v15 = vpop.f32.mrb[40].mxu1  ;;  %v2618_v19 = vmin.f32 %v7228_v22, 20.0  ;;  %v2657_v42 = vmul.f32 1.442695, %v2619_v35 }
 0x676   :  { %v2566_v62 = vpop.f32.mrb[41].mxu1  ;;  %v7233_v2 = vadd.f32 %v4600_v15, %v7175_v54  ;;  %vm7263_vm1 = vcmp.lt.f32.partialorder %v2701_v7, 0.0004427343  ;;  %v2708_v40 = vadd.f32 1.0, %v2707_v23  ;;  %v2659_v51 = vmul.f32 1.442695, %v2620_v32 }
 0x677   :  { %5139 = vpow2.f32 %v2653_v56  ;;  %v4601_v59 = vpop.f32.mrb[42].mxu1  ;;  %v7238_v57 = vadd.f32 %v7175_v54, %v2566_v62  ;;  %v2655_v39 = vmul.f32 1.442695, %v2618_v19  ;;  %v2710_v20 = vand.u32 2147483647, %v5130_v34 }
 0x678   :  { %v2569_v37 = vpop.f32.mrb[43].mxu1  ;;  %v7242_v18 = vmul.f32 100.0, %v7233_v2  ;;  %v7251_v60 = vadd.f32 %v4601_v59, %v7175_v54  ;;  %5141 = vlog2.f32 %v2677_v41  ;;  %v2700_v50 = vmul.f32 %v5128_v4, %v2699_v21 }
 0x679   :  { %v7245_v31 = vadd.f32 %v7175_v54, %v2569_v37  ;;  %v7248_v44 = vmul.f32 100.0, %v7238_v57  ;;  %5143 = vpow2.f32 %v2655_v39  ;;  %v2681_v10 = vadd.f32 1.0, %v2680_v0 }
 0x67a   :  { %v2623_v29 = vmin.f32 %v7242_v18, 20.0  ;;  %v7269_v24 = vmul.f32 100.0, %v7251_v60  ;;  %5145 = vpow2.f32 %v2657_v42  ;;  %v2686_v63 = vadd.f32 1.0, %v7260_v1 }
 0x67b   :  { %v2621_v25 = vmin.f32 %v7248_v44, 20.0  ;;  %v7258_v49 = vmul.f32 100.0, %v7245_v31  ;;  %v2709_v38 = vmul.f32 %v5130_v34, %v2708_v40  ;;  %5147 = vpow2.f32 %v2659_v51 }
 0x67c   :  { %v5136_v11 = vpop.eup %5135  ;;  %v2665_v53 = vmul.f32 1.442695, %v2623_v29  ;;  %vm2711_vm3 = vcmp.lt.f32.partialorder %v2710_v20, 0.0004427343  ;;  %v2624_v4 = vmin.f32 %v7269_v24, 20.0  ;;  %v2682_v45 = vmul.f32 %v7230_v43, %v2681_v10 }
 0x67d   :  { %v2697_v13 = vmul.f32 0.6931472, %v5136_v11  ;;  %v2661_v30 = vmul.f32 1.442695, %v2621_v25  ;;  %v2622_v5 = vmin.f32 %v7258_v49, 20.0  ;;  %v2689_v41 = vmul.f32 -0.5, %v7260_v1 }
 0x67e   :  { %v5138_v33 = vpop.eup %5137  ;;  %5149 = vpow2.f32 %v2665_v53  ;;  %v2683_v32 = vand.u32 2147483647, %v7230_v43  ;;  %v2667_v25 = vmul.f32 1.442695, %v2624_v4  ;;  %v2692_v40 = vand.u32 2147483647, %v7260_v1 }
 0x67f   :  { %v2703_v27 = vsel %vm7263_vm1, %v2700_v50, %v2697_v13  ;;  %v2706_v6 = vmul.f32 0.6931472, %v5138_v33  ;;  %5151 = vlog2.f32 %v2686_v63  ;;  %v2663_v35 = vmul.f32 1.442695, %v2622_v5 }
 0x680   :  { %v2823_v56 = vmul.f32 0.01, %v2703_v27  ;;  %5153 = vpow2.f32 %v2661_v30  ;;  %vm7328_vm5 = vcmp.lt.f32.partialorder %v2683_v32, 0.0004427343  ;;  %v2690_v30 = vadd.f32 1.0, %v2689_v41 }
 0x681   :  { %v7273_v8 = vpop.eup %5139  ;;  %v2712_v15 = vsel %vm2711_vm3, %v2709_v38, %v2706_v6  ;;  %vm7342_vm7 = vcmp.lt.f32.partialorder %v2692_v40, 0.0004427343  ;;  %vm2633_vm9 = vcmp.gt.f32.partialorder %v7212_v17, 20.0  ;;  %vm2634_vm10 = vcmp.gt.f32.partialorder %v7228_v22, 20.0 }
 0x682   :  { %v2713_v59 = vadd.f32 1.0, %v7273_v8  ;;  %v2824_v7 = vmul.f32 0.01, %v2712_v15  ;;  %v7291_v21 = vsel %vm2631_vm0, %v7178_v36, %v2823_v56  ;;  %v5142_v16 = vpop.eup %5141  ;;  %v2716_v51 = vmul.f32 -0.5, %v7273_v8 }
 0x683   :  { %v4604_v62 = vpop.f32.mrb[44].mxu1  ;;  %v7318_v11 = vpop.eup %5143  ;;  %v2719_v6 = vand.u32 2147483647, %v7273_v8  ;;  %v2691_v41 = vmul.f32 %v7260_v1, %v2690_v30  ;;  %vm2635_vm13 = vcmp.gt.f32.partialorder %v7222_v47, 20.0  ;;  %vm2636_vm0 = vcmp.gt.f32.partialorder %v7225_v26, 20.0 }
 0x684   :  { %v7281_v19 = vadd.f32 %v4604_v62, %v7175_v54  ;;  %v2582_v34 = vpop.f32.mrb[45].mxu1  ;;  %5155 = vlog2.f32 %v2713_v59  ;;  %v7296_v39 = vsel %vm2632_vm2, %v7187_v14, %v2824_v7  ;;  %v7324_v13 = vpop.eup %5145  ;;  %v2717_v4 = vadd.f32 1.0, %v2716_v51 }
 0x685   :  { %v7284_v37 = vadd.f32 %v7175_v54, %v2582_v34  ;;  %v4605_v23 = vpop.f32.mrb[46].mxu1  ;;  %v2872_v42 = vpack.c.bf16 %v7296_v39, %v7291_v21  ;;  %5157 = vpow2.f32 %v2663_v35  ;;  %v7332_v5 = vpop.eup %5147  ;;  %v2722_v15 = vadd.f32 1.0, %v7318_v11 }
 0x686   :  { %v7299_v29 = vmul.f32 100.0, %v7281_v19  ;;  %v7302_v0 = vadd.f32 %v4605_v23, %v7175_v54  ;;  %v2585_v43 = vpop.f32.mrb[47].mxu1  ;;  %5159 = vpow2.f32 %v2667_v25  ;;  %v2731_v35 = vadd.f32 1.0, %v7324_v13 }
 0x687   :  { %v7307_v28 = vmul.f32 100.0, %v7284_v37  ;;  %v7310_v36 = vadd.f32 %v7175_v54, %v2585_v43  ;;  %v2679_v54 = vmul.f32 0.6931472, %v5142_v16  ;;  %vm7350_vm8 = vcmp.lt.f32.partialorder %v2719_v6, 0.0004427343 }
 0x688   :  { %v2627_v14 = vmin.f32 %v7299_v29, 20.0  ;;  %v7314_v9 = vmul.f32 100.0, %v7302_v0  ;;  %v7337_v38 = vpop.eup %5149  ;;  %v2725_v16 = vmul.f32 -0.5, %v7318_v11  ;;  %v2718_v51 = vmul.f32 %v7273_v8, %v2717_v4 }
 0x689   :  { %v2625_v20 = vmin.f32 %v7307_v28, 20.0  ;;  %v7322_v53 = vmul.f32 100.0, %v7310_v36  ;;  %v2685_v56 = vsel %vm7328_vm5, %v2682_v45, %v2679_v54  ;;  %v5152_v62 = vpop.eup %5151  ;;  %v2728_v54 = vand.u32 2147483647, %v7318_v11 }
 0x68a   :  { %v2673_v50 = vmul.f32 1.442695, %v2627_v14  ;;  %v2628_v10 = vmin.f32 %v7314_v9, 20.0  ;;  %v7347_v34 = vpop.eup %5153  ;;  %v2688_v32 = vmul.f32 0.6931472, %v5152_v62  ;;  %v2734_v1 = vmul.f32 -0.5, %v7324_v13 }
 0x68b   :  { %v2669_v63 = vmul.f32 1.442695, %v2625_v20  ;;  %v2626_v27 = vmin.f32 %v7322_v53, 20.0  ;;  %v2821_v43 = vmul.f32 0.01, %v2685_v56  ;;  %v2743_v33 = vmul.f32 -0.5, %v7332_v5 }
 0x68c   :  { %5161 = vpow2.f32 %v2673_v50  ;;  %v2675_v23 = vmul.f32 1.442695, %v2628_v10  ;;  %v2694_v14 = vsel %vm7342_vm7, %v2691_v41, %v2688_v32  ;;  %v2740_v10 = vadd.f32 1.0, %v7332_v5 }
 0x68d   :  { %v2671_v59 = vmul.f32 1.442695, %v2626_v27  ;;  %5163 = vpow2.f32 %v2669_v63  ;;  %v2822_v20 = vmul.f32 0.01, %v2694_v14  ;;  %v2837_v8 = vsel %vm2629_vm4, %v7181_v3, %v2821_v43 }
 0x68e   :  { %v5156_v45 = vpop.eup %5155  ;;  %v2726_v27 = vadd.f32 1.0, %v2725_v16  ;;  %v2749_v6 = vadd.f32 1.0, %v7347_v34  ;;  %v2737_v4 = vand.u32 2147483647, %v7324_v13  ;;  %v2744_v3 = vadd.f32 1.0, %v2743_v33 }
 0x68f   :  { %5165 = vpow2.f32 %v2671_v59  ;;  %v2715_v40 = vmul.f32 0.6931472, %v5156_v45  ;;  %v7364_v30 = vpop.eup %5157  ;;  %v2838_v63 = vsel %vm2630_vm6, %v7197_v58, %v2822_v20  ;;  %v2735_v59 = vadd.f32 1.0, %v2734_v1  ;;  %v4794_v20 = vld [vmem:[#allocation5 + $0x218] sm:$0xff]  }
 0x690   :  { %5167 = vlog2.f32 %v2722_v15  ;;  %v2871_v56 = vpack.c.bf16 %v2838_v63, %v2837_v8  ;;  %v2752_v15 = vmul.f32 -0.5, %v7347_v34  ;;  %v7376_v52 = vpop.eup %5159  ;;  %v2746_v58 = vand.u32 2147483647, %v7332_v5 }
 0x691   :  { %5169 = vlog2.f32 %v2731_v35  ;;  %v2721_v50 = vsel %vm7350_vm8, %v2718_v51, %v2715_v40  ;;  %v2755_v48 = vand.u32 2147483647, %v7347_v34  ;;  %v2758_v7 = vadd.f32 1.0, %v7364_v30 }
 0x692   :  { %5171 = vpow2.f32 %v2675_v23  ;;  %v2825_v62 = vmul.f32 0.01, %v2721_v50  ;;  %4622 = vmatprep.mubr.bf16.mxu1 %v2871_v56  ;;  %v2727_v23 = vmul.f32 %v7318_v11, %v2726_v27  ;;  %vm7388_vm11 = vcmp.lt.f32.partialorder %v2728_v54, 0.0004427343 }
 0x693   :  { %5173 = vlog2.f32 %v2740_v10  ;;  %4623 = vmatmul.mubr.bf16.vlgmr.msra.gmra.mrb[48].mxu1 %v2872_v42  ;;  %v2753_v41 = vadd.f32 1.0, %v2752_v15  ;;  %v2767_v45 = vadd.f32 1.0, %v7337_v38  ;;  %vm7395_vm12 = vcmp.lt.f32.partialorder %v2737_v4, 0.0004427343 }
 0x694   :  { %5175 = vlog2.f32 %v2749_v6  ;;  %v2761_v16 = vmul.f32 -0.5, %v7364_v30  ;;  %v2770_v21 = vmul.f32 -0.5, %v7337_v38  ;;  %v2841_v42 = vsel %vm2633_vm9, %v7206_v46, %v2825_v62 }
 0x695   :  { %5177 = vlog2.f32 %v2758_v7  ;;  %v2736_v11 = vmul.f32 %v7324_v13, %v2735_v59  ;;  %v2776_v14 = vadd.f32 1.0, %v7376_v52  ;;  %v2745_v51 = vmul.f32 %v7332_v5, %v2744_v3 }
 0x696   :  { %v7381_v35 = vpop.eup %5161  ;;  %5179 = vlog2.f32 %v2767_v45  ;;  %vm7410_vm14 = vcmp.lt.f32.partialorder %v2746_v58, 0.0004427343  ;;  %vm7414_vm15 = vcmp.lt.f32.partialorder %v2755_v48, 0.0004427343  ;;  %v2764_v46 = vand.u32 2147483647, %v7364_v30 }
 0x697   :  { %v7393_v43 = vpop.eup %5163  ;;  %v2754_v1 = vmul.f32 %v7347_v34, %v2753_v41  ;;  %5181 = vlog2.f32 %v2776_v14  ;;  %v2762_v33 = vadd.f32 1.0, %v2761_v16  ;;  %v2771_v8 = vadd.f32 1.0, %v2770_v21 }
 0x698   :  { %v2785_v50 = vadd.f32 1.0, %v7393_v43  ;;  %v2773_v63 = vand.u32 2147483647, %v7337_v38  ;;  %v2779_v6 = vmul.f32 -0.5, %v7376_v52  ;;  %vm7431_vm1 = vcmp.lt.f32.partialorder %v2764_v46, 0.0004427343 }
 0x699   :  { %v7401_v39 = vpop.eup %5165  ;;  %v2782_v59 = vand.u32 2147483647, %v7376_v52  ;;  %vm2637_vm2 = vcmp.gt.f32.partialorder %v7248_v44, 20.0  ;;  %vm2638_vm3 = vcmp.gt.f32.partialorder %v7258_v49, 20.0  ;;  %v2788_v7 = vmul.f32 -0.5, %v7393_v43 }
 0x69a   :  { %v5168_v40 = vpop.eup %5167  ;;  %5183 = vlog2.f32 %v2785_v50  ;;  %v2794_v56 = vadd.f32 1.0, %v7401_v39  ;;  %v2763_v41 = vmul.f32 %v7364_v30, %v2762_v33  ;;  %vm7443_vm4 = vcmp.lt.f32.partialorder %v2773_v63, 0.0004427343 }
 0x69b   :  { %v5170_v17 = vpop.eup %5169  ;;  %v2724_v13 = vmul.f32 0.6931472, %v5168_v40  ;;  %v2772_v21 = vmul.f32 %v7337_v38, %v2771_v8  ;;  %vm2639_vm5 = vcmp.gt.f32.partialorder %v7242_v18, 20.0  ;;  %vm2640_vm6 = vcmp.gt.f32.partialorder %v7269_v24, 20.0 }
 0x69c   :  { %v7422_v5 = vpop.eup %5171  ;;  %v2733_v10 = vmul.f32 0.6931472, %v5170_v17  ;;  %5185 = vlog2.f32 %v2794_v56  ;;  %v2797_v30 = vmul.f32 -0.5, %v7401_v39  ;;  %v2803_v40 = vadd.f32 1.0, %v7381_v35 }
 0x69d   :  { %v2730_v27 = vsel %vm7388_vm11, %v2727_v23, %v2724_v13  ;;  %v5174_v4 = vpop.eup %5173  ;;  %vm7459_vm7 = vcmp.lt.f32.partialorder %v2782_v59, 0.0004427343  ;;  %v2789_v46 = vadd.f32 1.0, %v2788_v7  ;;  %v2791_v47 = vand.u32 2147483647, %v7393_v43 }
 0x69e   :  { %v2826_v34 = vmul.f32 0.01, %v2730_v27  ;;  %v2739_v15 = vsel %vm7395_vm12, %v2736_v11, %v2733_v10  ;;  %v5176_v3 = vpop.eup %5175  ;;  %v2742_v58 = vmul.f32 0.6931472, %v5174_v4  ;;  %v2780_v11 = vadd.f32 1.0, %v2779_v6 }
 0x69f   :  { %v2827_v48 = vmul.f32 0.01, %v2739_v15  ;;  %v2751_v32 = vmul.f32 0.6931472, %v5176_v3  ;;  %v5178_v14 = vpop.eup %5177  ;;  %5187 = vlog2.f32 %v2803_v40  ;;  %v2798_v27 = vadd.f32 1.0, %v2797_v30 }
 0x6a0   :  { %v2842_v23 = vsel %vm2634_vm10, %v7219_v55, %v2826_v34  ;;  %v2748_v16 = vsel %vm7410_vm14, %v2745_v51, %v2742_v58  ;;  %v2760_v51 = vmul.f32 0.6931472, %v5178_v14  ;;  %v2790_v6 = vmul.f32 %v7393_v43, %v2789_v46  ;;  %v7504_v46 = vld [vmem:[#allocation7 + $0x6] ss:$0 sm:$0xff] }
 0x6a1   :  { %v2873_v25 = vpack.c.bf16 %v2842_v23, %v2841_v42  ;;  %v2828_v55 = vmul.f32 0.01, %v2748_v16  ;;  %v2757_v22 = vsel %vm7414_vm15, %v2754_v1, %v2751_v32  ;;  %v5180_v42 = vpop.eup %5179  ;;  %v2843_v38 = vsel %vm2635_vm13, %v7209_v61, %v2827_v48 }
 0x6a2   :  { %v2829_v17 = vmul.f32 0.01, %v2757_v22  ;;  %v2769_v13 = vmul.f32 0.6931472, %v5180_v42  ;;  %v5182_v1 = vpop.eup %5181  ;;  %v2766_v10 = vsel %vm7431_vm1, %v2763_v41, %v2760_v51  ;;  %v2781_v61 = vmul.f32 %v7376_v52, %v2780_v11  ;;  %v4792_v51 = vld [vmem:[#allocation5 + $0x208] sm:$0xff]  }
 0x6a3   :  { %4626 = vmatprep.mubr.bf16.mxu1 %v2873_v25  ;;  %v2844_v54 = vsel %vm2636_vm0, %v7215_v12, %v2828_v55  ;;  %v2830_v33 = vmul.f32 0.01, %v2766_v10  ;;  %v2778_v63 = vmul.f32 0.6931472, %v5182_v1  ;;  %v2800_v56 = vand.u32 2147483647, %v7401_v39 }
 0x6a4   :  { %v2874_v50 = vpack.c.bf16 %v2844_v54, %v2843_v38  ;;  %v2775_v8 = vsel %vm7443_vm4, %v2772_v21, %v2769_v13  ;;  %v5184_v26 = vpop.eup %5183  ;;  %v2812_v4 = vadd.f32 1.0, %v7422_v5  ;;  %v2845_v52 = vsel %vm2637_vm2, %v7238_v57, %v2829_v17  ;;  %v4791_v38 = vld [vmem:[#allocation5 + $0x200] sm:$0xff]  }
 0x6a5   :  { %v2831_v12 = vmul.f32 0.01, %v2775_v8  ;;  %v2846_v34 = vsel %vm2638_vm3, %v7245_v31, %v2830_v33  ;;  %v2784_v15 = vsel %vm7459_vm7, %v2781_v61, %v2778_v63  ;;  %v2787_v62 = vmul.f32 0.6931472, %v5184_v26  ;;  %4638 = vmatprep.subr.bf16.mxu0 %v4791_v38 }
 0x6a6   :  { %4627 = vmatmul.mubr.bf16.gmra.mrb[52].mxu1 %v2874_v50  ;;  %v5186_v59 = vpop.eup %5185  ;;  %v2875_v3 = vpack.c.bf16 %v2846_v34, %v2845_v52  ;;  %v2832_v58 = vmul.f32 0.01, %v2784_v15  ;;  %vm2792_vm8 = vcmp.lt.f32.partialorder %v2791_v47, 0.0004427343  ;;  %v2806_v43 = vmul.f32 -0.5, %v7381_v35  ;;  %4639 = vmatpush3.bf16.msra.mxu0 %v4791_v38 }
 0x6a7   :  { %v2793_v48 = vsel %vm2792_vm8, %v2790_v6, %v2787_v62  ;;  %v2796_v7 = vmul.f32 0.6931472, %v5186_v59  ;;  %v2799_v23 = vmul.f32 %v7401_v39, %v2798_v27  ;;  %5189 = vlog2.f32 %v2812_v4  ;;  %4640 = vmatprep.subr.bf16.mxu0 %v4792_v51 }
 0x6a8   :  { %4630 = vmatprep.mubr.bf16.mxu1 %v2875_v3  ;;  %v2847_v57 = vsel %vm2639_vm5, %v7233_v2, %v2831_v12  ;;  %v2848_v31 = vsel %vm2640_vm6, %v7251_v60, %v2832_v58  ;;  %vm2801_vm9 = vcmp.lt.f32.partialorder %v2800_v56, 0.0004427343  ;;  %v2833_v44 = vmul.f32 0.01, %v2793_v48 }
 0x6a9   :  { %v2876_v49 = vpack.c.bf16 %v2848_v31, %v2847_v57  ;;  %v2802_v32 = vsel %vm2801_vm9, %v2799_v23, %v2796_v7  ;;  %v2807_v45 = vadd.f32 1.0, %v2806_v43  ;;  %v2815_v25 = vmul.f32 -0.5, %v7422_v5  ;;  %v5188_v16 = vpop.eup %5187 }
 0x6aa   :  { %v2834_v41 = vmul.f32 0.01, %v2802_v32  ;;  %vm2641_vm10 = vcmp.gt.f32.partialorder %v7307_v28, 20.0  ;;  %vm2642_vm11 = vcmp.gt.f32.partialorder %v7322_v53, 20.0  ;;  %v2809_v18 = vand.u32 2147483647, %v7381_v35  ;;  %4641 = vmatpush3.bf16.msra.mxu0 %v4792_v51 }
 0x6ab   :  { %v2849_v2 = vsel %vm2641_vm10, %v7284_v37, %v2833_v44  ;;  %v2805_v24 = vmul.f32 0.6931472, %v5188_v16  ;;  %v2808_v21 = vmul.f32 %v7381_v35, %v2807_v45  ;;  %v2816_v11 = vadd.f32 1.0, %v2815_v25 }
 0x6ac   :  { %v2850_v60 = vsel %vm2642_vm11, %v7310_v36, %v2834_v41  ;;  %vm2810_vm12 = vcmp.lt.f32.partialorder %v2809_v18, 0.0004427343  ;;  %v2818_v14 = vand.u32 2147483647, %v7422_v5  ;;  %vm2643_vm14 = vcmp.gt.f32.partialorder %v7299_v29, 20.0  ;;  %v4795_v29 = vld [vmem:[#allocation5 + $0x220] sm:$0xff]  }
 0x6ad   :  { %v2877_v39 = vpack.c.bf16 %v2850_v60, %v2849_v2  ;;  %v2811_v55 = vsel %vm2810_vm12, %v2808_v21, %v2805_v24  ;;  %v2817_v53 = vmul.f32 %v7422_v5, %v2816_v11  ;;  %vm2644_vm15 = vcmp.gt.f32.partialorder %v7314_v9, 20.0  ;;  %v4793_v5 = vld [vmem:[#allocation5 + $0x210] sm:$0xff]  }
 0x6ae   :  { %4631 = vmatmul.mubr.bf16.gmra.mrb[56].mxu1 %v2876_v49  ;;  %vm2819_vm13 = vcmp.lt.f32.partialorder %v2818_v14, 0.0004427343  ;;  %v2835_v30 = vmul.f32 0.01, %v2811_v55  ;;  %4642 = vmatprep.subr.bf16.mxu0 %v4793_v5  ;;  %v4797_v9 = vld [vmem:[#allocation5 + $0x230] sm:$0xff]  }
 0x6af   :  { %4634 = vmatprep.mubr.bf16.mxu1 %v2877_v39  ;;  %4643 = vmatpush3.bf16.msra.mxu0 %v4793_v5 }
 0x6b0   :  { %v2851_v36 = vsel %vm2643_vm14, %v7281_v19, %v2835_v30  ;;  %4644 = vmatprep.subr.bf16.mxu0 %v4794_v20  ;;  %v4796_v19 = vld [vmem:[#allocation5 + $0x228] sm:$0xff]  }
 0x6b1   :  { %v5190_v28 = vpop.eup %5189 }
 0x6b2   :  { %v2814_v22 = vmul.f32 0.6931472, %v5190_v28 }
 0x6b3   :  { %4645 = vmatpush3.bf16.msra.mxu0 %v4794_v20 }
 0x6b4   :  { %v2820_v40 = vsel %vm2819_vm13, %v2817_v53, %v2814_v22  ;;  %4646 = vmatprep.subr.bf16.mxu0 %v4795_v29 }
 0x6b5   :  { %v2836_v37 = vmul.f32 0.01, %v2820_v40 }
 0x6b7   :  { %v2852_v35 = vsel %vm2644_vm15, %v7302_v0, %v2836_v37  ;;  %4647 = vmatpush3.bf16.msra.mxu0 %v4795_v29  ;;  %v4798_v0 = vld [vmem:[#allocation5 + $0x238] sm:$0xff]  }
 0x6b8   :  { %v2878_v42 = vpack.c.bf16 %v2852_v35, %v2851_v36  ;;  %4648 = vmatprep.subr.bf16.mxu0 %v4796_v19 }
 0x6ba   :  { %4635 = vmatmul.mubr.bf16.gmra.mrb[60].mxu1 %v2878_v42 }
 0x6bb   :  { %4649 = vmatpush3.bf16.msra.mxu0 %v4796_v19 }
 0x6bc   :  { %4650 = vmatprep.subr.bf16.mxu0 %v4797_v9 }
 0x6bf   :  { %4651 = vmatpush3.bf16.msra.mxu0 %v4797_v9 }
 0x6c0   :  { %4652 = vmatprep.subr.bf16.mxu0 %v4798_v0 }
 0x6c3   :  { %4653 = vmatpush3.bf16.msra.mxu0 %v4798_v0 }
 0x766   :  { %v4624_v54 = vpop.f32.mrb[48].mxu1 }
 0x767   :  { %v7507_v17 = vadd.f32 %v4624_v54, %v7504_v46  ;;  %v2965_v13 = vpop.f32.mrb[49].mxu1 }
 0x768   :  { %v7510_v1 = vadd.f32 %v7504_v46, %v2965_v13  ;;  %v4625_v50 = vpop.f32.mrb[50].mxu1 }
 0x769   :  { %v7513_v10 = vmul.f32 100.0, %v7507_v17  ;;  %v7516_v61 = vadd.f32 %v4625_v50, %v7504_v46  ;;  %v2968_v47 = vpop.f32.mrb[51].mxu1 }
 0x76a   :  { %v7519_v33 = vmul.f32 100.0, %v7510_v1  ;;  %v7527_v12 = vadd.f32 %v7504_v46, %v2968_v47 }
 0x76b   :  { %v3046_v8 = vmin.f32 %v7513_v10, 20.0  ;;  %v7523_v63 = vmul.f32 100.0, %v7516_v61  ;;  %vm3062_vm0 = vcmp.gt.f32.partialorder %v7513_v10, 20.0 }
 0x76c   :  { %v3044_v6 = vmin.f32 %v7519_v33, 20.0  ;;  %v7531_v4 = vmul.f32 100.0, %v7527_v12  ;;  %vm3060_vm4 = vcmp.gt.f32.partialorder %v7519_v33, 20.0 }
 0x76d   :  { %v3080_v27 = vmul.f32 1.442695, %v3046_v8  ;;  %v3047_v26 = vmin.f32 %v7523_v63, 20.0  ;;  %vm3063_vm1 = vcmp.gt.f32.partialorder %v7523_v63, 20.0 }
 0x76e   :  { %v3076_v52 = vmul.f32 1.442695, %v3044_v6  ;;  %v3045_v34 = vmin.f32 %v7531_v4, 20.0  ;;  %vm3061_vm6 = vcmp.gt.f32.partialorder %v7531_v4, 20.0 }
 0x76f   :  { %5191 = vpow2.f32 %v3080_v27  ;;  %v3082_v56 = vmul.f32 1.442695, %v3047_v26 }
 0x770   :  { %v3078_v43 = vmul.f32 1.442695, %v3045_v34 }
 0x771   :  { %5193 = vpow2.f32 %v3082_v56 }
 0x772   :  { %5195 = vpow2.f32 %v3076_v52 }
 0x779   :  { %v4628_v15 = vpop.f32.mrb[52].mxu1  ;;  %v5192_v58 = vpop.eup %5191 }
 0x77a   :  { %v2981_v62 = vpop.f32.mrb[53].mxu1  ;;  %v3126_v7 = vadd.f32 1.0, %v5192_v58  ;;  %v7538_v23 = vadd.f32 %v4628_v15, %v7504_v46  ;;  %v3129_v45 = vmul.f32 -0.5, %v5192_v58  ;;  %v3132_v42 = vand.u32 2147483647, %v5192_v58 }
 0x77b   :  { %v7535_v59 = vadd.f32 %v7504_v46, %v2981_v62  ;;  %v4629_v3 = vpop.f32.mrb[54].mxu1  ;;  %v5194_v31 = vpop.eup %5193 }
 0x77c   :  { %v2984_v48 = vpop.f32.mrb[55].mxu1  ;;  %5197 = vlog2.f32 %v3126_v7  ;;  %v3135_v44 = vadd.f32 1.0, %v5194_v31  ;;  %v7544_v49 = vadd.f32 %v4629_v3, %v7504_v46  ;;  %v7551_v25 = vmul.f32 100.0, %v7538_v23  ;;  %v7553_v60 = vpop.eup %5195 }
 0x77d   :  { %v7541_v57 = vmul.f32 100.0, %v7535_v59  ;;  %v7547_v32 = vadd.f32 %v7504_v46, %v2984_v48  ;;  %5199 = vpow2.f32 %v3078_v43  ;;  %v3138_v14 = vmul.f32 -0.5, %v5194_v31 }
 0x77e   :  { %5201 = vlog2.f32 %v3135_v44  ;;  %v7556_v24 = vmul.f32 100.0, %v7544_v49  ;;  %v3130_v22 = vadd.f32 1.0, %v3129_v45  ;;  %v3050_v53 = vmin.f32 %v7551_v25, 20.0 }
 0x77f   :  { %v3048_v41 = vmin.f32 %v7541_v57, 20.0  ;;  %v7559_v39 = vmul.f32 100.0, %v7547_v32  ;;  %v3108_v35 = vadd.f32 1.0, %v7553_v60  ;;  %v3139_v20 = vadd.f32 1.0, %v3138_v14 }
 0x780   :  { %v3051_v38 = vmin.f32 %v7556_v24, 20.0  ;;  %v3141_v29 = vand.u32 2147483647, %v5194_v31  ;;  %v3131_v9 = vmul.f32 %v5192_v58, %v3130_v22  ;;  %v3088_v0 = vmul.f32 1.442695, %v3050_v53 }
 0x781   :  { %v4632_v16 = vpop.f32.mrb[56].mxu1  ;;  %v3084_v18 = vmul.f32 1.442695, %v3048_v41  ;;  %v3049_v30 = vmin.f32 %v7559_v39, 20.0  ;;  %v3111_v27 = vmul.f32 -0.5, %v7553_v60  ;;  %v3140_v15 = vmul.f32 %v5194_v31, %v3139_v20 }
 0x782   :  { %v2997_v2 = vpop.f32.mrb[57].mxu1  ;;  %v7562_v21 = vadd.f32 %v4632_v16, %v7504_v46  ;;  %vm3133_vm2 = vcmp.lt.f32.partialorder %v3132_v42, 0.0004427343  ;;  %v3090_v6 = vmul.f32 1.442695, %v3051_v38  ;;  %vm3064_vm8 = vcmp.gt.f32.partialorder %v7541_v57, 20.0 }
 0x783   :  { %v4633_v11 = vpop.f32.mrb[58].mxu1  ;;  %5203 = vpow2.f32 %v3084_v18  ;;  %v7565_v55 = vadd.f32 %v7504_v46, %v2997_v2  ;;  %v3086_v51 = vmul.f32 1.442695, %v3049_v30  ;;  %vm3142_vm3 = vcmp.lt.f32.partialorder %v3141_v29, 0.0004427343 }
 0x784   :  { %v3000_v28 = vpop.f32.mrb[59].mxu1  ;;  %v7570_v40 = vadd.f32 %v4633_v11, %v7504_v46  ;;  %v7573_v37 = vmul.f32 100.0, %v7562_v21  ;;  %5205 = vlog2.f32 %v3108_v35  ;;  %v3112_v41 = vadd.f32 1.0, %v3111_v27 }
 0x785   :  { %v7576_v36 = vadd.f32 %v7504_v46, %v3000_v28  ;;  %v7581_v5 = vmul.f32 100.0, %v7565_v55  ;;  %5207 = vpow2.f32 %v3086_v51  ;;  %v3114_v20 = vand.u32 2147483647, %v7553_v60 }
 0x786   :  { %v5198_v19 = vpop.eup %5197  ;;  %v7586_v54 = vmul.f32 100.0, %v7570_v40  ;;  %v3054_v8 = vmin.f32 %v7573_v37, 20.0  ;;  %5209 = vpow2.f32 %v3088_v0  ;;  %vm3065_vm10 = vcmp.gt.f32.partialorder %v7559_v39, 20.0 }
 0x787   :  { %v7589_v13 = vmul.f32 100.0, %v7576_v36  ;;  %v7591_v50 = vpop.eup %5199  ;;  %v3128_v47 = vmul.f32 0.6931472, %v5198_v19  ;;  %v3052_v56 = vmin.f32 %v7581_v5, 20.0  ;;  %5211 = vpow2.f32 %v3090_v6 }
 0x788   :  { %v5202_v26 = vpop.eup %5201  ;;  %v3117_v58 = vadd.f32 1.0, %v7591_v50  ;;  %v3096_v7 = vmul.f32 1.442695, %v3054_v8  ;;  %v3055_v44 = vmin.f32 %v7586_v54, 20.0  ;;  %v3120_v28 = vmul.f32 -0.5, %v7591_v50 }
 0x789   :  { %v3134_v52 = vsel %vm3133_vm2, %v3131_v9, %v3128_v47  ;;  %v3137_v34 = vmul.f32 0.6931472, %v5202_v26  ;;  %v3053_v62 = vmin.f32 %v7589_v13, 20.0  ;;  %v3092_v16 = vmul.f32 1.442695, %v3052_v56 }
 0x78a   :  { %v3254_v3 = vmul.f32 0.01, %v3134_v52  ;;  %5213 = vlog2.f32 %v3117_v58  ;;  %v3098_v38 = vmul.f32 1.442695, %v3055_v44  ;;  %v3123_v9 = vand.u32 2147483647, %v7591_v50 }
 0x78b   :  { %v3143_v48 = vsel %vm3142_vm3, %v3140_v15, %v3137_v34  ;;  %v3094_v2 = vmul.f32 1.442695, %v3053_v62  ;;  %v3121_v26 = vadd.f32 1.0, %v3120_v28  ;;  %v3113_v56 = vmul.f32 %v7553_v60, %v3112_v41 }
 0x78c   :  { %v3255_v45 = vmul.f32 0.01, %v3143_v48  ;;  %v7609_v22 = vsel %vm3062_vm0, %v7507_v17, %v3254_v3  ;;  %vm7651_vm5 = vcmp.lt.f32.partialorder %v3114_v20, 0.0004427343  ;;  %vm7663_vm7 = vcmp.lt.f32.partialorder %v3123_v9, 0.0004427343 }
 0x78d   :  { %v7598_v43 = vpop.eup %5203  ;;  %v4636_v18 = vpop.f32.mrb[60].mxu1  ;;  %v3122_v60 = vmul.f32 %v7591_v50, %v3121_v26  ;;  %vm3066_vm12 = vcmp.gt.f32.partialorder %v7551_v25, 20.0  ;;  %vm3067_vm14 = vcmp.gt.f32.partialorder %v7556_v24, 20.0  ;;  %vm3069_vm2 = vcmp.gt.f32.partialorder %v7589_v13, 20.0 }
 0x78e   :  { %v3144_v31 = vadd.f32 1.0, %v7598_v43  ;;  %v7603_v11 = vadd.f32 %v4636_v18, %v7504_v46  ;;  %v3013_v14 = vpop.f32.mrb[61].mxu1  ;;  %v7614_v53 = vsel %vm3063_vm1, %v7516_v61, %v3255_v45  ;;  %v5206_v29 = vpop.eup %5205  ;;  %v3147_v0 = vmul.f32 -0.5, %v7598_v43 }
 0x78f   :  { %v7617_v30 = vadd.f32 %v7504_v46, %v3013_v14  ;;  %v4637_v35 = vpop.f32.mrb[62].mxu1  ;;  %v3303_v42 = vpack.c.bf16 %v7614_v53, %v7609_v22  ;;  %v7639_v47 = vpop.eup %5207  ;;  %v3150_v45 = vand.u32 2147483647, %v7598_v43  ;;  %vm3068_vm1 = vcmp.gt.f32.partialorder %v7581_v5, 20.0 }
 0x790   :  { %5215 = vlog2.f32 %v3144_v31  ;;  %v7622_v51 = vmul.f32 100.0, %v7603_v11  ;;  %v7625_v17 = vadd.f32 %v4637_v35, %v7504_v46  ;;  %v3016_v10 = vpop.f32.mrb[63].mxu1  ;;  %v7648_v52 = vpop.eup %5209  ;;  %v3148_v48 = vadd.f32 1.0, %v3147_v0 }
 0x791   :  { %5217 = vpow2.f32 %v3092_v16  ;;  %v7628_v61 = vmul.f32 100.0, %v7617_v30  ;;  %v7631_v63 = vadd.f32 %v7504_v46, %v3016_v10  ;;  %v3110_v46 = vmul.f32 0.6931472, %v5206_v29  ;;  %v7659_v44 = vpop.eup %5211 }
 0x792   :  { %5219 = vpow2.f32 %v3094_v2  ;;  %v7635_v19 = vmul.f32 100.0, %v7625_v17  ;;  %v3058_v6 = vmin.f32 %v7622_v51, 20.0  ;;  %v3162_v2 = vadd.f32 1.0, %v7648_v52 }
 0x793   :  { %v3056_v8 = vmin.f32 %v7628_v61, 20.0  ;;  %v7643_v27 = vmul.f32 100.0, %v7631_v63  ;;  %5221 = vpow2.f32 %v3096_v7  ;;  %v3116_v58 = vsel %vm7651_vm5, %v3113_v56, %v3110_v46 }
 0x794   :  { %5223 = vpow2.f32 %v3098_v38  ;;  %v3059_v3 = vmin.f32 %v7635_v19, 20.0  ;;  %v3153_v7 = vadd.f32 1.0, %v7639_v47  ;;  %v5214_v16 = vpop.eup %5213  ;;  %v3104_v18 = vmul.f32 1.442695, %v3058_v6 }
 0x795   :  { %v3100_v34 = vmul.f32 1.442695, %v3056_v8  ;;  %v3057_v15 = vmin.f32 %v7643_v27, 20.0  ;;  %v3119_v28 = vmul.f32 0.6931472, %v5214_v16  ;;  %v3156_v38 = vmul.f32 -0.5, %v7639_v47 }
 0x796   :  { %v3252_v35 = vmul.f32 0.01, %v3116_v58  ;;  %v3165_v10 = vmul.f32 -0.5, %v7648_v52  ;;  %v3106_v50 = vmul.f32 1.442695, %v3059_v3  ;;  %v3149_v29 = vmul.f32 %v7598_v43, %v3148_v48 }
 0x797   :  { %5225 = vpow2.f32 %v3100_v34  ;;  %v3102_v31 = vmul.f32 1.442695, %v3057_v15  ;;  %v3125_v0 = vsel %vm7663_vm7, %v3122_v60, %v3119_v28  ;;  %vm7675_vm9 = vcmp.lt.f32.partialorder %v3150_v45, 0.0004427343 }
 0x798   :  { %5227 = vlog2.f32 %v3153_v7  ;;  %v3171_v46 = vadd.f32 1.0, %v7659_v44  ;;  %v3253_v6 = vmul.f32 0.01, %v3125_v0  ;;  %v3159_v56 = vand.u32 2147483647, %v7639_v47 }
 0x799   :  { %5229 = vlog2.f32 %v3162_v2  ;;  %v3268_v34 = vsel %vm3060_vm4, %v7510_v1, %v3252_v35  ;;  %v3157_v15 = vadd.f32 1.0, %v3156_v38  ;;  %v3166_v62 = vadd.f32 1.0, %v3165_v10 }
 0x79a   :  { %v5216_v14 = vpop.eup %5215  ;;  %5231 = vpow2.f32 %v3102_v31  ;;  %v3269_v58 = vsel %vm3061_vm6, %v7527_v12, %v3253_v6  ;;  %v3174_v48 = vmul.f32 -0.5, %v7659_v44  ;;  %v3168_v1 = vand.u32 2147483647, %v7648_v52 }
 0x79b   :  { %v3146_v20 = vmul.f32 0.6931472, %v5216_v14  ;;  %v5218_v9 = vpop.eup %5217  ;;  %5233 = vlog2.f32 %v3171_v46  ;;  %v3302_v45 = vpack.c.bf16 %v3269_v58, %v3268_v34  ;;  %v3177_v33 = vand.u32 2147483647, %v7659_v44 }
 0x79c   :  { %v7680_v26 = vpop.eup %5219  ;;  %v3180_v7 = vadd.f32 1.0, %v5218_v9  ;;  %v3183_v60 = vmul.f32 -0.5, %v5218_v9  ;;  %5235 = vpow2.f32 %v3104_v18  ;;  %v3186_v31 = vand.u32 2147483647, %v5218_v9 }
 0x79d   :  { %v3152_v43 = vsel %vm7675_vm9, %v3149_v29, %v3146_v20  ;;  %v7688_v3 = vpop.eup %5221  ;;  %v3189_v2 = vadd.f32 1.0, %v7680_v26  ;;  %4654 = vmatprep.mubr.bf16.mxu0 %v3302_v45  ;;  %v3158_v12 = vmul.f32 %v7639_v47, %v3157_v15  ;;  %vm7701_vm11 = vcmp.lt.f32.partialorder %v3159_v56, 0.0004427343 }
 0x79e   :  { %v7694_v41 = vpop.eup %5223  ;;  %v3256_v16 = vmul.f32 0.01, %v3152_v43  ;;  %5237 = vlog2.f32 %v3180_v7  ;;  %v3198_v18 = vadd.f32 1.0, %v7688_v3  ;;  %4655 = vmatmul.mubr.bf16.vlgmr.msra.gmra.mrb[48].mxu0 %v3303_v42  ;;  %v3167_v28 = vmul.f32 %v7648_v52, %v3166_v62 }
 0x79f   :  { %5239 = vpow2.f32 %v3106_v50  ;;  %v3175_v35 = vadd.f32 1.0, %v3174_v48  ;;  %v3184_v38 = vadd.f32 1.0, %v3183_v60  ;;  %vm7713_vm13 = vcmp.lt.f32.partialorder %v3168_v1, 0.0004427343 }
 0x7a0   :  { %5241 = vlog2.f32 %v3189_v2  ;;  %v3192_v10 = vmul.f32 -0.5, %v7680_v26  ;;  %v3207_v50 = vadd.f32 1.0, %v7694_v41  ;;  %v3272_v22 = vsel %vm3064_vm8, %v7535_v59, %v3256_v16 }
 0x7a1   :  { %v7706_v14 = vpop.eup %5225  ;;  %5243 = vlog2.f32 %v3198_v18  ;;  %vm7723_vm15 = vcmp.lt.f32.partialorder %v3177_v33, 0.0004427343  ;;  %vm7727_vm0 = vcmp.lt.f32.partialorder %v3186_v31, 0.0004427343  ;;  %v3195_v52 = vand.u32 2147483647, %v7680_v26 }
 0x7a2   :  { %v5228_v20 = vpop.eup %5227  ;;  %v3201_v8 = vmul.f32 -0.5, %v7688_v3  ;;  %5245 = vlog2.f32 %v3207_v50  ;;  %v3216_v46 = vadd.f32 1.0, %v7706_v14  ;;  %v3176_v57 = vmul.f32 %v7659_v44, %v3175_v35 }
 0x7a3   :  { %v5230_v29 = vpop.eup %5229  ;;  %v3155_v0 = vmul.f32 0.6931472, %v5228_v20  ;;  %v3185_v43 = vmul.f32 %v5218_v9, %v3184_v38  ;;  %v3204_v56 = vand.u32 2147483647, %v7688_v3  ;;  %v3193_v62 = vadd.f32 1.0, %v3192_v10 }
 0x7a4   :  { %v7734_v6 = vpop.eup %5231  ;;  %v3164_v59 = vmul.f32 0.6931472, %v5230_v29  ;;  %v3210_v58 = vmul.f32 -0.5, %v7694_v41  ;;  %5247 = vlog2.f32 %v3216_v46  ;;  %v3219_v45 = vmul.f32 -0.5, %v7706_v14 }
 0x7a5   :  { %v5234_v34 = vpop.eup %5233  ;;  %v3161_v15 = vsel %vm7701_vm11, %v3158_v12, %v3155_v0  ;;  %vm7748_vm3 = vcmp.lt.f32.partialorder %v3195_v52, 0.0004427343  ;;  %v3202_v1 = vadd.f32 1.0, %v3201_v8  ;;  %v3225_v33 = vadd.f32 1.0, %v7734_v6 }
 0x7a6   :  { %v3257_v48 = vmul.f32 0.01, %v3161_v15  ;;  %v3170_v7 = vsel %vm7713_vm13, %v3167_v28, %v3164_v59  ;;  %v3173_v60 = vmul.f32 0.6931472, %v5234_v34  ;;  %v7744_v16 = vpop.eup %5235  ;;  %vm7758_vm4 = vcmp.lt.f32.partialorder %v3204_v56, 0.0004427343 }
 0x7a7   :  { %v3258_v44 = vmul.f32 0.01, %v3170_v7  ;;  %v3213_v18 = vand.u32 2147483647, %v7694_v41  ;;  %v3194_v10 = vmul.f32 %v7680_v26, %v3193_v62  ;;  %vm3070_vm5 = vcmp.gt.f32.partialorder %v7573_v37, 20.0 }
 0x7a8   :  { %v5238_v31 = vpop.eup %5237  ;;  %v3273_v2 = vsel %vm3065_vm10, %v7547_v32, %v3257_v48  ;;  %v3179_v12 = vsel %vm7723_vm15, %v3176_v57, %v3173_v60  ;;  %v3211_v39 = vadd.f32 1.0, %v3210_v58  ;;  %v3220_v20 = vadd.f32 1.0, %v3219_v45 }
 0x7a9   :  { %v7763_v28 = vpop.eup %5239  ;;  %v3304_v35 = vpack.c.bf16 %v3273_v2, %v3272_v22  ;;  %v3259_v38 = vmul.f32 0.01, %v3179_v12  ;;  %v3182_v47 = vmul.f32 0.6931472, %v5238_v31  ;;  %v3274_v32 = vsel %vm3066_vm12, %v7538_v23, %v3258_v44 }
 0x7aa   :  { %v5242_v50 = vpop.eup %5241  ;;  %5249 = vlog2.f32 %v3225_v33  ;;  %v3234_v29 = vadd.f32 1.0, %v7744_v16  ;;  %v3203_v23 = vmul.f32 %v7688_v3, %v3202_v1  ;;  %v3222_v57 = vand.u32 2147483647, %v7706_v14 }
 0x7ab   :  { %v5244_v53 = vpop.eup %5243  ;;  %4658 = vmatprep.mubr.bf16.mxu0 %v3304_v35  ;;  %v3275_v22 = vsel %vm3067_vm14, %v7544_v49, %v3259_v38  ;;  %v3188_v52 = vsel %vm7727_vm0, %v3185_v43, %v3182_v47  ;;  %v3191_v26 = vmul.f32 0.6931472, %v5242_v50  ;;  %v3228_v24 = vmul.f32 -0.5, %v7734_v6 }
 0x7ac   :  { %v3305_v0 = vpack.c.bf16 %v3275_v22, %v3274_v32  ;;  %v3260_v8 = vmul.f32 0.01, %v3188_v52  ;;  %v3200_v46 = vmul.f32 0.6931472, %v5244_v53  ;;  %v5246_v25 = vpop.eup %5245  ;;  %5251 = vlog2.f32 %v3234_v29  ;;  %v4799_v52 = vld [vmem:[#allocation5 + $0x240] sm:$0xff]   ;;  %v4802_v29 = vld [vmem:[#allocation5 + $0x258] sm:$0xff]  }
 0x7ad   :  { %v3197_v59 = vsel %vm7748_vm3, %v3194_v10, %v3191_v26  ;;  %v3209_v43 = vmul.f32 0.6931472, %v5246_v25  ;;  %v3212_v56 = vmul.f32 %v7694_v41, %v3211_v39  ;;  %vm3214_vm6 = vcmp.lt.f32.partialorder %v3213_v18, 0.0004427343  ;;  %4670 = vmatprep.subr.bf16.mxu1 %v4799_v52  ;;  %v4800_v26 = vld [vmem:[#allocation5 + $0x248] sm:$0xff]  }
 0x7ae   :  { %4659 = vmatmul.mubr.bf16.gmra.mrb[52].mxu0 %v3305_v0  ;;  %v3261_v49 = vmul.f32 0.01, %v3197_v59  ;;  %v3206_v42 = vsel %vm7758_vm4, %v3203_v23, %v3200_v46  ;;  %v5248_v34 = vpop.eup %5247  ;;  %v3221_v15 = vmul.f32 %v7706_v14, %v3220_v20  ;;  %v3243_v62 = vadd.f32 1.0, %v7763_v28  ;;  %4671 = vmatpush3.bf16.msra.mxu1 %v4799_v52  ;;  %v5351_v0 = vld [vmem:[#allocation2] sm:$0xff]  ;;  %v5352_v46 = vld [vmem:[#allocation2 + $0x10] sm:$0xff]  ;;  %v5353_v25 = vld [vmem:[#allocation2 + $0x8] sm:$0xff] }
 0x7af   :  { %v3262_v3 = vmul.f32 0.01, %v3206_v42  ;;  %v3276_v58 = vsel %vm3068_vm1, %v7565_v55, %v3260_v8  ;;  %v3215_v7 = vsel %vm3214_vm6, %v3212_v56, %v3209_v43  ;;  %v3218_v60 = vmul.f32 0.6931472, %v5248_v34  ;;  %4672 = vmatprep.subr.bf16.mxu1 %v4800_v26  ;;  %v5355_v34 = vld [vmem:[#allocation2 + $0x20] sm:$0xff] }
 0x7b0   :  { %v3277_v48 = vsel %vm3069_vm2, %v7576_v36, %v3261_v49  ;;  %v3263_v44 = vmul.f32 0.01, %v3215_v7  ;;  %v3229_v41 = vadd.f32 1.0, %v3228_v24  ;;  %v3237_v9 = vmul.f32 -0.5, %v7744_v16  ;;  %v5357_v7 = vld [vmem:[#allocation2 + $0x30] sm:$0xff] }
 0x7b1   :  { %v3306_v45 = vpack.c.bf16 %v3277_v48, %v3276_v58  ;;  %vm3071_vm7 = vcmp.gt.f32.partialorder %v7586_v54, 20.0  ;;  %vm3223_vm8 = vcmp.lt.f32.partialorder %v3222_v57, 0.0004427343  ;;  %v3231_v14 = vand.u32 2147483647, %v7734_v6  ;;  %v5354_v57 = vld [vmem:[#allocation2 + $0x18] sm:$0xff] }
 0x7b2   :  { %5253 = vlog2.f32 %v3243_v62  ;;  %v3278_v55 = vsel %vm3070_vm5, %v7562_v21, %v3262_v3  ;;  %v3279_v36 = vsel %vm3071_vm7, %v7570_v40, %v3263_v44  ;;  %v3224_v5 = vsel %vm3223_vm8, %v3221_v15, %v3218_v60  ;;  %4673 = vmatpush3.bf16.msra.mxu1 %v4800_v26  ;;  %v5356_v15 = vld [vmem:[#allocation2 + $0x28] sm:$0xff] }
 0x7b3   :  { %4662 = vmatprep.mubr.bf16.mxu0 %v3306_v45  ;;  %v3307_v1 = vpack.c.bf16 %v3279_v36, %v3278_v55  ;;  %v3230_v31 = vmul.f32 %v7734_v6, %v3229_v41  ;;  %v3238_v2 = vadd.f32 1.0, %v3237_v9  ;;  %v3246_v54 = vmul.f32 -0.5, %v7763_v28  ;;  %v5358_v45 = vld [vmem:[#allocation2 + $0x38] sm:$0xff]  ;;  %v5360_v36 = vld [vmem:[#allocation2 + $0x48] sm:$0xff] }
 0x7b4   :  { %v5250_v13 = vpop.eup %5249  ;;  %vm3232_vm9 = vcmp.lt.f32.partialorder %v3231_v14, 0.0004427343  ;;  %v3264_v12 = vmul.f32 0.01, %v3224_v5  ;;  %v3240_v4 = vand.u32 2147483647, %v7744_v16 }
 0x7b5   :  { %v3227_v33 = vmul.f32 0.6931472, %v5250_v13  ;;  %vm3072_vm10 = vcmp.gt.f32.partialorder %v7628_v61, 20.0  ;;  %vm3073_vm11 = vcmp.gt.f32.partialorder %v7643_v27, 20.0  ;;  %v3239_v40 = vmul.f32 %v7744_v16, %v3238_v2  ;;  %v5359_v14 = vld [vmem:[#allocation2 + $0x40] sm:$0xff]  ;;  %v5362_v2 = vld [vmem:[#allocation2 + $0x58] sm:$0xff] }
 0x7b6   :  { %4663 = vmatmul.mubr.bf16.gmra.mrb[56].mxu0 %v3307_v1  ;;  %v5252_v18 = vpop.eup %5251  ;;  %v3247_v38 = vadd.f32 1.0, %v3246_v54  ;;  %v3280_v6 = vsel %vm3072_vm10, %v7617_v30, %v3264_v12  ;;  %vm3241_vm12 = vcmp.lt.f32.partialorder %v3240_v4, 0.0004427343  ;;  %v3249_v10 = vand.u32 2147483647, %v7763_v28 }
 0x7b7   :  { %v3233_v35 = vsel %vm3232_vm9, %v3230_v31, %v3227_v33  ;;  %v3236_v21 = vmul.f32 0.6931472, %v5252_v18  ;;  %vm3074_vm14 = vcmp.gt.f32.partialorder %v7622_v51, 20.0  ;;  %vm3075_vm15 = vcmp.gt.f32.partialorder %v7635_v19, 20.0  ;;  %v4803_v51 = vld [vmem:[#allocation5 + $0x260] sm:$0xff]   ;;  %v4805_v19 = vld [vmem:[#allocation5 + $0x270] sm:$0xff]  }
 0x7b8   :  { %v3265_v37 = vmul.f32 0.01, %v3233_v35  ;;  %v3248_v53 = vmul.f32 %v7763_v28, %v3247_v38  ;;  %vm3250_vm13 = vcmp.lt.f32.partialorder %v3249_v10, 0.0004427343  ;;  %v4801_v28 = vld [vmem:[#allocation5 + $0x250] sm:$0xff]   ;;  %vm3922_vm0 = vcmask 1048064  }
 0x7b9   :  { %v3242_v32 = vsel %vm3241_vm12, %v3239_v40, %v3236_v21  ;;  %4674 = vmatprep.subr.bf16.mxu1 %v4801_v28  ;;  %v3906_v8 = vand.u32 2147483647, %v5351_v0  ;;  %v3908_v23 = vand.u32 2147483647, %v5352_v46  ;;  %v3907_v59 = vand.u32 2147483647, %v5353_v25 }
 0x7ba   :  { %v3281_v47 = vsel %vm3073_vm11, %v7631_v63, %v3265_v37  ;;  %v3266_v61 = vmul.f32 0.01, %v3242_v32  ;;  %4675 = vmatpush3.bf16.msra.mxu1 %v4801_v28  ;;  %v3909_v24 = vand.u32 2147483647, %v5354_v57  ;;  %v3910_v3 = vand.u32 2147483647, %v5355_v34 }
 0x7bb   :  { %v3308_v50 = vpack.c.bf16 %v3281_v47, %v3280_v6  ;;  %4676 = vmatprep.subr.bf16.mxu1 %v4802_v29  ;;  %v3923_v49 = vsel %vm3922_vm0, %v3906_v8, -inf  ;;  %v3929_v42 = vsel %vm3922_vm0, %v3908_v23, -inf  ;;  %v3926_v43 = vsel %vm3922_vm0, %v3907_v59, -inf  ;;  %v5361_v33 = vld [vmem:[#allocation2 + $0x50] sm:$0xff]  ;;  %v5363_v18 = vld [vmem:[#allocation2 + $0x60] sm:$0xff]  ;;  %v5364_v37 = vld [vmem:[#allocation2 + $0x68] sm:$0xff] }
 0x7bc   :  { %v5254_v39 = vpop.eup %5253  ;;  %v3282_v30 = vsel %vm3074_vm14, %v7603_v11, %v3266_v61  ;;  %v4804_v11 = vld [vmem:[#allocation5 + $0x268] sm:$0xff]   ;;  %3924 = vmax.xlane.f32.xlu0 %v3923_v49  ;;  %3930 = vmax.xlane.f32.xlu1 %v3929_v42  ;;  %v3932_v56 = vsel %vm3922_vm0, %v3909_v24, -inf  ;;  %v3911_v62 = vand.u32 2147483647, %v5356_v15  ;;  %v3935_v58 = vsel %vm3922_vm0, %v3910_v3, -inf  ;;  %v5365_v6 = vld [vmem:[#allocation2 + $0x70] sm:$0xff] }
 0x7bd   :  { %4666 = vmatprep.mubr.bf16.mxu0 %v3308_v50  ;;  %v3245_v20 = vmul.f32 0.6931472, %v5254_v39  ;;  %v3912_v60 = vand.u32 2147483647, %v5357_v7  ;;  %v3913_v44 = vand.u32 2147483647, %v5358_v45 }
 0x7be   :  { %4677 = vmatpush3.bf16.msra.mxu1 %v4802_v29  ;;  %v3938_v48 = vsel %vm3922_vm0, %v3911_v62, -inf  ;;  %v3914_v55 = vand.u32 2147483647, %v5359_v14  ;;  %v3915_v5 = vand.u32 2147483647, %v5360_v36  ;;  %v5366_v10 = vld [vmem:[#allocation2 + $0x78] sm:$0xff] }
 0x7bf   :  { %v3251_v27 = vsel %vm3250_vm13, %v3248_v53, %v3245_v20  ;;  %4678 = vmatprep.subr.bf16.mxu1 %v4803_v51  ;;  %v3941_v41 = vsel %vm3922_vm0, %v3912_v60, -inf  ;;  %v3944_v9 = vsel %vm3922_vm0, %v3913_v44, -inf  ;;  %v3916_v31 = vand.u32 2147483647, %v5361_v33  ;;  %v7829_v20 = vld [vmem:[#allocation7 + $0x7] ss:$0 sm:$0xff] }
 0x7c0   :  { %v3267_v22 = vmul.f32 0.01, %v3251_v27  ;;  %3927 = vmax.xlane.f32.xlu0 %v3926_v43  ;;  %3933 = vmax.xlane.f32.xlu1 %v3932_v56  ;;  %v3947_v13 = vsel %vm3922_vm0, %v3914_v55, -inf  ;;  %v3950_v1 = vsel %vm3922_vm0, %v3915_v5, -inf  ;;  %v3917_v54 = vand.u32 2147483647, %v5362_v2 }
 0x7c1   :  { %v3953_v12 = vsel %vm3922_vm0, %v3916_v31, -inf  ;;  %v3918_v35 = vand.u32 2147483647, %v5363_v18  ;;  %v3919_v21 = vand.u32 2147483647, %v5364_v37 }
 0x7c2   :  { %v3283_v63 = vsel %vm3075_vm15, %v7625_v17, %v3267_v22  ;;  %4679 = vmatpush3.bf16.msra.mxu1 %v4803_v51  ;;  %v4806_v17 = vld [vmem:[#allocation5 + $0x278] sm:$0xff]   ;;  %v3956_v4 = vsel %vm3922_vm0, %v3917_v54, -inf  ;;  %v3920_v47 = vand.u32 2147483647, %v5365_v6  ;;  %v3921_v50 = vand.u32 2147483647, %v5366_v10 }
 0x7c3   :  { %v3309_v16 = vpack.c.bf16 %v3283_v63, %v3282_v30  ;;  %4680 = vmatprep.subr.bf16.mxu1 %v4804_v11  ;;  %v3959_v40 = vsel %vm3922_vm0, %v3918_v35, -inf  ;;  %v3962_v38 = vsel %vm3922_vm0, %v3919_v21, -inf }
 0x7c4   :  { %3936 = vmax.xlane.f32.xlu0 %v3935_v58  ;;  %3939 = vmax.xlane.f32.xlu1 %v3938_v48  ;;  %v3965_v32 = vsel %vm3922_vm0, %v3920_v47, -inf  ;;  %v3968_v39 = vsel %vm3922_vm0, %v3921_v50, -inf }
 0x7c5   :  { %4667 = vmatmul.mubr.bf16.gmra.mrb[60].mxu0 %v3309_v16 }
 0x7c6   :  { %4681 = vmatpush3.bf16.msra.mxu1 %v4804_v11 }
 0x7c7   :  { %4682 = vmatprep.subr.bf16.mxu1 %v4805_v19 }
 0x7c8   :  { %3942 = vmax.xlane.f32.xlu0 %v3941_v41  ;;  %3945 = vmax.xlane.f32.xlu1 %v3944_v9 }
 0x7ca   :  { %4683 = vmatpush3.bf16.msra.mxu1 %v4805_v19 }
 0x7cb   :  { %4684 = vmatprep.subr.bf16.mxu1 %v4806_v17 }
 0x7cc   :  { %3948 = vmax.xlane.f32.xlu0 %v3947_v13  ;;  %3951 = vmax.xlane.f32.xlu1 %v3950_v1 }
 0x7ce   :  { %4685 = vmatpush3.bf16.msra.mxu1 %v4806_v17 }
 0x7d0   :  { %3954 = vmax.xlane.f32.xlu0 %v3953_v12  ;;  %3957 = vmax.xlane.f32.xlu1 %v3956_v4 }
 0x7d4   :  { %3960 = vmax.xlane.f32.xlu0 %v3959_v40  ;;  %3963 = vmax.xlane.f32.xlu1 %v3962_v38 }
 0x7d8   :  { %3966 = vmax.xlane.f32.xlu0 %v3965_v32  ;;  %3969 = vmax.xlane.f32.xlu1 %v3968_v39 }
 0x871   :  { %v4656_v53 = vpop.f32.mrb[48].mxu0 }
 0x872   :  { %v7832_v61 = vadd.f32 %v4656_v53, %v7829_v20  ;;  %v3396_v27 = vpop.f32.mrb[49].mxu0 }
 0x873   :  { %v7835_v22 = vadd.f32 %v7829_v20, %v3396_v27  ;;  %v4657_v30 = vpop.f32.mrb[50].mxu0 }
 0x874   :  { %v7838_v63 = vmul.f32 100.0, %v7832_v61  ;;  %v7841_v16 = vadd.f32 %v4657_v30, %v7829_v20  ;;  %v3399_v52 = vpop.f32.mrb[51].mxu0 }
 0x875   :  { %v7844_v26 = vmul.f32 100.0, %v7835_v22  ;;  %v7851_v51 = vadd.f32 %v7829_v20, %v3399_v52 }
 0x876   :  { %v3477_v28 = vmin.f32 %v7838_v63, 20.0  ;;  %v7848_v29 = vmul.f32 100.0, %v7841_v16  ;;  %vm3493_vm1 = vcmp.gt.f32.partialorder %v7838_v63, 20.0 }
 0x877   :  { %v3475_v19 = vmin.f32 %v7844_v26, 20.0  ;;  %v7856_v8 = vmul.f32 100.0, %v7851_v51  ;;  %vm3491_vm5 = vcmp.gt.f32.partialorder %v7844_v26, 20.0 }
 0x878   :  { %v3511_v11 = vmul.f32 1.442695, %v3477_v28  ;;  %v3478_v17 = vmin.f32 %v7848_v29, 20.0  ;;  %vm3494_vm3 = vcmp.gt.f32.partialorder %v7848_v29, 20.0 }
 0x879   :  { %v3507_v46 = vmul.f32 1.442695, %v3475_v19  ;;  %v3476_v23 = vmin.f32 %v7856_v8, 20.0  ;;  %vm3492_vm7 = vcmp.gt.f32.partialorder %v7856_v8, 20.0 }
 0x87a   :  { %5255 = vpow2.f32 %v3511_v11  ;;  %v3513_v0 = vmul.f32 1.442695, %v3478_v17 }
 0x87b   :  { %v3509_v49 = vmul.f32 1.442695, %v3476_v23 }
 0x87c   :  { %5257 = vpow2.f32 %v3513_v0 }
 0x87d   :  { %5259 = vpow2.f32 %v3507_v46 }
 0x87e   :  { %5261 = vpow2.f32 %v3509_v49 }
 0x881   :  { %v4660_v25 = vpop.f32.mrb[52].mxu0 }
 0x882   :  { %v3412_v59 = vpop.f32.mrb[53].mxu0  ;;  %v7863_v43 = vadd.f32 %v4660_v25, %v7829_v20 }
 0x883   :  { %v7860_v57 = vadd.f32 %v7829_v20, %v3412_v59  ;;  %v4661_v24 = vpop.f32.mrb[54].mxu0 }
 0x884   :  { %v3415_v42 = vpop.f32.mrb[55].mxu0  ;;  %v5256_v34 = vpop.eup %5255  ;;  %v7869_v3 = vadd.f32 %v4661_v24, %v7829_v20  ;;  %v7876_v60 = vmul.f32 100.0, %v7863_v43 }
 0x885   :  { %v7866_v56 = vmul.f32 100.0, %v7860_v57  ;;  %v3557_v15 = vadd.f32 1.0, %v5256_v34  ;;  %v7873_v58 = vadd.f32 %v7829_v20, %v3415_v42  ;;  %v3560_v5 = vmul.f32 -0.5, %v5256_v34 }
 0x886   :  { %v5258_v48 = vpop.eup %5257  ;;  %v7879_v41 = vmul.f32 100.0, %v7869_v3  ;;  %v3563_v33 = vand.u32 2147483647, %v5256_v34  ;;  %v3481_v31 = vmin.f32 %v7876_v60, 20.0  ;;  %vm3497_vm14 = vcmp.gt.f32.partialorder %v7876_v60, 20.0 }
 0x887   :  { %v3479_v62 = vmin.f32 %v7866_v56, 20.0  ;;  %5263 = vlog2.f32 %v3557_v15  ;;  %v3566_v7 = vadd.f32 1.0, %v5258_v48  ;;  %v7882_v14 = vmul.f32 100.0, %v7873_v58  ;;  %v7884_v36 = vpop.eup %5259 }
 0x888   :  { %v3569_v12 = vmul.f32 -0.5, %v5258_v48  ;;  %v3482_v4 = vmin.f32 %v7879_v41, 20.0  ;;  %v3539_v40 = vadd.f32 1.0, %v7884_v36  ;;  %v3561_v38 = vadd.f32 1.0, %v3560_v5  ;;  %v7914_v53 = vpop.eup %5261 }
 0x889   :  { %v4664_v45 = vpop.f32.mrb[56].mxu0  ;;  %v3515_v44 = vmul.f32 1.442695, %v3479_v62  ;;  %5265 = vlog2.f32 %v3566_v7  ;;  %v3480_v2 = vmin.f32 %v7882_v14, 20.0  ;;  %v3542_v10 = vmul.f32 -0.5, %v7884_v36 }
 0x88a   :  { %v3428_v9 = vpop.f32.mrb[57].mxu0  ;;  %v7887_v13 = vadd.f32 %v4664_v45, %v7829_v20  ;;  %v3519_v50 = vmul.f32 1.442695, %v3481_v31  ;;  %vm7917_vm2 = vcmp.lt.f32.partialorder %v3563_v33, 0.0004427343  ;;  %v3570_v30 = vadd.f32 1.0, %v3569_v12 }
 0x88b   :  { %v4665_v55 = vpop.f32.mrb[58].mxu0  ;;  %5267 = vpow2.f32 %v3515_v44  ;;  %v7892_v54 = vadd.f32 %v7829_v20, %v3428_v9  ;;  %v3517_v6 = vmul.f32 1.442695, %v3480_v2  ;;  %v3521_v52 = vmul.f32 1.442695, %v3482_v4 }
 0x88c   :  { %v3431_v1 = vpop.f32.mrb[59].mxu0  ;;  %v7896_v18 = vmul.f32 100.0, %v7887_v13  ;;  %v7905_v21 = vadd.f32 %v4665_v55, %v7829_v20  ;;  %v3572_v11 = vand.u32 2147483647, %v5258_v48  ;;  %5269 = vlog2.f32 %v3539_v40 }
 0x88d   :  { %v7899_v35 = vadd.f32 %v7829_v20, %v3431_v1  ;;  %v7902_v37 = vmul.f32 100.0, %v7892_v54  ;;  %v3562_v46 = vmul.f32 %v5256_v34, %v3561_v38  ;;  %5271 = vpow2.f32 %v3517_v6 }
 0x88e   :  { %v3485_v47 = vmin.f32 %v7896_v18, 20.0  ;;  %v7923_v17 = vmul.f32 100.0, %v7905_v21  ;;  %v3543_v23 = vadd.f32 1.0, %v3542_v10  ;;  %5273 = vpow2.f32 %v3519_v50 }
 0x88f   :  { %v3483_v32 = vmin.f32 %v7902_v37, 20.0  ;;  %v7912_v39 = vmul.f32 100.0, %v7899_v35  ;;  %v3548_v49 = vadd.f32 1.0, %v7914_v53  ;;  %v3571_v7 = vmul.f32 %v5258_v48, %v3570_v30 }
 0x890   :  { %v3527_v19 = vmul.f32 1.442695, %v3485_v47  ;;  %5275 = vpow2.f32 %v3521_v52  ;;  %vm3573_vm4 = vcmp.lt.f32.partialorder %v3572_v11, 0.0004427343  ;;  %v3486_v34 = vmin.f32 %v7923_v17, 20.0 }
 0x891   :  { %v5264_v28 = vpop.eup %5263  ;;  %v3523_v59 = vmul.f32 1.442695, %v3483_v32  ;;  %v3484_v24 = vmin.f32 %v7912_v39, 20.0  ;;  %v3544_v55 = vmul.f32 %v7884_v36, %v3543_v23  ;;  %v3545_v4 = vand.u32 2147483647, %v7884_v36 }
 0x892   :  { %v3559_v0 = vmul.f32 0.6931472, %v5264_v28  ;;  %5277 = vpow2.f32 %v3527_v19  ;;  %v3551_v40 = vmul.f32 -0.5, %v7914_v53  ;;  %v3529_v32 = vmul.f32 1.442695, %v3486_v34 }
 0x893   :  { %v5266_v25 = vpop.eup %5265  ;;  %5279 = vlog2.f32 %v3548_v49  ;;  %v3525_v33 = vmul.f32 1.442695, %v3484_v24  ;;  %v3554_v30 = vand.u32 2147483647, %v7914_v53  ;;  %vm7982_vm6 = vcmp.lt.f32.partialorder %v3545_v4, 0.0004427343 }
 0x894   :  { %v3565_v15 = vsel %vm7917_vm2, %v3562_v46, %v3559_v0  ;;  %v3568_v62 = vmul.f32 0.6931472, %v5266_v25  ;;  %5281 = vpow2.f32 %v3523_v59  ;;  %v3552_v59 = vadd.f32 1.0, %v3551_v40 }
 0x895   :  { %v7927_v42 = vpop.eup %5267  ;;  %v3685_v45 = vmul.f32 0.01, %v3565_v15  ;;  %vm7996_vm8 = vcmp.lt.f32.partialorder %v3554_v30, 0.0004427343  ;;  %vm3495_vm10 = vcmp.gt.f32.partialorder %v7866_v56, 20.0  ;;  %vm3496_vm11 = vcmp.gt.f32.partialorder %v7882_v14, 20.0 }
 0x896   :  { %v3574_v44 = vsel %vm3573_vm4, %v3571_v7, %v3568_v62  ;;  %v3575_v5 = vadd.f32 1.0, %v7927_v42  ;;  %v5270_v29 = vpop.eup %5269  ;;  %v3578_v52 = vmul.f32 -0.5, %v7927_v42  ;;  %v3581_v62 = vand.u32 2147483647, %v7927_v42 }
 0x897   :  { %v3686_v1 = vmul.f32 0.01, %v3574_v44  ;;  %v7945_v38 = vsel %vm3493_vm1, %v7832_v61, %v3685_v45  ;;  %v7972_v28 = vpop.eup %5271  ;;  %v3553_v40 = vmul.f32 %v7914_v53, %v3552_v59  ;;  %vm3498_vm1 = vcmp.gt.f32.partialorder %v7879_v41, 20.0 }
 0x898   :  { %v4668_v9 = vpop.f32.mrb[60].mxu0  ;;  %5283 = vlog2.f32 %v3575_v5  ;;  %v7978_v0 = vpop.eup %5273  ;;  %v3579_v34 = vadd.f32 1.0, %v3578_v52  ;;  %v3584_v44 = vadd.f32 1.0, %v7972_v28  ;;  %vm8004_vm9 = vcmp.lt.f32.partialorder %v3581_v62, 0.0004427343 }
 0x899   :  { %v7935_v31 = vadd.f32 %v4668_v9, %v7829_v20  ;;  %v3444_v48 = vpop.f32.mrb[61].mxu0  ;;  %v7950_v6 = vsel %vm3494_vm3, %v7841_v16, %v3686_v1  ;;  %5285 = vpow2.f32 %v3525_v33  ;;  %v3593_v33 = vadd.f32 1.0, %v7978_v0 }
 0x89a   :  { %v7938_v2 = vadd.f32 %v7829_v20, %v3444_v48  ;;  %v4669_v12 = vpop.f32.mrb[62].mxu0  ;;  %v3734_v50 = vpack.c.bf16 %v7950_v6, %v7945_v38  ;;  %v7986_v24 = vpop.eup %5275  ;;  %5287 = vpow2.f32 %v3529_v32  ;;  %v3580_v52 = vmul.f32 %v7927_v42, %v3579_v34 }
 0x89b   :  { %v7953_v47 = vmul.f32 100.0, %v7935_v31  ;;  %v7956_v10 = vadd.f32 %v4669_v12, %v7829_v20  ;;  %v3447_v36 = vpop.f32.mrb[63].mxu0  ;;  %v3596_v53 = vmul.f32 -0.5, %v7978_v0  ;;  %v3605_v25 = vmul.f32 -0.5, %v7986_v24 }
 0x89c   :  { %v7961_v63 = vmul.f32 100.0, %v7938_v2  ;;  %v7964_v61 = vadd.f32 %v7829_v20, %v3447_v36  ;;  %v3541_v20 = vmul.f32 0.6931472, %v5270_v29  ;;  %v7991_v7 = vpop.eup %5277  ;;  %v3587_v29 = vmul.f32 -0.5, %v7972_v28 }
 0x89d   :  { %v3489_v16 = vmin.f32 %v7953_v47, 20.0  ;;  %v7968_v27 = vmul.f32 100.0, %v7956_v10  ;;  %v5280_v9 = vpop.eup %5279  ;;  %v3599_v34 = vand.u32 2147483647, %v7978_v0  ;;  %v3632_v38 = vmul.f32 -0.5, %v7991_v7 }
 0x89e   :  { %v3487_v11 = vmin.f32 %v7961_v63, 20.0  ;;  %v7976_v19 = vmul.f32 100.0, %v7964_v61  ;;  %v3547_v45 = vsel %vm7982_vm6, %v3544_v55, %v3541_v20  ;;  %v8001_v48 = vpop.eup %5281  ;;  %v3550_v4 = vmul.f32 0.6931472, %v5280_v9 }
 0x89f   :  { %v3535_v46 = vmul.f32 1.442695, %v3489_v16  ;;  %v3490_v23 = vmin.f32 %v7968_v27, 20.0  ;;  %v3683_v36 = vmul.f32 0.01, %v3547_v45  ;;  %v3611_v62 = vadd.f32 1.0, %v8001_v48 }
 0x8a0   :  { %v3531_v49 = vmul.f32 1.442695, %v3487_v11  ;;  %v3488_v15 = vmin.f32 %v7976_v19, 20.0  ;;  %v3556_v16 = vsel %vm7996_vm8, %v3553_v40, %v3550_v4  ;;  %v3590_v20 = vand.u32 2147483647, %v7972_v28 }
 0x8a1   :  { %5289 = vpow2.f32 %v3535_v46  ;;  %v3537_v12 = vmul.f32 1.442695, %v3490_v23  ;;  %v3684_v11 = vmul.f32 0.01, %v3556_v16  ;;  %v3602_v23 = vadd.f32 1.0, %v7986_v24 }
 0x8a2   :  { %v3533_v5 = vmul.f32 1.442695, %v3488_v15  ;;  %5291 = vpow2.f32 %v3531_v49  ;;  %v5284_v55 = vpop.eup %5283  ;;  %v3699_v42 = vsel %vm3491_vm5, %v7835_v22, %v3683_v36  ;;  %v3588_v15 = vadd.f32 1.0, %v3587_v29 }
 0x8a3   :  { %v3577_v30 = vmul.f32 0.6931472, %v5284_v55  ;;  %v8018_v59 = vpop.eup %5285  ;;  %v3700_v49 = vsel %vm3492_vm7, %v7851_v51, %v3684_v11  ;;  %v3606_v22 = vadd.f32 1.0, %v3605_v25  ;;  %v3608_v51 = vand.u32 2147483647, %v7986_v24 }
 0x8a4   :  { %5293 = vpow2.f32 %v3533_v5  ;;  %v3733_v45 = vpack.c.bf16 %v3700_v49, %v3699_v42  ;;  %v3597_v5 = vadd.f32 1.0, %v3596_v53  ;;  %v8030_v26 = vpop.eup %5287  ;;  %v3617_v8 = vand.u32 2147483647, %v8001_v48  ;;  %v8158_v11 = vld [vmem:[#allocation7 + $0x8] ss:$0 sm:$0xff] }
 0x8a5   :  { %5295 = vlog2.f32 %v3584_v44  ;;  %v3583_v46 = vsel %vm8004_vm9, %v3580_v52, %v3577_v30  ;;  %v3614_v44 = vmul.f32 -0.5, %v8001_v48  ;;  %v3620_v1 = vadd.f32 1.0, %v8018_v59 }
 0x8a6   :  { %5297 = vlog2.f32 %v3593_v33  ;;  %v3687_v9 = vmul.f32 0.01, %v3583_v46  ;;  %4686 = vmatprep.mubr.bf16.mxu1 %v3733_v45  ;;  %vm8042_vm12 = vcmp.lt.f32.partialorder %v3590_v20, 0.0004427343  ;;  %v3629_v55 = vadd.f32 1.0, %v7991_v7 }
 0x8a7   :  { %5299 = vpow2.f32 %v3537_v12  ;;  %4687 = vmatmul.mubr.bf16.vlgmr.msra.gmra.mrb[64].mxu1 %v3734_v50  ;;  %v3589_v12 = vmul.f32 %v7972_v28, %v3588_v15  ;;  %v3615_v40 = vadd.f32 1.0, %v3614_v44  ;;  %vm8049_vm13 = vcmp.lt.f32.partialorder %v3599_v34, 0.0004427343 }
 0x8a8   :  { %5301 = vlog2.f32 %v3602_v23  ;;  %v3623_v29 = vmul.f32 -0.5, %v8018_v59  ;;  %v3703_v50 = vsel %vm3495_vm10, %v7860_v57, %v3687_v9  ;;  %v3598_v28 = vmul.f32 %v7978_v0, %v3597_v5 }
 0x8a9   :  { %5303 = vlog2.f32 %v3611_v62  ;;  %v3638_v16 = vadd.f32 1.0, %v8030_v26  ;;  %v3607_v52 = vmul.f32 %v7986_v24, %v3606_v22  ;;  %vm8064_vm15 = vcmp.lt.f32.partialorder %v3608_v51, 0.0004427343 }
 0x8aa   :  { %5305 = vlog2.f32 %v3620_v1  ;;  %vm8068_vm0 = vcmp.lt.f32.partialorder %v3617_v8, 0.0004427343  ;;  %v3626_v57 = vand.u32 2147483647, %v8018_v59  ;;  %v3616_v53 = vmul.f32 %v8001_v48, %v3615_v40 }
 0x8ab   :  { %v8035_v33 = vpop.eup %5289  ;;  %5307 = vlog2.f32 %v3629_v55  ;;  %v3624_v25 = vadd.f32 1.0, %v3623_v29  ;;  %v3633_v42 = vadd.f32 1.0, %v3632_v38  ;;  %v3635_v49 = vand.u32 2147483647, %v7991_v7 }
 0x8ac   :  { %v8047_v36 = vpop.eup %5291  ;;  %5309 = vlog2.f32 %v3638_v16  ;;  %v3641_v62 = vmul.f32 -0.5, %v8030_v26  ;;  %vm8085_vm2 = vcmp.lt.f32.partialorder %v3626_v57, 0.0004427343  ;;  %v3644_v5 = vand.u32 2147483647, %v8030_v26 }
 0x8ad   :  { %v3647_v46 = vadd.f32 1.0, %v8047_v36  ;;  %vm3499_vm3 = vcmp.gt.f32.partialorder %v7902_v37, 20.0  ;;  %vm3500_vm4 = vcmp.gt.f32.partialorder %v7912_v39, 20.0  ;;  %v3650_v1 = vmul.f32 -0.5, %v8047_v36 }
 0x8ae   :  { %v8055_v6 = vpop.eup %5293  ;;  %v3625_v40 = vmul.f32 %v8018_v59, %v3624_v25  ;;  %vm8097_vm5 = vcmp.lt.f32.partialorder %v3635_v49, 0.0004427343  ;;  %v3634_v38 = vmul.f32 %v7991_v7, %v3633_v42  ;;  %vm3501_vm6 = vcmp.gt.f32.partialorder %v7896_v18, 20.0 }
 0x8af   :  { %v5296_v30 = vpop.eup %5295  ;;  %5311 = vlog2.f32 %v3647_v46  ;;  %v3656_v45 = vadd.f32 1.0, %v8055_v6  ;;  %vm3502_vm7 = vcmp.gt.f32.partialorder %v7923_v17, 20.0  ;;  %v3659_v59 = vmul.f32 -0.5, %v8055_v6 }
 0x8b0   :  { %v5298_v56 = vpop.eup %5297  ;;  %v3586_v0 = vmul.f32 0.6931472, %v5296_v30  ;;  %v3665_v30 = vadd.f32 1.0, %v8035_v33  ;;  %vm8113_vm8 = vcmp.lt.f32.partialorder %v3644_v5, 0.0004427343  ;;  %v3651_v57 = vadd.f32 1.0, %v3650_v1 }
 0x8b1   :  { %v8076_v24 = vpop.eup %5299  ;;  %v3595_v23 = vmul.f32 0.6931472, %v5298_v56  ;;  %5313 = vlog2.f32 %v3656_v45  ;;  %v3653_v60 = vand.u32 2147483647, %v8047_v36  ;;  %v3662_v45 = vand.u32 2147483647, %v8055_v6 }
 0x8b2   :  { %v3592_v15 = vsel %vm8042_vm12, %v3589_v12, %v3586_v0  ;;  %v5302_v34 = vpop.eup %5301  ;;  %5315 = vlog2.f32 %v3665_v30  ;;  %vm3504_vm12 = vcmp.gt.f32.partialorder %v7976_v19, 20.0  ;;  %v3671_v18 = vand.u32 2147483647, %v8035_v33 }
 0x8b3   :  { %v3688_v48 = vmul.f32 0.01, %v3592_v15  ;;  %v3601_v44 = vsel %vm8049_vm13, %v3598_v28, %v3595_v23  ;;  %v5304_v22 = vpop.eup %5303  ;;  %v3604_v51 = vmul.f32 0.6931472, %v5302_v34  ;;  %v3642_v28 = vadd.f32 1.0, %v3641_v62 }
 0x8b4   :  { %v3689_v8 = vmul.f32 0.01, %v3601_v44  ;;  %v3613_v4 = vmul.f32 0.6931472, %v5304_v22  ;;  %v5306_v16 = vpop.eup %5305  ;;  %v3660_v15 = vadd.f32 1.0, %v3659_v59  ;;  %v3652_v62 = vmul.f32 %v8047_v36, %v3651_v57 }
 0x8b5   :  { %v3704_v12 = vsel %vm3496_vm11, %v7873_v58, %v3688_v48  ;;  %v3610_v29 = vsel %vm8064_vm15, %v3607_v52, %v3604_v51  ;;  %v3622_v52 = vmul.f32 0.6931472, %v5306_v16  ;;  %v3674_v34 = vadd.f32 1.0, %v8076_v24 }
 0x8b6   :  { %v3735_v32 = vpack.c.bf16 %v3704_v12, %v3703_v50  ;;  %v3690_v58 = vmul.f32 0.01, %v3610_v29  ;;  %v3619_v14 = vsel %vm8068_vm0, %v3616_v53, %v3613_v4  ;;  %v5308_v50 = vpop.eup %5307  ;;  %v3705_v7 = vsel %vm3497_vm14, %v7863_v43, %v3689_v8 }
 0x8b7   :  { %v3691_v56 = vmul.f32 0.01, %v3619_v14  ;;  %v3631_v0 = vmul.f32 0.6931472, %v5308_v50  ;;  %v5310_v53 = vpop.eup %5309  ;;  %v3628_v23 = vsel %vm8085_vm2, %v3625_v40, %v3622_v52  ;;  %v3643_v43 = vmul.f32 %v8030_v26, %v3642_v28  ;;  %v3931_v52 = vpop.xlane.xlu1 %3930 }
 0x8b8   :  { %4690 = vmatprep.mubr.bf16.mxu1 %v3735_v32  ;;  %v3706_v20 = vsel %vm3498_vm1, %v7869_v3, %v3690_v58  ;;  %v3692_v25 = vmul.f32 0.01, %v3628_v23  ;;  %v3640_v49 = vmul.f32 0.6931472, %v5310_v53  ;;  %vm3654_vm9 = vcmp.lt.f32.partialorder %v3653_v60, 0.0004427343 }
 0x8b9   :  { %v3736_v46 = vpack.c.bf16 %v3706_v20, %v3705_v7  ;;  %v3637_v42 = vsel %vm8097_vm5, %v3634_v38, %v3631_v0  ;;  %v5312_v41 = vpop.eup %5311  ;;  %v3707_v26 = vsel %vm3499_vm3, %v7892_v54, %v3691_v56  ;;  %v3668_v36 = vmul.f32 -0.5, %v8035_v33  ;;  %v3925_v7 = vpop.xlane.xlu0 %3924 }
 0x8ba   :  { %v3693_v3 = vmul.f32 0.01, %v3637_v42  ;;  %v3708_v48 = vsel %vm3500_vm4, %v7899_v35, %v3692_v25  ;;  %v3646_v44 = vsel %vm8113_vm8, %v3643_v43, %v3640_v49  ;;  %v3649_v9 = vmul.f32 0.6931472, %v5312_v41 }
 0x8bb   :  { %4691 = vmatmul.mubr.bf16.gmra.mrb[68].mxu1 %v3736_v46  ;;  %v5314_v5 = vpop.eup %5313  ;;  %v3737_v22 = vpack.c.bf16 %v3708_v48, %v3707_v26  ;;  %v3694_v51 = vmul.f32 0.01, %v3646_v44  ;;  %v3661_v12 = vmul.f32 %v8055_v6, %v3660_v15  ;;  %5317 = vlog2.f32 %v3674_v34  ;;  %v3934_v0 = vpop.xlane.xlu1 %3933 }
 0x8bc   :  { %v3655_v8 = vsel %vm3654_vm9, %v3652_v62, %v3649_v9  ;;  %v3658_v1 = vmul.f32 0.6931472, %v5314_v5  ;;  %v3709_v54 = vsel %vm3501_vm6, %v7887_v13, %v3693_v3  ;;  %vm3663_vm10 = vcmp.lt.f32.partialorder %v3662_v45, 0.0004427343  ;;  %v5316_v29 = vpop.eup %5315 }
 0x8bd   :  { %4694 = vmatprep.mubr.bf16.mxu1 %v3737_v22  ;;  %v3710_v35 = vsel %vm3502_vm7, %v7905_v21, %v3694_v51  ;;  %v3695_v37 = vmul.f32 0.01, %v3655_v8  ;;  %v3669_v55 = vadd.f32 1.0, %v3668_v36  ;;  %v3677_v32 = vmul.f32 -0.5, %v8076_v24  ;;  %v3928_v57 = vpop.xlane.xlu0 %3927 }
 0x8be   :  { %v3738_v39 = vpack.c.bf16 %v3710_v35, %v3709_v54  ;;  %v3664_v4 = vsel %vm3663_vm10, %v3661_v12, %v3658_v1  ;;  %vm3503_vm11 = vcmp.gt.f32.partialorder %v7961_v63, 20.0  ;;  %v3667_v17 = vmul.f32 0.6931472, %v5316_v29 }
 0x8bf   :  { %v3696_v40 = vmul.f32 0.01, %v3664_v4  ;;  %v3711_v13 = vsel %vm3503_vm11, %v7938_v2, %v3695_v37  ;;  %v3670_v38 = vmul.f32 %v8035_v33, %v3669_v55  ;;  %v3678_v28 = vadd.f32 1.0, %v3677_v32  ;;  %v3940_v25 = vpop.xlane.xlu1 %3939 }
 0x8c0   :  { %vm3672_vm13 = vcmp.lt.f32.partialorder %v3671_v18, 0.0004427343  ;;  %v3680_v16 = vand.u32 2147483647, %v8076_v24  ;;  %vm3505_vm15 = vcmp.gt.f32.partialorder %v7953_v47, 20.0  ;;  %vm3506_vm0 = vcmp.gt.f32.partialorder %v7968_v27, 20.0 }
 0x8c1   :  { %v3712_v21 = vsel %vm3504_vm12, %v7964_v61, %v3696_v40  ;;  %v3673_v58 = vsel %vm3672_vm13, %v3670_v38, %v3667_v17  ;;  %v3679_v19 = vmul.f32 %v8076_v24, %v3678_v28  ;;  %vm3973_vm1 = vcmp.le.f32.partialorder %v3931_v52, 1.0  ;;  %v3937_v43 = vpop.xlane.xlu0 %3936 }
 0x8c2   :  { %v3739_v6 = vpack.c.bf16 %v3712_v21, %v3711_v13  ;;  %vm3681_vm14 = vcmp.lt.f32.partialorder %v3680_v16, 0.0004427343  ;;  %v3697_v59 = vmul.f32 0.01, %v3673_v58  ;;  %vm3974_vm2 = vcmp.le.f32.partialorder %v3934_v0, 1.0 }
 0x8c3   :  { %4695 = vmatmul.mubr.bf16.gmra.mrb[72].mxu1 %v3738_v39  ;;  %vm3971_vm3 = vcmp.le.f32.partialorder %v3925_v7, 1.0  ;;  %v5468_v46 = vmov 0.0   ;;  %vm3972_vm4 = vcmp.le.f32.partialorder %v3928_v57, 1.0  ;;  %v3946_v48 = vpop.xlane.xlu1 %3945  ;;  %vm3975_vm7 = vcmp.le.f32.partialorder %v3937_v43, 1.0 }
 0x8c4   :  { %4698 = vmatprep.mubr.bf16.mxu1 %v3739_v6  ;;  %v3713_v61 = vsel %vm3505_vm15, %v7935_v31, %v3697_v59  ;;  %v4208_v23 = vsel %vm3973_vm1, 1.0, %v5468_v46  ;;  %v4209_v60 = vsel %vm3974_vm2, 1.0, %v5468_v46  ;;  %v4206_v42 = vsel %vm3971_vm3, 1.0, %v5468_v46 }
 0x8c5   :  { %v5318_v63 = vpop.eup %5317  ;;  %v4037_v49 = vsub.f32 1.0, %v4208_v23  ;;  %v4207_v15 = vsel %vm3972_vm4, 1.0, %v5468_v46  ;;  %v4038_v41 = vsub.f32 1.0, %v4209_v60  ;;  %v4035_v3 = vsub.f32 1.0, %v4206_v42  ;;  %v3943_v45 = vpop.xlane.xlu0 %3942 }
 0x8c6   :  { %v3676_v14 = vmul.f32 0.6931472, %v5318_v63  ;;  %v4036_v62 = vsub.f32 1.0, %v4207_v15  ;;  %vm3977_vm5 = vcmp.le.f32.partialorder %v3943_v45, 1.0  ;;  %vm3978_vm6 = vcmp.le.f32.partialorder %v3946_v48, 1.0 }
 0x8c7   :  { %v4053_v34 = vmul.f32 0.3, %v4037_v49  ;;  %v4054_v5 = vmul.f32 0.3, %v4038_v41  ;;  %v4051_v36 = vmul.f32 0.3, %v4035_v3  ;;  %v3952_v6 = vpop.xlane.xlu1 %3951 }
 0x8c8   :  { %v3682_v30 = vsel %vm3681_vm14, %v3679_v19, %v3676_v14  ;;  %v4052_v8 = vmul.f32 0.3, %v4036_v62  ;;  %v4212_v28 = vsel %vm3977_vm5, 1.0, %v5468_v46  ;;  %vm3976_vm8 = vcmp.le.f32.partialorder %v3940_v25, 1.0 }
 0x8c9   :  { %v3698_v2 = vmul.f32 0.01, %v3682_v30  ;;  %v3949_v55 = vpop.xlane.xlu0 %3948  ;;  %v4041_v16 = vsub.f32 1.0, %v4212_v28  ;;  %v4213_v58 = vsel %vm3978_vm6, 1.0, %v5468_v46  ;;  %v4210_v14 = vsel %vm3975_vm7, 1.0, %v5468_v46 }
 0x8ca   :  { %v4042_v7 = vsub.f32 1.0, %v4213_v58  ;;  %v4039_v52 = vsub.f32 1.0, %v4210_v14  ;;  %vm3979_vm10 = vcmp.le.f32.partialorder %v3949_v55, 1.0  ;;  %vm3980_vm12 = vcmp.le.f32.partialorder %v3952_v6, 1.0 }
 0x8cb   :  { %v3714_v33 = vsel %vm3506_vm0, %v7956_v10, %v3698_v2  ;;  %v3958_v2 = vpop.xlane.xlu1 %3957  ;;  %v4057_v57 = vmul.f32 0.3, %v4041_v16  ;;  %v4214_v25 = vsel %vm3979_vm10, 1.0, %v5468_v46  ;;  %v4215_v62 = vsel %vm3980_vm12, 1.0, %v5468_v46 }
 0x8cc   :  { %v3740_v50 = vpack.c.bf16 %v3714_v33, %v3713_v61  ;;  %v4211_v61 = vsel %vm3976_vm8, 1.0, %v5468_v46  ;;  %vm3982_vm11 = vcmp.le.f32.partialorder %v3958_v2, 1.0 }
 0x8cd   :  { %v3955_v63 = vpop.xlane.xlu0 %3954 }
 0x8ce   :  { %4699 = vmatmul.mubr.bf16.gmra.mrb[76].mxu1 %v3740_v50  ;;  %vm3981_vm9 = vcmp.le.f32.partialorder %v3955_v63, 1.0 }
 0x8d1   :  { %v3961_v49 = vpop.xlane.xlu0 %3960 }
 0x8d2   :  { %vm3983_vm15 = vcmp.le.f32.partialorder %v3961_v49, 1.0 }
 0x97a   :  { %v4688_v24 = vpop.f32.mrb[64].mxu1 }
 0x97b   :  { %v3836_v20 = vadd.f32 %v4688_v24, %v8158_v11  ;;  %v3827_v56 = vpop.f32.mrb[65].mxu1 }
 0x97c   :  { %v3828_v47 = vadd.f32 %v8158_v11, %v3827_v56  ;;  %v4689_v53 = vpop.f32.mrb[66].mxu1 }
 0x97d   :  { %5319 = vtanh.f32 %v3836_v20  ;;  %v3839_v31 = vadd.f32 %v4689_v53, %v8158_v11  ;;  %v3830_v10 = vpop.f32.mrb[67].mxu1  ;;  %v4216_v53 = vsel %vm3981_vm9, 1.0, %v5468_v46 }
 0x97e   :  { %5321 = vtanh.f32 %v3828_v47  ;;  %v3831_v27 = vadd.f32 %v8158_v11, %v3830_v10  ;;  %v4040_v47 = vsub.f32 1.0, %v4211_v61  ;;  %v4045_v45 = vsub.f32 1.0, %v4216_v53 }
 0x97f   :  { %5323 = vtanh.f32 %v3839_v31 }
 0x980   :  { %5325 = vtanh.f32 %v3831_v27  ;;  %v4058_v27 = vmul.f32 0.3, %v4042_v7  ;;  %v4056_v48 = vmul.f32 0.3, %v4040_v47 }
 0x987   :  { %v5320_v26 = vpop.eup %5319 }
 0x988   :  { %v5322_v44 = vpop.eup %5321  ;;  %v4021_v9 = vmul.f32 %v5320_v26, %v4208_v23 }
 0x989   :  { %v5324_v22 = vpop.eup %5323  ;;  %v4019_v51 = vmul.f32 %v5322_v44, %v4206_v42  ;;  %v4217_v42 = vsel %vm3982_vm11, 1.0, %v5468_v46  ;;  %v3964_v44 = vpop.xlane.xlu1 %3963 }
 0x98a   :  { %v5326_v1 = vpop.eup %5325  ;;  %v4069_v12 = vadd.f32 %v4053_v34, %v4021_v9  ;;  %v4022_v35 = vmul.f32 %v5324_v22, %v4209_v60  ;;  %v4055_v60 = vmul.f32 0.3, %v4039_v52  ;;  %vm3984_vm0 = vcmp.le.f32.partialorder %v3964_v44, 1.0 }
 0x98b   :  { %v4067_v37 = vadd.f32 %v4051_v36, %v4019_v51  ;;  %v4020_v4 = vmul.f32 %v5326_v1, %v4207_v15  ;;  %v4043_v51 = vsub.f32 1.0, %v4214_v25  ;;  %v4044_v36 = vsub.f32 1.0, %v4215_v62 }
 0x98c   :  { %4085 = vst [vmem:[#allocation8 + $0x10] sm:$0xff] %v4069_v12  ;;  %v4070_v18 = vadd.f32 %v4054_v5, %v4022_v35  ;;  %v4046_v5 = vsub.f32 1.0, %v4217_v42  ;;  %v3967_v12 = vpop.xlane.xlu0 %3966  ;;  %v4219_v7 = vsel %vm3984_vm0, 1.0, %v5468_v46 }
 0x98d   :  { %4083 = vst [vmem:[#allocation8] sm:$0xff] %v4067_v37  ;;  %v4068_v13 = vadd.f32 %v4052_v8, %v4020_v4  ;;  %v4061_v8 = vmul.f32 0.3, %v4045_v45  ;;  %v4059_v55 = vmul.f32 0.3, %v4043_v51  ;;  %vm3985_vm13 = vcmp.le.f32.partialorder %v3967_v12, 1.0 }
 0x98e   :  { %v4692_v54 = vpop.f32.mrb[68].mxu1  ;;  %4086 = vst [vmem:[#allocation8 + $0x18] sm:$0xff] %v4070_v18  ;;  %v4220_v2 = vsel %vm3985_vm13, 1.0, %v5468_v46 }
 0x98f   :  { %v3852_v39 = vadd.f32 %v4692_v54, %v8158_v11  ;;  %v3843_v40 = vpop.f32.mrb[69].mxu1  ;;  %4084 = vst [vmem:[#allocation8 + $0x8] sm:$0xff] %v4068_v13  ;;  %v3970_v13 = vpop.xlane.xlu1 %3969 }
 0x990   :  { %v3844_v32 = vadd.f32 %v8158_v11, %v3843_v40  ;;  %v4693_v29 = vpop.f32.mrb[70].mxu1  ;;  %vm3986_vm14 = vcmp.le.f32.partialorder %v3970_v13, 1.0 }
 0x991   :  { %5327 = vtanh.f32 %v3852_v39  ;;  %v3855_v21 = vadd.f32 %v4693_v29, %v8158_v11  ;;  %v3846_v17 = vpop.f32.mrb[71].mxu1  ;;  %v4062_v39 = vmul.f32 0.3, %v4046_v5 }
 0x992   :  { %5329 = vtanh.f32 %v3844_v32  ;;  %v3847_v38 = vadd.f32 %v8158_v11, %v3846_v17  ;;  %v4060_v32 = vmul.f32 0.3, %v4044_v36 }
 0x993   :  { %5331 = vtanh.f32 %v3855_v21 }
 0x994   :  { %5333 = vtanh.f32 %v3847_v38 }
 0x996   :  { %v4696_v19 = vpop.f32.mrb[72].mxu1 }
 0x997   :  { %v3868_v59 = vadd.f32 %v4696_v19, %v8158_v11  ;;  %v3859_v30 = vpop.f32.mrb[73].mxu1 }
 0x998   :  { %v3860_v33 = vadd.f32 %v8158_v11, %v3859_v30  ;;  %v4697_v50 = vpop.f32.mrb[74].mxu1 }
 0x999   :  { %5335 = vtanh.f32 %v3868_v59  ;;  %v3871_v24 = vadd.f32 %v4697_v50, %v8158_v11  ;;  %v3862_v20 = vpop.f32.mrb[75].mxu1  ;;  %v4049_v50 = vsub.f32 1.0, %v4220_v2 }
 0x99a   :  { %5337 = vtanh.f32 %v3860_v33  ;;  %v3863_v56 = vadd.f32 %v8158_v11, %v3862_v20  ;;  %v4218_v33 = vsel %vm3983_vm15, 1.0, %v5468_v46  ;;  %v4048_v20 = vsub.f32 1.0, %v4219_v7 }
 0x99b   :  { %v5328_v0 = vpop.eup %5327  ;;  %5339 = vtanh.f32 %v3871_v24 }
 0x99c   :  { %v5330_v31 = vpop.eup %5329  ;;  %v4025_v10 = vmul.f32 %v5328_v0, %v4212_v28  ;;  %5341 = vtanh.f32 %v3863_v56 }
 0x99d   :  { %v5332_v23 = vpop.eup %5331  ;;  %v4023_v43 = vmul.f32 %v5330_v31, %v4210_v14 }
 0x99e   :  { %v5334_v15 = vpop.eup %5333  ;;  %v4073_v41 = vadd.f32 %v4057_v57, %v4025_v10  ;;  %v4026_v3 = vmul.f32 %v5332_v23, %v4213_v58  ;;  %v4065_v57 = vmul.f32 0.3, %v4049_v50 }
 0x99f   :  { %v4071_v34 = vadd.f32 %v4055_v60, %v4023_v43  ;;  %v4024_v26 = vmul.f32 %v5334_v15, %v4211_v61  ;;  %v4221_v61 = vsel %vm3986_vm14, 1.0, %v5468_v46 }
 0x9a0   :  { %4089 = vst [vmem:[#allocation8 + $0x30] sm:$0xff] %v4073_v41  ;;  %v4074_v9 = vadd.f32 %v4058_v27, %v4026_v3  ;;  %v4050_v52 = vsub.f32 1.0, %v4221_v61 }
 0x9a1   :  { %4087 = vst [vmem:[#allocation8 + $0x20] sm:$0xff] %v4071_v34  ;;  %v4072_v22 = vadd.f32 %v4056_v48, %v4024_v26  ;;  %v4700_v35 = vpop.f32.mrb[76].mxu1 }
 0x9a2   :  { %4090 = vst [vmem:[#allocation8 + $0x38] sm:$0xff] %v4074_v9  ;;  %v3884_v29 = vadd.f32 %v4700_v35, %v8158_v11  ;;  %v3875_v18 = vpop.f32.mrb[77].mxu1  ;;  %v4066_v47 = vmul.f32 0.3, %v4050_v52 }
 0x9a3   :  { %v5336_v1 = vpop.eup %5335  ;;  %4088 = vst [vmem:[#allocation8 + $0x28] sm:$0xff] %v4072_v22  ;;  %v3876_v6 = vadd.f32 %v8158_v11, %v3875_v18  ;;  %v4701_v38 = vpop.f32.mrb[78].mxu1 }
 0x9a4   :  { %v5338_v54 = vpop.eup %5337  ;;  %v4029_v37 = vmul.f32 %v5336_v1, %v4216_v53  ;;  %5343 = vtanh.f32 %v3884_v29  ;;  %v3887_v63 = vadd.f32 %v4701_v38, %v8158_v11  ;;  %v3878_v14 = vpop.f32.mrb[79].mxu1 }
 0x9a5   :  { %v5340_v4 = vpop.eup %5339  ;;  %v4027_v40 = vmul.f32 %v5338_v54, %v4214_v25  ;;  %5345 = vtanh.f32 %v3876_v6  ;;  %v3879_v59 = vadd.f32 %v8158_v11, %v3878_v14  ;;  %v4047_v11 = vsub.f32 1.0, %v4218_v33 }
 0x9a6   :  { %v5342_v21 = vpop.eup %5341  ;;  %v4077_v17 = vadd.f32 %v4061_v8, %v4029_v37  ;;  %v4030_v28 = vmul.f32 %v5340_v4, %v4217_v42  ;;  %5347 = vtanh.f32 %v3887_v63  ;;  %v4064_v42 = vmul.f32 0.3, %v4048_v20 }
 0x9a7   :  { %v4075_v16 = vadd.f32 %v4059_v55, %v4027_v40  ;;  %v4028_v58 = vmul.f32 %v5342_v21, %v4215_v62  ;;  %5349 = vtanh.f32 %v3879_v59  ;;  %v4063_v10 = vmul.f32 0.3, %v4047_v11 }
 0x9a8   :  { %4093 = vst [vmem:[#allocation8 + $0x50] sm:$0xff] %v4077_v17  ;;  %v4078_v19 = vadd.f32 %v4062_v39, %v4030_v28 }
 0x9a9   :  { %4091 = vst [vmem:[#allocation8 + $0x40] sm:$0xff] %v4075_v16  ;;  %v4076_v30 = vadd.f32 %v4060_v32, %v4028_v58 }
 0x9aa   :  { %4094 = vst [vmem:[#allocation8 + $0x58] sm:$0xff] %v4078_v19 }
 0x9ab   :  { %4092 = vst [vmem:[#allocation8 + $0x48] sm:$0xff] %v4076_v30 }
 0x9ae   :  { %v5344_v24 = vpop.eup %5343 }
 0x9af   :  { %v5346_v56 = vpop.eup %5345  ;;  %v4033_v0 = vmul.f32 %v5344_v24, %v4220_v2 }
 0x9b0   :  { %v5348_v53 = vpop.eup %5347  ;;  %v4031_v31 = vmul.f32 %v5346_v56, %v4218_v33 }
 0x9b1   :  { %v5350_v27 = vpop.eup %5349  ;;  %v4081_v23 = vadd.f32 %v4065_v57, %v4033_v0  ;;  %v4034_v43 = vmul.f32 %v5348_v53, %v4221_v61 }
 0x9b2   :  { %v4079_v60 = vadd.f32 %v4063_v10, %v4031_v31  ;;  %v4032_v25 = vmul.f32 %v5350_v27, %v4219_v7 }
 0x9b3   :  { %4097 = vst [vmem:[#allocation8 + $0x70] sm:$0xff] %v4081_v23  ;;  %v4082_v46 = vadd.f32 %v4066_v47, %v4034_v43 }
 0x9b4   :  { %4095 = vst [vmem:[#allocation8 + $0x60] sm:$0xff] %v4079_v60  ;;  %v4080_v49 = vadd.f32 %v4064_v42, %v4032_v25 }
 0x9b5   :  { %4098 = vst [vmem:[#allocation8 + $0x78] sm:$0xff] %v4082_v46 }
 0x9b6   :  { %4096 = vst [vmem:[#allocation8 + $0x68] sm:$0xff] %v4080_v49 }
 0x9b7   :  { %5444 = shalt.err (!%p5441_p0)
}
 0x9b8   :  { %s5445_s27 = scalar_lea.hbm %s8210_s3, 2048 }
 0x9b9   :  { %p5446_p1 = scmp.ne.s32.totalorder %s8210_s3, %s5445_s27  ;;  %p5449_p2 = scmp.lt.u32.totalorder %s5445_s27, %s8210_s3 }
 0x9bb   :  { %p5451_p3 = pnand %p5449_p2, %p5446_p1 }
 0x9bd   :  { %5454 = shalt.err (!%p5451_p3)
}
 0x9be   :  { %4110 = dma.vmem_to_hbm [thread:$0]  %s4105_s23, 2048, %s8210_s3, [#allocation4], %s5465_s1, %s5465_s1, %s5466_s9  }
 0x9bf   :  { %5459 = dma.done.wait [#allocation4], 2048  }
 0x9c0   :  { %5460 = vsyncadd [#allocation4], 4294965248 }
 0x9c1   :  { %4114 = vsyncpa [#allocation3], 1 }
 0x9c2   :  { %4115 = vsyncpa [#allocation6], 1 }
 0x9c3   :  { %4116 = vsyncpa [#allocation4], 1 }

</bundles_post_ra>
